<compile_context>
chip_gen: v5e
topology: v5e:2x2
jax: 0.10.0
libtpu: 0.0.40
codegen_flags: <defaults>
</compile_context>

<pallas_src>
import functools

import jax
import jax.numpy as jnp
from jax.experimental import pallas as pl
from jax.experimental.pallas import tpu as pltpu


def _attention_kernel(x_ref, wqkv_ref, bqkv_ref, wo_ref, bo_ref, o_ref, *,
                      num_heads, win):
    M, C = x_ref.shape              # M = Bt * win token rows, C = dim
    Bt = M // win                   # windows fused into this grid step
    hd = C // num_heads

    xf = x_ref[...].astype(jnp.bfloat16)                        # (M, C) bf16 MXU operand

    # ---- fused QKV projection: one lane-dense matmul, q-scale folded into weights ----
    qkv = jnp.dot(xf, wqkv_ref[...], preferred_element_type=jnp.float32)   # (M, 3C)
    qkv = (qkv + bqkv_ref[...]).astype(jnp.bfloat16)
    q_all = qkv[:, 0 * C:1 * C]     # 128-lane tile-aligned splits -> free
    k_all = qkv[:, 1 * C:2 * C]
    v_all = qkv[:, 2 * C:3 * C]

    # ---- per-head attention (statically unrolled; hd=32 lane slices within a vreg) ----
    ctx_heads = []
    for h in range(num_heads):
        lo = h * hd
        qh = q_all[:, lo:lo + hd].reshape(Bt, win, hd)
        kh = k_all[:, lo:lo + hd].reshape(Bt, win, hd)
        vh = v_all[:, lo:lo + hd].reshape(Bt, win, hd)

        s = jnp.einsum('bnd,bmd->bnm', qh, kh,
                       preferred_element_type=jnp.float32)      # (Bt, win, win)
        s = s - jnp.max(s, axis=-1, keepdims=True)
        p = jnp.exp(s)
        p = p * pl.reciprocal(jnp.sum(p, axis=-1, keepdims=True), approx=True)

        ctx = jnp.einsum('bnm,bmd->bnd', p.astype(jnp.bfloat16), vh,
                         preferred_element_type=jnp.float32)    # (Bt, win, hd)
        ctx_heads.append(ctx.reshape(M, hd).astype(jnp.bfloat16))

    # ---- output projection: single matmul with K = C (head-concat layout) ----
    ctx_all = jnp.concatenate(ctx_heads, axis=-1)               # (M, C)
    out = jnp.dot(ctx_all, wo_ref[...], preferred_element_type=jnp.float32) + bo_ref[...]
    o_ref[...] = out.astype(o_ref.dtype)


def attention_forward(x, params, num_heads, *, windows_per_step=None):
    """x: (B, N, C) float32 -> (B, N, C) float32.  mask=None / attn_kv=None path."""
    B, N, C = x.shape
    assert C % num_heads == 0
    hd = C // num_heads
    scale = hd ** (-0.5)

    # Fuse several windows per grid step for big-M matmuls; keep the grid even (>=2)
    # so both v7x TensorCores get work.
    if windows_per_step is None:
        windows_per_step = 2 if (B % 2 == 0 and B >= 4) else 1
    Bt = windows_per_step
    assert B % Bt == 0
    M = Bt * N

    # Host-side weight prep: fused QKV weight in (in, out) layout, q-scale folded in,
    # matmul weights pre-cast to bf16, biases kept in f32 (added to the f32 accumulator).
    wqkv = jnp.concatenate(
        [params["wq"] * scale, params["wk"], params["wv"]], axis=1).astype(jnp.bfloat16)
    bqkv = jnp.concatenate(
        [params["bq"] * scale, params["bk"], params["bv"]]).reshape(1, 3 * C).astype(jnp.float32)
    wo = params["wo"].astype(jnp.bfloat16)                      # (C, C), (in, out)
    bo = params["bo"].reshape(1, C).astype(jnp.float32)

    x2 = x.reshape(B * N, C)

    kernel = functools.partial(_attention_kernel, num_heads=num_heads, win=N)
    rep = lambda i: (0, 0)      # replicated weight/bias blocks

    out = pl.pallas_call(
        kernel,
        out_shape=jax.ShapeDtypeStruct((B * N, C), x.dtype),
        grid_spec=pltpu.PrefetchScalarGridSpec(
            num_scalar_prefetch=0,
            grid=(B // Bt,),
            in_specs=[
                pl.BlockSpec((M, C), lambda i: (i, 0)),          # x tokens (Bt windows)
                pl.BlockSpec((C, 3 * C), rep),                   # fused Wqkv (scaled q), bf16
                pl.BlockSpec((1, 3 * C), rep),                   # fused bqkv (scaled q)
                pl.BlockSpec((C, C), rep),                       # Wo
                pl.BlockSpec((1, C), rep),                       # bo
            ],
            out_specs=pl.BlockSpec((M, C), lambda i: (i, 0)),
        ),
        compiler_params=pltpu.CompilerParams(dimension_semantics=("parallel",)),
    )(x2, wqkv, bqkv, wo, bo)
    return out.reshape(B, N, C)


def attention_reference(x, params, num_heads):
    """Pure-JAX f32 reference matching the PyTorch Attention.forward (mask=None)."""
    B, N, C = x.shape
    hd = C // num_heads
    scale = hd ** (-0.5)
    q = (x @ params["wq"] + params["bq"]) * scale
    k = x @ params["wk"] + params["bk"]
    v = x @ params["wv"] + params["bv"]
    split = lambda t: t.reshape(B, N, num_heads, hd).transpose(0, 2, 1, 3)
    qh, kh, vh = split(q), split(k), split(v)
    attn = jax.nn.softmax(jnp.einsum('bhnd,bhmd->bhnm', qh, kh), axis=-1)
    ctx = jnp.einsum('bhnm,bhmd->bhnd', attn, vh)
    ctx = ctx.transpose(0, 2, 1, 3).reshape(B, N, C)
    return ctx @ params["wo"] + params["bo"]


if __name__ == "__main__":
    # 4 windows of 8x8=64 tokens, dim=128 (lane-dense), 4 heads -> head_dim=32.
    B, N, dim, num_heads = 4, 64, 128, 4

    key = jax.random.PRNGKey(0)
    keys = jax.random.split(key, 9)
    x = jax.random.normal(keys[0], (B, N, dim), jnp.float32)
    params = {
        "wq": jax.random.normal(keys[1], (dim, dim), jnp.float32) * 0.1,  # to_q   (in,out)
        "bq": jax.random.normal(keys[2], (dim,), jnp.float32) * 0.1,
        "wk": jax.random.normal(keys[3], (dim, dim), jnp.float32) * 0.1,  # to_kv (K half)
        "bk": jax.random.normal(keys[4], (dim,), jnp.float32) * 0.1,
        "wv": jax.random.normal(keys[5], (dim, dim), jnp.float32) * 0.1,  # to_kv (V half)
        "bv": jax.random.normal(keys[6], (dim,), jnp.float32) * 0.1,
        "wo": jax.random.normal(keys[7], (dim, dim), jnp.float32) * 0.1,  # proj   (in,out)
        "bo": jax.random.normal(keys[8], (dim,), jnp.float32) * 0.1,
    }

    out = attention_forward(x, params, num_heads)
    out = jax.block_until_ready(out)

    ref = attention_reference(x, params, num_heads)
    err = float(jnp.max(jnp.abs(out - ref)))
    assert out.shape == (B, N, dim)
    # bf16 MXU operands (f32 accumulation) + approximate softmax reciprocal -> loose
    # absolute tolerance (outputs are O(0.5); observed error is typically ~1e-2).
    assert err < 5e-2, f"max abs err too large: {err}"
    print("KERNEL_OK")
</pallas_src>

<mosaic_0001>
module attributes {stable_mosaic.version = 11 : i64} {
  func.func @_attention_kernel(%arg0: i32, %arg1: memref<128x128xf32, #tpu.memory_space<vmem>>, %arg2: memref<128x384xbf16, #tpu.memory_space<vmem>>, %arg3: memref<1x384xf32, #tpu.memory_space<vmem>>, %arg4: memref<128x128xbf16, #tpu.memory_space<vmem>>, %arg5: memref<1x128xf32, #tpu.memory_space<vmem>>, %arg6: memref<128x128xf32, #tpu.memory_space<vmem>>) attributes {dimension_semantics = [#tpu.dimension_semantics<parallel>], iteration_bounds = array<i64: 2>, scalar_prefetch = 0 : i64, scratch_operands = 0 : i64, tpu.core_type = #tpu.core_type<tc>, window_params = [{transform_indices = @transform_0, window_bounds = array<i64: 128, 128>}, {pipeline_mode = #tpu.pipeline_mode<synchronous>, transform_indices = @transform_1, window_bounds = array<i64: 128, 384>}, {pipeline_mode = #tpu.pipeline_mode<synchronous>, transform_indices = @transform_2, window_bounds = array<i64: 1, 384>}, {pipeline_mode = #tpu.pipeline_mode<synchronous>, transform_indices = @transform_3, window_bounds = array<i64: 128, 128>}, {pipeline_mode = #tpu.pipeline_mode<synchronous>, transform_indices = @transform_4, window_bounds = array<i64: 1, 128>}, {transform_indices = @transform_5, window_bounds = array<i64: 128, 128>}]} {
    %c0 = arith.constant 0 : index
    %c0_0 = arith.constant 0 : index
    %0 = vector.load %arg1[%c0, %c0_0] : memref<128x128xf32, #tpu.memory_space<vmem>>, vector<128x128xf32>
    %1 = arith.truncf %0 : vector<128x128xf32> to vector<128x128xbf16>
    %c0_1 = arith.constant 0 : index
    %c0_2 = arith.constant 0 : index
    %2 = vector.load %arg2[%c0_1, %c0_2] : memref<128x384xbf16, #tpu.memory_space<vmem>>, vector<128x384xbf16>
    %cst = arith.constant dense<0.000000e+00> : vector<128x384xf32>
    %3 = tpu.matmul %1, %2, %cst {dimension_numbers = #tpu.dot_dimension_numbers<[1], [0], [0], [1], [0, 0, 1, 1], [], []>} : vector<128x128xbf16>, vector<128x384xbf16>, vector<128x384xf32> -> vector<128x384xf32>
    %c0_3 = arith.constant 0 : index
    %c0_4 = arith.constant 0 : index
    %4 = vector.load %arg3[%c0_3, %c0_4] : memref<1x384xf32, #tpu.memory_space<vmem>>, vector<1x384xf32>
    %5 = vector.broadcast %4 : vector<1x384xf32> to vector<128x384xf32>
    %6 = arith.addf %3, %5 : vector<128x384xf32>
    %7 = arith.truncf %6 : vector<128x384xf32> to vector<128x384xbf16>
    %8 = vector.extract_strided_slice %7 {offsets = [0, 0], sizes = [128, 128], strides = [1, 1]} : vector<128x384xbf16> to vector<128x128xbf16>
    %9 = vector.extract_strided_slice %7 {offsets = [0, 128], sizes = [128, 128], strides = [1, 1]} : vector<128x384xbf16> to vector<128x128xbf16>
    %10 = vector.extract_strided_slice %7 {offsets = [0, 256], sizes = [128, 128], strides = [1, 1]} : vector<128x384xbf16> to vector<128x128xbf16>
    %11 = vector.extract_strided_slice %8 {offsets = [0, 0], sizes = [128, 32], strides = [1, 1]} : vector<128x128xbf16> to vector<128x32xbf16>
    %12 = vector.shape_cast %11 : vector<128x32xbf16> to vector<2x64x32xbf16>
    %13 = vector.extract_strided_slice %9 {offsets = [0, 0], sizes = [128, 32], strides = [1, 1]} : vector<128x128xbf16> to vector<128x32xbf16>
    %14 = vector.shape_cast %13 : vector<128x32xbf16> to vector<2x64x32xbf16>
    %15 = vector.extract_strided_slice %10 {offsets = [0, 0], sizes = [128, 32], strides = [1, 1]} : vector<128x128xbf16> to vector<128x32xbf16>
    %16 = vector.shape_cast %15 : vector<128x32xbf16> to vector<2x64x32xbf16>
    "tpu.trace_start"() <{level = 10 : i32, message = "bnd,bmd->bnm"}> : () -> ()
    %cst_5 = arith.constant dense<0.000000e+00> : vector<2x64x64xf32>
    %17 = tpu.matmul %12, %14, %cst_5 {dimension_numbers = #tpu.dot_dimension_numbers<[2], [2], [1], [1], [0, 0, 0, 1, 1, 1], [0], [0]>} : vector<2x64x32xbf16>, vector<2x64x32xbf16>, vector<2x64x64xf32> -> vector<2x64x64xf32>
    "tpu.trace_stop"() : () -> ()
    %cst_6 = arith.constant dense<0xFF800000> : vector<2x64xf32>
    %18 = vector.multi_reduction <maximumf>, %17, %cst_6 [2] : vector<2x64x64xf32> to vector<2x64xf32>
    %19 = vector.shape_cast %18 : vector<2x64xf32> to vector<2x64x1xf32>
    %20 = vector.broadcast %19 : vector<2x64x1xf32> to vector<2x64x64xf32>
    %21 = arith.subf %17, %20 : vector<2x64x64xf32>
    %22 = math.exp %21 : vector<2x64x64xf32>
    %cst_7 = arith.constant dense<0.000000e+00> : vector<2x64xf32>
    %23 = vector.multi_reduction <add>, %22, %cst_7 [2] : vector<2x64x64xf32> to vector<2x64xf32>
    %24 = vector.shape_cast %23 : vector<2x64xf32> to vector<2x64x1xf32>
    %25 = tpu.reciprocal %24 {approx = true} : vector<2x64x1xf32> -> vector<2x64x1xf32>
    %26 = vector.broadcast %25 : vector<2x64x1xf32> to vector<2x64x64xf32>
    %27 = arith.mulf %22, %26 : vector<2x64x64xf32>
    %28 = arith.truncf %27 : vector<2x64x64xf32> to vector<2x64x64xbf16>
    "tpu.trace_start"() <{level = 10 : i32, message = "bnm,bmd->bnd"}> : () -> ()
    %cst_8 = arith.constant dense<0.000000e+00> : vector<2x64x32xf32>
    %29 = tpu.matmul %28, %16, %cst_8 {dimension_numbers = #tpu.dot_dimension_numbers<[2], [1], [1], [2], [0, 0, 0, 1, 1, 2], [0], [0]>} : vector<2x64x64xbf16>, vector<2x64x32xbf16>, vector<2x64x32xf32> -> vector<2x64x32xf32>
    "tpu.trace_stop"() : () -> ()
    %30 = vector.shape_cast %29 : vector<2x64x32xf32> to vector<128x32xf32>
    %31 = arith.truncf %30 : vector<128x32xf32> to vector<128x32xbf16>
    %32 = vector.extract_strided_slice %8 {offsets = [0, 32], sizes = [128, 32], strides = [1, 1]} : vector<128x128xbf16> to vector<128x32xbf16>
    %33 = vector.shape_cast %32 : vector<128x32xbf16> to vector<2x64x32xbf16>
    %34 = vector.extract_strided_slice %9 {offsets = [0, 32], sizes = [128, 32], strides = [1, 1]} : vector<128x128xbf16> to vector<128x32xbf16>
    %35 = vector.shape_cast %34 : vector<128x32xbf16> to vector<2x64x32xbf16>
    %36 = vector.extract_strided_slice %10 {offsets = [0, 32], sizes = [128, 32], strides = [1, 1]} : vector<128x128xbf16> to vector<128x32xbf16>
    %37 = vector.shape_cast %36 : vector<128x32xbf16> to vector<2x64x32xbf16>
    "tpu.trace_start"() <{level = 10 : i32, message = "bnd,bmd->bnm"}> : () -> ()
    %cst_9 = arith.constant dense<0.000000e+00> : vector<2x64x64xf32>
    %38 = tpu.matmul %33, %35, %cst_9 {dimension_numbers = #tpu.dot_dimension_numbers<[2], [2], [1], [1], [0, 0, 0, 1, 1, 1], [0], [0]>} : vector<2x64x32xbf16>, vector<2x64x32xbf16>, vector<2x64x64xf32> -> vector<2x64x64xf32>
    "tpu.trace_stop"() : () -> ()
    %cst_10 = arith.constant dense<0xFF800000> : vector<2x64xf32>
    %39 = vector.multi_reduction <maximumf>, %38, %cst_10 [2] : vector<2x64x64xf32> to vector<2x64xf32>
    %40 = vector.shape_cast %39 : vector<2x64xf32> to vector<2x64x1xf32>
    %41 = vector.broadcast %40 : vector<2x64x1xf32> to vector<2x64x64xf32>
    %42 = arith.subf %38, %41 : vector<2x64x64xf32>
    %43 = math.exp %42 : vector<2x64x64xf32>
    %cst_11 = arith.constant dense<0.000000e+00> : vector<2x64xf32>
    %44 = vector.multi_reduction <add>, %43, %cst_11 [2] : vector<2x64x64xf32> to vector<2x64xf32>
    %45 = vector.shape_cast %44 : vector<2x64xf32> to vector<2x64x1xf32>
    %46 = tpu.reciprocal %45 {approx = true} : vector<2x64x1xf32> -> vector<2x64x1xf32>
    %47 = vector.broadcast %46 : vector<2x64x1xf32> to vector<2x64x64xf32>
    %48 = arith.mulf %43, %47 : vector<2x64x64xf32>
    %49 = arith.truncf %48 : vector<2x64x64xf32> to vector<2x64x64xbf16>
    "tpu.trace_start"() <{level = 10 : i32, message = "bnm,bmd->bnd"}> : () -> ()
    %cst_12 = arith.constant dense<0.000000e+00> : vector<2x64x32xf32>
    %50 = tpu.matmul %49, %37, %cst_12 {dimension_numbers = #tpu.dot_dimension_numbers<[2], [1], [1], [2], [0, 0, 0, 1, 1, 2], [0], [0]>} : vector<2x64x64xbf16>, vector<2x64x32xbf16>, vector<2x64x32xf32> -> vector<2x64x32xf32>
    "tpu.trace_stop"() : () -> ()
    %51 = vector.shape_cast %50 : vector<2x64x32xf32> to vector<128x32xf32>
    %52 = arith.truncf %51 : vector<128x32xf32> to vector<128x32xbf16>
    %53 = vector.extract_strided_slice %8 {offsets = [0, 64], sizes = [128, 32], strides = [1, 1]} : vector<128x128xbf16> to vector<128x32xbf16>
    %54 = vector.shape_cast %53 : vector<128x32xbf16> to vector<2x64x32xbf16>
    %55 = vector.extract_strided_slice %9 {offsets = [0, 64], sizes = [128, 32], strides = [1, 1]} : vector<128x128xbf16> to vector<128x32xbf16>
    %56 = vector.shape_cast %55 : vector<128x32xbf16> to vector<2x64x32xbf16>
    %57 = vector.extract_strided_slice %10 {offsets = [0, 64], sizes = [128, 32], strides = [1, 1]} : vector<128x128xbf16> to vector<128x32xbf16>
    %58 = vector.shape_cast %57 : vector<128x32xbf16> to vector<2x64x32xbf16>
    "tpu.trace_start"() <{level = 10 : i32, message = "bnd,bmd->bnm"}> : () -> ()
    %cst_13 = arith.constant dense<0.000000e+00> : vector<2x64x64xf32>
    %59 = tpu.matmul %54, %56, %cst_13 {dimension_numbers = #tpu.dot_dimension_numbers<[2], [2], [1], [1], [0, 0, 0, 1, 1, 1], [0], [0]>} : vector<2x64x32xbf16>, vector<2x64x32xbf16>, vector<2x64x64xf32> -> vector<2x64x64xf32>
    "tpu.trace_stop"() : () -> ()
    %cst_14 = arith.constant dense<0xFF800000> : vector<2x64xf32>
    %60 = vector.multi_reduction <maximumf>, %59, %cst_14 [2] : vector<2x64x64xf32> to vector<2x64xf32>
    %61 = vector.shape_cast %60 : vector<2x64xf32> to vector<2x64x1xf32>
    %62 = vector.broadcast %61 : vector<2x64x1xf32> to vector<2x64x64xf32>
    %63 = arith.subf %59, %62 : vector<2x64x64xf32>
    %64 = math.exp %63 : vector<2x64x64xf32>
    %cst_15 = arith.constant dense<0.000000e+00> : vector<2x64xf32>
    %65 = vector.multi_reduction <add>, %64, %cst_15 [2] : vector<2x64x64xf32> to vector<2x64xf32>
    %66 = vector.shape_cast %65 : vector<2x64xf32> to vector<2x64x1xf32>
    %67 = tpu.reciprocal %66 {approx = true} : vector<2x64x1xf32> -> vector<2x64x1xf32>
    %68 = vector.broadcast %67 : vector<2x64x1xf32> to vector<2x64x64xf32>
    %69 = arith.mulf %64, %68 : vector<2x64x64xf32>
    %70 = arith.truncf %69 : vector<2x64x64xf32> to vector<2x64x64xbf16>
    "tpu.trace_start"() <{level = 10 : i32, message = "bnm,bmd->bnd"}> : () -> ()
    %cst_16 = arith.constant dense<0.000000e+00> : vector<2x64x32xf32>
    %71 = tpu.matmul %70, %58, %cst_16 {dimension_numbers = #tpu.dot_dimension_numbers<[2], [1], [1], [2], [0, 0, 0, 1, 1, 2], [0], [0]>} : vector<2x64x64xbf16>, vector<2x64x32xbf16>, vector<2x64x32xf32> -> vector<2x64x32xf32>
    "tpu.trace_stop"() : () -> ()
    %72 = vector.shape_cast %71 : vector<2x64x32xf32> to vector<128x32xf32>
    %73 = arith.truncf %72 : vector<128x32xf32> to vector<128x32xbf16>
    %74 = vector.extract_strided_slice %8 {offsets = [0, 96], sizes = [128, 32], strides = [1, 1]} : vector<128x128xbf16> to vector<128x32xbf16>
    %75 = vector.shape_cast %74 : vector<128x32xbf16> to vector<2x64x32xbf16>
    %76 = vector.extract_strided_slice %9 {offsets = [0, 96], sizes = [128, 32], strides = [1, 1]} : vector<128x128xbf16> to vector<128x32xbf16>
    %77 = vector.shape_cast %76 : vector<128x32xbf16> to vector<2x64x32xbf16>
    %78 = vector.extract_strided_slice %10 {offsets = [0, 96], sizes = [128, 32], strides = [1, 1]} : vector<128x128xbf16> to vector<128x32xbf16>
    %79 = vector.shape_cast %78 : vector<128x32xbf16> to vector<2x64x32xbf16>
    "tpu.trace_start"() <{level = 10 : i32, message = "bnd,bmd->bnm"}> : () -> ()
    %cst_17 = arith.constant dense<0.000000e+00> : vector<2x64x64xf32>
    %80 = tpu.matmul %75, %77, %cst_17 {dimension_numbers = #tpu.dot_dimension_numbers<[2], [2], [1], [1], [0, 0, 0, 1, 1, 1], [0], [0]>} : vector<2x64x32xbf16>, vector<2x64x32xbf16>, vector<2x64x64xf32> -> vector<2x64x64xf32>
    "tpu.trace_stop"() : () -> ()
    %cst_18 = arith.constant dense<0xFF800000> : vector<2x64xf32>
    %81 = vector.multi_reduction <maximumf>, %80, %cst_18 [2] : vector<2x64x64xf32> to vector<2x64xf32>
    %82 = vector.shape_cast %81 : vector<2x64xf32> to vector<2x64x1xf32>
    %83 = vector.broadcast %82 : vector<2x64x1xf32> to vector<2x64x64xf32>
    %84 = arith.subf %80, %83 : vector<2x64x64xf32>
    %85 = math.exp %84 : vector<2x64x64xf32>
    %cst_19 = arith.constant dense<0.000000e+00> : vector<2x64xf32>
    %86 = vector.multi_reduction <add>, %85, %cst_19 [2] : vector<2x64x64xf32> to vector<2x64xf32>
    %87 = vector.shape_cast %86 : vector<2x64xf32> to vector<2x64x1xf32>
    %88 = tpu.reciprocal %87 {approx = true} : vector<2x64x1xf32> -> vector<2x64x1xf32>
    %89 = vector.broadcast %88 : vector<2x64x1xf32> to vector<2x64x64xf32>
    %90 = arith.mulf %85, %89 : vector<2x64x64xf32>
    %91 = arith.truncf %90 : vector<2x64x64xf32> to vector<2x64x64xbf16>
    "tpu.trace_start"() <{level = 10 : i32, message = "bnm,bmd->bnd"}> : () -> ()
    %cst_20 = arith.constant dense<0.000000e+00> : vector<2x64x32xf32>
    %92 = tpu.matmul %91, %79, %cst_20 {dimension_numbers = #tpu.dot_dimension_numbers<[2], [1], [1], [2], [0, 0, 0, 1, 1, 2], [0], [0]>} : vector<2x64x64xbf16>, vector<2x64x32xbf16>, vector<2x64x32xf32> -> vector<2x64x32xf32>
    "tpu.trace_stop"() : () -> ()
    %93 = vector.shape_cast %92 : vector<2x64x32xf32> to vector<128x32xf32>
    %94 = arith.truncf %93 : vector<128x32xf32> to vector<128x32xbf16>
    %95 = tpu.concatenate %31, %52, %73, %94 in 1 : vector<128x32xbf16>, vector<128x32xbf16>, vector<128x32xbf16>, vector<128x32xbf16> -> vector<128x128xbf16>
    %c0_21 = arith.constant 0 : index
    %c0_22 = arith.constant 0 : index
    %96 = vector.load %arg4[%c0_21, %c0_22] : memref<128x128xbf16, #tpu.memory_space<vmem>>, vector<128x128xbf16>
    %cst_23 = arith.constant dense<0.000000e+00> : vector<128x128xf32>
    %97 = tpu.matmul %95, %96, %cst_23 {dimension_numbers = #tpu.dot_dimension_numbers<[1], [0], [0], [1], [0, 0, 1, 1], [], []>} : vector<128x128xbf16>, vector<128x128xbf16>, vector<128x128xf32> -> vector<128x128xf32>
    %c0_24 = arith.constant 0 : index
    %c0_25 = arith.constant 0 : index
    %98 = vector.load %arg5[%c0_24, %c0_25] : memref<1x128xf32, #tpu.memory_space<vmem>>, vector<1x128xf32>
    %99 = vector.broadcast %98 : vector<1x128xf32> to vector<128x128xf32>
    %100 = arith.addf %97, %99 : vector<128x128xf32>
    %c0_26 = arith.constant 0 : index
    %c0_27 = arith.constant 0 : index
    %101 = vector.load %arg6[%c0_26, %c0_27] : memref<128x128xf32, #tpu.memory_space<vmem>>, vector<128x128xf32>
    tpu.vector_store %arg6[%c0_26, %c0_27], %100 {strides = array<i32>} : memref<128x128xf32, #tpu.memory_space<vmem>>, vector<128x128xf32>,
    return
  }
  func.func @transform_0(%arg0: i32) -> (i32, i32) {
    %c0_i32 = arith.constant 0 : i32
    %c0_i32_0 = arith.constant 0 : i32
    return %arg0, %c0_i32 : i32, i32
  }
  func.func @transform_1(%arg0: i32) -> (i32, i32) {
    %c0_i32 = arith.constant 0 : i32
    %c0_i32_0 = arith.constant 0 : i32
    %c0_i32_1 = arith.constant 0 : i32
    return %c0_i32, %c0_i32_0 : i32, i32
  }
  func.func @transform_2(%arg0: i32) -> (i32, i32) {
    %c0_i32 = arith.constant 0 : i32
    %c0_i32_0 = arith.constant 0 : i32
    %c0_i32_1 = arith.constant 0 : i32
    return %c0_i32, %c0_i32_0 : i32, i32
  }
  func.func @transform_3(%arg0: i32) -> (i32, i32) {
    %c0_i32 = arith.constant 0 : i32
    %c0_i32_0 = arith.constant 0 : i32
    %c0_i32_1 = arith.constant 0 : i32
    return %c0_i32, %c0_i32_0 : i32, i32
  }
  func.func @transform_4(%arg0: i32) -> (i32, i32) {
    %c0_i32 = arith.constant 0 : i32
    %c0_i32_0 = arith.constant 0 : i32
    %c0_i32_1 = arith.constant 0 : i32
    return %c0_i32, %c0_i32_0 : i32, i32
  }
  func.func @transform_5(%arg0: i32) -> (i32, i32) {
    %c0_i32 = arith.constant 0 : i32
    %c0_i32_0 = arith.constant 0 : i32
    return %arg0, %c0_i32 : i32, i32
  }
}

</mosaic_0001>

<bundles_post_ra>
// kernel: tpu_custom_call.1
= control target key start
LH: loop header
LB: loop body
LE: loop exit
PB: predicated region body
PF: predicated region fallthrough
CT: control target
= control target key end

     0   :  { %10 = vsyncpa [#allocation3], 0  ;;  %s6000_s0 = inlined_call_operand.hbm [shape: f32[256,128], index: 0, kind: input, shape index: {}]   ;;  %s6001_s1 = inlined_call_operand.hbm [shape: bf16[128,384], index: 1, kind: input, shape index: {}]   ;;  %s6002_s2 = inlined_call_operand.hbm [shape: f32[1,384], index: 2, kind: input, shape index: {}]   ;;  %s6003_s3 = inlined_call_operand.hbm [shape: bf16[128,128], index: 3, kind: input, shape index: {}]   ;;  %s6004_s4 = inlined_call_operand.vmem [shape: f32[1,128], index: 4, kind: input, shape index: {}]   ;;  %s6005_s5 = inlined_call_operand.hbm [shape: f32[256,128], index: 5, kind: output, shape index: {}]  }
   0x1   :  { %12 = vsyncpa [#allocation3 + $0x1], 0 }
   0x2   :  { %13 = vsyncpa [#allocation6], 0 }
   0x3   :  { %14 = vsyncpa [#allocation9], 0 }
   0x4   :  { %15 = vsyncpa [#allocation4], 0 }
   0x5   :  { %17 = vsyncpa [#allocation4 + $0x1], 0  ;;  %s4240_s18 = smov 0   ;;  %s4242_s19 = smov 0  }
   0x6   :  { %s4244_s20 = smov 0   ;;  %s4246_s21 = smov 0  }
   0x7 LB: > { %s4261_s22 = sadd.s32 4294967295, %s4194_s21   ;;  %s3401_s23 = sadd.s32 4294967294, %s4194_s21   ;;  %s4194_s21 = sphi %s4246_s21, %s6052_s21   ;;  %s4190_s20 = sphi %s4244_s20, %s6051_s20   ;;  %s4186_s19 = sphi %s4242_s19, %s6050_s19   ;;  %s4182_s18 = sphi %s4240_s18, %s6049_s18  }
   0x8   : > { %p43_p0 = scmp.ne.s32.totalorder %s4186_s19, %s4182_s18  ;;  %p44_p1 = scmp.eq.s32.totalorder %s4261_s22, 0 }
   0x9   : > { %p151_p2 = scmp.eq.s32.totalorder %s4261_s22, 1  ;;  %p157_p3 = scmp.eq.s32.totalorder %s3401_s23, 1 }
   0xa   : > { %p4270_p4 = por %p44_p1, %p43_p0  ;;  %p3402_p5 = scmp.ge.s32.totalorder %s4194_s21, 1 }
   0xb   : > { %p4275_p6 = por %p157_p3, %p43_p0  ;;  %p164_p7 = scmp.lt.s32.totalorder %s4194_s21, 3 }
   0xc   : > { %s175_s28 = sshll.u32 %s6001_s1, 4  ;;  %s4196_s30 = smov [#allocation5]   ;;  %s176_s28 = int_to_ptr.hbm [resolvable:$true] %s175_s28 }
   0xd   : > { %p4283_p8 = pnand %p3402_p5, %p164_p7  ;;  %s177_s6 = sshll.u32 %s4196_s30, 4  ;;  %s178_s6 = int_to_ptr.vmem [resolvable:$true] %s177_s6 }
   0xe   : > { %s190_s10 = sshll.u32 %s6002_s2, 4  ;;  %s4197_s11 = smov 192   ;;  %s191_s10 = int_to_ptr.hbm [resolvable:$true] %s190_s10 }
   0xf   : > { %p3671_p9 = pneg %p4283_p8  ;;  %s4198_s12 = smov 12  }
  0x10   : > { %s4199_s13 = smov [#allocation7]   ;;  %s201_s17 = sshll.u32 %s6003_s3, 4  ;;  %s202_s17 = int_to_ptr.hbm [resolvable:$true] %s201_s17 }
  0x11   : > { %p4291_p10 = pnand %p3671_p9, %p44_p1  ;;  %s192_s14 = sshll.u32 %s4199_s13, 4  ;;  %s193_s14 = int_to_ptr.vmem [resolvable:$true] %s192_s14 }
  0x12   : > { %s4200_s23 = smov [#allocation8]   ;;  %s4201_s27 = smov 64  }
  0x13   : > { %3674 = dma.hbm_to_vmem [thread:$0]  (!%p4291_p10), %s176_s28, 3072, %s178_s6, [#allocation6], %s4197_s11, %s4197_s11, %s4198_s12  }
  0x14   : > { %3677 = dma.hbm_to_vmem [thread:$0]  (!%p4291_p10), %s191_s10, 48, %s193_s14, [#allocation6]  }
  0x15   : > { %s203_s26 = sshll.u32 %s4200_s23, 4  ;;  %s4202_s28 = smov 4   ;;  %s204_s26 = int_to_ptr.vmem [resolvable:$true] %s203_s26 }
  0x16   : > { %3680 = dma.hbm_to_vmem [thread:$0]  (!%p4291_p10), %s202_s17, 1024, %s204_s26, [#allocation9], %s4201_s27, %s4201_s27, %s4202_s28  }
  0x17   : > { %s4309_s30 = sadd.s32 1, %s4194_s21   ;;  %s30_s8 = sadd.s32 1, %s4190_s20 }
  0x18   : > { %s27_s6 = ssub.s32 %s4194_s21, %s4309_s30  ;;  %p37_p13 = scmp.ne.s32.totalorder %s4190_s20, %s4186_s19 }
  0x19   : > { %p28_p12 = scmp.eq.s32.totalorder %s27_s6, 0  ;;  %p38_p0 = scmp.eq.s32.totalorder %s4194_s21, 0 }
  0x1a   : > { %p3692_p3 = scmp.lt.s32.totalorder %s4194_s21, 2  ;;  %p4323_p7 = por %p151_p2, %p37_p13 }
  0x1b   : > { %s4319_s9 = scalar_select %p28_p12, %s4190_s20, %s30_s8  }
  0x1c   : > { %p39_p5 = por %p38_p0, %p37_p13  ;;  %s220_s7 = sand.u32 1, %s4190_s20  }
  0x1d   : > { %s3613_s11 = sshll.u32 %s4194_s21, 7  ;;  %s3407_s12 = sshll.u32 %s220_s7, 7 }
  0x1e   : > { %s229_s15 = scalar_lea.hbm %s6000_s0, %s3613_s11  ;;  %s224_s17 = scalar_lea.vmem [#allocation2], %s3407_s12 }
  0x1f   : > { %s230_s16 = sshll.u32 %s229_s15, 4  ;;  %s232_s23 = sshll.u32 %s224_s17, 4  ;;  %s231_s16 = int_to_ptr.hbm [resolvable:$true] %s230_s16  ;;  %s233_s23 = int_to_ptr.vmem [resolvable:$true] %s232_s23 }
  0x20   : > { %p4334_p9 = pnand %p3692_p3, %p39_p5  ;;  %s221_s27 = scalar_lea.sflag [#allocation3], %s220_s7 }
  0x21   : > { %s4090_s28 = sshra.s32 %s231_s16, 4  ;;  %s4097_s12 = scalar_lea.hbm %s6000_s0, 256  ;;  %s4091_s28 = int_to_ptr.hbm [resolvable:$true] %s4090_s28 }
  0x22   : > { %s4092_s6 = scalar_lea.hbm %s4091_s28, 128  ;;  %p4094_p10 = pneg %p4334_p9 }
  0x23   : > { %p4093_p2 = scmp.ne.s32.totalorder %s4091_s28, %s4092_s6  ;;  %p4098_p0 = scmp.lt.s32.totalorder %s4091_s28, %s6000_s0 }
  0x24   : > { %p4099_p3 = scmp.lt.s32.totalorder %s4097_s12, %s4092_s6 }
  0x25   : > { %p4095_p12 = pnand %p4094_p10, %p4093_p2 }
  0x26   : > { %p4100_p5 = por %p4099_p3, %p4098_p0 }
  0x27   : > { %p4096_p13 = pneg %p4095_p12 }
  0x29   : > { %p4101_p11 = pnand %p4100_p5, %p4096_p13 }
  0x2b   : > { %4104 = shalt.err (!%p4101_p11)
}
  0x2c   : > { %s4203_s7 = smov 128   ;;  %s4204_s15 = smov 8  }
  0x2d   : > { %3684 = dma.hbm_to_vmem [thread:$0]  (!%p4334_p9), %s231_s16, 2048, %s233_s23, %s221_s27, %s4203_s7, %s4203_s7, %s4204_s15  }
  0x2e   : > { %244 = sbr.rel (%p4283_p8) target bundleno = 1791 (0x6ff), region = 40 }
  0x33   : > { %s4351_s17 = sand.u32 1, %s4186_s19  }
  0x34   : > { %s3411_s28 = sshll.u32 %s4351_s17, 7  ;;  %s247_s6 = scalar_lea.sflag [#allocation3], %s4351_s17 }
  0x35   : > { %s4357_s8 = scalar_lea.vmem [#allocation2], %s3411_s28 }
  0x36   : > { %4165 = dma.done.wait (%p4270_p4), %s247_s6, 2048  }
  0x37   : > { %4167 = vsyncadd (%p4270_p4), %s247_s6, 4294965248 }
  0x38   : > { %4169 = dma.done.wait (%p44_p1), [#allocation6], 3120  }
  0x39   : > { %4171 = vsyncadd (%p44_p1), [#allocation6], 4294964176 }
  0x3a   : > { %4173 = dma.done.wait (%p44_p1), [#allocation9], 1024  }
  0x3b   : > { %4175 = vsyncadd (%p44_p1), [#allocation9], 4294966272  ;;  %v3502_v0 = vld [vmem:[#allocation5 + $0xa8] sm:$0xf]  ;;  %v3636_v1 = vld [vmem:[#allocation5 + $0xb0] sm:$0xf0] }
  0x3c   : > { %v3635_v2 = vld [vmem:[#allocation5 + $0xac] sm:$0xf]  ;;  %v3503_v3 = vor.u32 %v3636_v1, %v3502_v0  ;;  %v3504_v4 = vld [vmem:[#allocation5 + $0xb4] sm:$0xf0]  ;;  %v3510_v5 = vld [vmem:[#allocation5 + $0xb0] sm:$0xf] }
  0x3d   : > { %v3637_v6 = vld [vmem:[#allocation5 + $0xb8] sm:$0xf0]  ;;  %v3507_v7 = vor.u32 %v3635_v2, %v3504_v4  ;;  %v3490_v9 = vld [vmem:[#allocation5 + $0x90] sm:$0xf]  ;;  %v3632_v11 = vld [vmem:[#allocation5 + $0x94] sm:$0xf] }
  0x3e   : > { %v3511_v8 = vor.u32 %v3637_v6, %v3510_v5  ;;  %v3633_v10 = vld [vmem:[#allocation5 + $0x98] sm:$0xf0]  ;;  %488 = vmatpush.bf16.msra.mxu0 %v3503_v3  ;;  %v3492_v13 = vld [vmem:[#allocation5 + $0x9c] sm:$0xf0]  ;;  %v3498_v14 = vld [vmem:[#allocation5 + $0x98] sm:$0xf] }
  0x3f   : > { %v3491_v12 = vor.u32 %v3633_v10, %v3490_v9  ;;  %v3634_v15 = vld [vmem:[#allocation5 + $0xa0] sm:$0xf0]  ;;  %537 = vmatpush.bf16.msra.mxu1 %v3507_v7  ;;  %v3495_v16 = vor.u32 %v3632_v11, %v3492_v13  ;;  %v3478_v18 = vld [vmem:[#allocation5 + $0x78] sm:$0xf]  ;;  %v3629_v20 = vld [vmem:[#allocation5 + $0x7c] sm:$0xf] }
  0x40   : > { %586 = vmatpush.bf16.msra.mxu2 %v3511_v8  ;;  %v3499_v17 = vor.u32 %v3634_v15, %v3498_v14  ;;  %v3630_v19 = vld [vmem:[#allocation5 + $0x80] sm:$0xf0]  ;;  %3647 = vmatpush.bf16.msra.mxu3 %v3511_v8  ;;  %v3480_v21 = vld [vmem:[#allocation5 + $0x84] sm:$0xf0]  ;;  %v3486_v22 = vld [vmem:[#allocation5 + $0x80] sm:$0xf] }
  0x41   : > { %v3631_v23 = vld [vmem:[#allocation5 + $0x88] sm:$0xf0]  ;;  %v3479_v24 = vor.u32 %v3630_v19, %v3478_v18  ;;  %v3483_v25 = vor.u32 %v3629_v20, %v3480_v21  ;;  %v3466_v27 = vld [vmem:[#allocation5 + $0x60] sm:$0xf]  ;;  %v3626_v29 = vld [vmem:[#allocation5 + $0x64] sm:$0xf] }
  0x42   : > { %489 = vmatpush.bf16.msra.mxu0 %v3491_v12  ;;  %v3487_v26 = vor.u32 %v3631_v23, %v3486_v22  ;;  %v3627_v28 = vld [vmem:[#allocation5 + $0x68] sm:$0xf0]  ;;  %v3468_v30 = vld [vmem:[#allocation5 + $0x6c] sm:$0xf0]  ;;  %v3474_v31 = vld [vmem:[#allocation5 + $0x68] sm:$0xf] }
  0x43   : > { %538 = vmatpush.bf16.msra.mxu1 %v3495_v16  ;;  %v3628_v32 = vld [vmem:[#allocation5 + $0x70] sm:$0xf0]  ;;  %v3467_v33 = vor.u32 %v3627_v28, %v3466_v27  ;;  %v3471_v34 = vor.u32 %v3626_v29, %v3468_v30  ;;  %v3454_v36 = vld [vmem:[#allocation5 + $0x48] sm:$0xf]  ;;  %v3623_v38 = vld [vmem:[#allocation5 + $0x4c] sm:$0xf] }
  0x44   : > { %587 = vmatpush.bf16.msra.mxu2 %v3499_v17  ;;  %3648 = vmatpush.bf16.msra.mxu3 %v3499_v17  ;;  %v3475_v35 = vor.u32 %v3628_v32, %v3474_v31  ;;  %v3624_v37 = vld [vmem:[#allocation5 + $0x50] sm:$0xf0]  ;;  %v3456_v39 = vld [vmem:[#allocation5 + $0x54] sm:$0xf0]  ;;  %v3462_v40 = vld [vmem:[#allocation5 + $0x50] sm:$0xf] }
  0x45   : > { %v3625_v41 = vld [vmem:[#allocation5 + $0x58] sm:$0xf0]  ;;  %v3455_v42 = vor.u32 %v3624_v37, %v3454_v36  ;;  %v3459_v43 = vor.u32 %v3623_v38, %v3456_v39  ;;  %v3442_v45 = vld [vmem:[#allocation5 + $0x30] sm:$0xf]  ;;  %v3620_v47 = vld [vmem:[#allocation5 + $0x34] sm:$0xf] }
  0x46   : > { %490 = vmatpush.bf16.msra.mxu0 %v3479_v24  ;;  %v3463_v44 = vor.u32 %v3625_v41, %v3462_v40  ;;  %v3621_v46 = vld [vmem:[#allocation5 + $0x38] sm:$0xf0]  ;;  %v3444_v48 = vld [vmem:[#allocation5 + $0x3c] sm:$0xf0]  ;;  %v3450_v49 = vld [vmem:[#allocation5 + $0x38] sm:$0xf] }
  0x47   : > { %539 = vmatpush.bf16.msra.mxu1 %v3483_v25  ;;  %v3622_v50 = vld [vmem:[#allocation5 + $0x40] sm:$0xf0]  ;;  %v3443_v51 = vor.u32 %v3621_v46, %v3442_v45  ;;  %v3447_v52 = vor.u32 %v3620_v47, %v3444_v48  ;;  %v3430_v54 = vld [vmem:[#allocation5 + $0x18] sm:$0xf]  ;;  %v3617_v56 = vld [vmem:[#allocation5 + $0x1c] sm:$0xf] }
  0x48   : > { %588 = vmatpush.bf16.msra.mxu2 %v3487_v26  ;;  %3649 = vmatpush.bf16.msra.mxu3 %v3487_v26  ;;  %v3451_v53 = vor.u32 %v3622_v50, %v3450_v49  ;;  %v3618_v55 = vld [vmem:[#allocation5 + $0x20] sm:$0xf0]  ;;  %v3432_v57 = vld [vmem:[#allocation5 + $0x24] sm:$0xf0]  ;;  %v3438_v58 = vld [vmem:[#allocation5 + $0x20] sm:$0xf] }
  0x49   : > { %v3619_v59 = vld [vmem:[#allocation5 + $0x28] sm:$0xf0]  ;;  %v3431_v60 = vor.u32 %v3618_v55, %v3430_v54  ;;  %v3435_v61 = vor.u32 %v3617_v56, %v3432_v57  ;;  %v3418_v63 = vld [vmem:[#allocation5] sm:$0xf]  ;;  %v3614_v1 = vld [vmem:[#allocation5 + $0x4] sm:$0xf] }
  0x4a   : > { %491 = vmatpush.bf16.msra.mxu0 %v3467_v33  ;;  %v3439_v62 = vor.u32 %v3619_v59, %v3438_v58  ;;  %v3615_v0 = vld [vmem:[#allocation5 + $0x8] sm:$0xf0]  ;;  %v3420_v2 = vld [vmem:[#allocation5 + $0xc] sm:$0xf0]  ;;  %v3426_v3 = vld [vmem:[#allocation5 + $0x8] sm:$0xf] }
  0x4b   : > { %540 = vmatpush.bf16.msra.mxu1 %v3471_v34  ;;  %v3616_v4 = vld [vmem:[#allocation5 + $0x10] sm:$0xf0]  ;;  %v3419_v5 = vor.u32 %v3615_v0, %v3418_v63  ;;  %v296_v6 = vld [vmem:[%s4357_s8] sm:$0xff]  ;;  %v297_v7 = vld [vmem:[%s4357_s8 + $0x8] sm:$0xff]  ;;  %v3423_v8 = vor.u32 %v3614_v1, %v3420_v2  ;;  %s4205_s24 = smov 64   ;;  %s4206_s29 = smov 96  }
  0x4c   : > { %589 = vmatpush.bf16.msra.mxu2 %v3475_v35  ;;  %3650 = vmatpush.bf16.msra.mxu3 %v3475_v35  ;;  %v3427_v9 = vor.u32 %v3616_v4, %v3426_v3  ;;  %v304_v10 = vld [vmem:[%s4357_s8 + $0x40] sm:$0xff]  ;;  %v305_v11 = vld [vmem:[%s4357_s8 + $0x48] sm:$0xff]  ;;  %v312_v12 = vpack.c.bf16 %v297_v7, %v296_v6  ;;  %v298_v14 = vld [vmem:[%s4357_s8 + $0x10] sm:$0xff]  ;;  %s4207_s16 = smov 32   ;;  %vm723_vm0 = vcmask 261120   ;;  %vm854_vm1 = vcmask 523264  }
  0x4d   : > { %v316_v13 = vpack.c.bf16 %v305_v11, %v304_v10  ;;  %v299_v15 = vld [vmem:[%s4357_s8 + $0x18] sm:$0xff]  ;;  %v306_v16 = vld [vmem:[%s4357_s8 + $0x50] sm:$0xff]  ;;  %v300_v20 = vld [vmem:[%s4357_s8 + $0x20] sm:$0xff]  ;;  %vm3125_vm2 = vcmask 785408   ;;  %s5902_s27 = scalar_lea.vmem [#allocation10], %s3411_s28  ;;  %s3646_s11 = sshll.u32 %s4261_s22, 7 }
  0x4e   : > { %492 = vmatpush.bf16.msra.mxu0 %v3455_v42  ;;  %v307_v17 = vld [vmem:[%s4357_s8 + $0x58] sm:$0xff]  ;;  %v313_v18 = vpack.c.bf16 %v299_v15, %v298_v14  ;;  %v301_v21 = vld [vmem:[%s4357_s8 + $0x28] sm:$0xff]  ;;  %v308_v22 = vld [vmem:[%s4357_s8 + $0x60] sm:$0xff]  ;;  %s3295_s14 = scalar_lea.hbm %s6005_s5, %s3646_s11  ;;  %s3296_s7 = sshll.u32 %s5902_s27, 4  ;;  %s3297_s7 = int_to_ptr.vmem [resolvable:$true] %s3296_s7 }
  0x4f   : > { %541 = vmatpush.bf16.msra.mxu1 %v3459_v43  ;;  %v317_v19 = vpack.c.bf16 %v307_v17, %v306_v16  ;;  %v309_v23 = vld [vmem:[%s4357_s8 + $0x68] sm:$0xff]  ;;  %v314_v24 = vpack.c.bf16 %v301_v21, %v300_v20  ;;  %v302_v26 = vld [vmem:[%s4357_s8 + $0x30] sm:$0xff]  ;;  %v303_v27 = vld [vmem:[%s4357_s8 + $0x38] sm:$0xff]  ;;  %s3298_s15 = sshll.u32 %s3295_s14, 4  ;;  %s3284_s28 = scalar_lea.sflag [#allocation4], %s4351_s17  ;;  %s3299_s15 = int_to_ptr.hbm [resolvable:$true] %s3298_s15 }
  0x50   : > { %590 = vmatpush.bf16.msra.mxu2 %v3463_v44  ;;  %3651 = vmatpush.bf16.msra.mxu3 %v3463_v44  ;;  %v318_v25 = vpack.c.bf16 %v309_v23, %v308_v22  ;;  %v310_v28 = vld [vmem:[%s4357_s8 + $0x70] sm:$0xff]  ;;  %v311_v29 = vld [vmem:[%s4357_s8 + $0x78] sm:$0xff]  ;;  %v315_v30 = vpack.c.bf16 %v303_v27, %v302_v26  ;;  %v352_v32 = vld [vmem:[#allocation7] sm:$0x7]  ;;  %s4134_s6 = sshra.s32 %s3299_s15, 4  ;;  %s4135_s6 = int_to_ptr.hbm [resolvable:$true] %s4134_s6 }
  0x51   : > { %v319_v31 = vpack.c.bf16 %v311_v29, %v310_v28  ;;  %v4387_v33 = vperm.slane %v352_v32, 0  ;;  %v4389_v34 = vperm.slane %v352_v32, 1  ;;  %v4437_v11 = vperm.slane %v352_v32, 2  ;;  %s4136_s22 = scalar_lea.hbm %s4135_s6, 128  ;;  %p4141_p11 = scmp.lt.s32.totalorder %s4135_s6, %s6005_s5 }
  0x52   : > { %493 = vmatpush.bf16.msra.mxu0 %v3443_v51  ;;  %p4137_p1 = scmp.ne.s32.totalorder %s4135_s6, %s4136_s22 }
  0x53   : > { %542 = vmatpush.bf16.msra.mxu1 %v3447_v52 }
  0x54   : > { %591 = vmatpush.bf16.msra.mxu2 %v3451_v53  ;;  %3652 = vmatpush.bf16.msra.mxu3 %v3451_v53  ;;  %p4138_p4 = pnand %p4137_p1, %p4323_p7 }
  0x56   : > { %494 = vmatpush.bf16.msra.mxu0 %v3431_v60  ;;  %p4139_p8 = pneg %p4138_p4 }
  0x57   : > { %543 = vmatpush.bf16.msra.mxu1 %v3435_v61 }
  0x58   : > { %592 = vmatpush.bf16.msra.mxu2 %v3439_v62  ;;  %3653 = vmatpush.bf16.msra.mxu3 %v3439_v62 }
  0x5a   : > { %495 = vmatpush.bf16.msra.mxu0 %v3419_v5 }
  0x5b   : > { %544 = vmatpush.bf16.msra.mxu1 %v3423_v8 }
  0x5c   : > { %593 = vmatpush.bf16.msra.mxu2 %v3427_v9  ;;  %3654 = vmatpush.bf16.msra.mxu3 %v3427_v9 }
  0x5d   : > { %496 = vmatmul.bf16.vlgmr.msra.gmra.mxu0 %v312_v12 }
  0x5e   : > { %545 = vmatmul.bf16.vlgmr.msra.gmra.mxu1 %v312_v12 }
  0x5f   : > { %594 = vmatmul.bf16.vlgmr.msra.gmra.mxu2 %v312_v12  ;;  %614 = vmatmul.bf16.vlgmr.msra.gmra.mxu3 %v316_v13 }
  0x6d   : > { %501 = vmatmul.bf16.gmra.mxu0 %v313_v18 }
  0x6e   : > { %550 = vmatmul.bf16.gmra.mxu1 %v313_v18 }
  0x6f   : > { %599 = vmatmul.bf16.gmra.mxu2 %v313_v18  ;;  %619 = vmatmul.bf16.gmra.mxu3 %v317_v19 }
  0x7d   : > { %506 = vmatmul.bf16.gmra.mxu0 %v314_v24 }
  0x7e   : > { %555 = vmatmul.bf16.gmra.mxu1 %v314_v24 }
  0x7f   : > { %604 = vmatmul.bf16.gmra.mxu2 %v314_v24  ;;  %624 = vmatmul.bf16.gmra.mxu3 %v318_v25 }
  0x8d   : > { %511 = vmatmul.bf16.gmra.mxu0 %v315_v30 }
  0x8e   : > { %560 = vmatmul.bf16.gmra.mxu1 %v315_v30 }
  0x8f   : > { %609 = vmatmul.bf16.gmra.mxu2 %v315_v30  ;;  %629 = vmatmul.bf16.gmra.mxu3 %v319_v31 }
  0x9d   : > { %516 = vmatmul.bf16.gmra.mxu0 %v316_v13 }
  0x9e   : > { %565 = vmatmul.bf16.gmra.mxu1 %v316_v13 }
  0xad   : > { %521 = vmatmul.bf16.gmra.mxu0 %v317_v19 }
  0xae   : > { %570 = vmatmul.bf16.gmra.mxu1 %v317_v19 }
  0xbd   : > { %526 = vmatmul.bf16.gmra.mxu0 %v318_v25 }
  0xbe   : > { %575 = vmatmul.bf16.gmra.mxu1 %v318_v25 }
  0xcd   : > { %531 = vmatmul.bf16.gmra.mxu0 %v319_v31 }
  0xce   : > { %580 = vmatmul.bf16.gmra.mxu1 %v319_v31 }
  0xda   : > { %v497_v35 = vpop.f32.mrf.mxu0 }
  0xdb   : > { %v498_v36 = vadd.f32 %v497_v35, %v4387_v33  ;;  %v546_v37 = vpop.f32.mrf.mxu1 }
  0xdc   : > { %v547_v38 = vadd.f32 %v546_v37, %v4389_v34 }
  0xde   : > { %v635_v39 = vpack.c.bf16 %v547_v38, %v498_v36 }
  0xe0   : > { %1781 = vrot.lane.b32.xlu2 %v635_v39, %s4205_s24  ;;  %1233 = vrot.lane.b32.xlu0 %v635_v39, %s4206_s29  ;;  %v683_v47 = vrot.slane %v635_v39, 4  ;;  %v699_v56 = vunpack.c.l.b16 %v635_v39 }
  0xe2   : > { %v595_v40 = vpop.f32.mrf.mxu2  ;;  %v4395_v41 = vpop.f32.mrf.mxu3  ;;  %v4404_v53 = vunpack.c.l.b16 %v683_v47 }
  0xe3   : > { %v499_v42 = vpop.f32.mrf.mxu0  ;;  %v548_v44 = vpop.f32.mrf.mxu1  ;;  %v596_v13 = vadd.f32 %v595_v40, %v4437_v11 }
  0xe4   : > { %v500_v43 = vadd.f32 %v499_v42, %v4387_v33  ;;  %v549_v45 = vadd.f32 %v548_v44, %v4389_v34 }
  0xe5   : > { %v636_v21 = vpack.c.bf16 %v596_v13, %v596_v13 }
  0xe6   : > { %v637_v46 = vpack.c.bf16 %v549_v45, %v500_v43 }
  0xe7   : > { %v1075_v24 = vunpack.c.l.b16 %v636_v21 }
  0xe8   : > { %1235 = vrot.lane.b32.xlu1 %v637_v46, %s4206_s29  ;;  %2329 = vrot.lane.b32.xlu2 %v635_v39, %s4207_s16  ;;  %v684_v48 = vrot.slane %v637_v46, 4  ;;  %v700_v52 = vunpack.c.l.b16 %v637_v46 }
  0xe9   : > { %1783 = vrot.lane.b32.xlu0 %v637_v46, %s4205_s24 }
  0xea   : > { %v597_v49 = vpop.f32.mrf.mxu2  ;;  %v4402_v50 = vpop.f32.mrf.mxu3  ;;  %v4406_v54 = vunpack.c.l.b16 %v684_v48  ;;  %v4410_v58 = vpack.c.b16 %v700_v52, %v699_v56 }
  0xeb   : > { %v502_v51 = vpop.f32.mrf.mxu0  ;;  %v551_v55 = vpop.f32.mrf.mxu1  ;;  %v598_v14 = vadd.f32 %v597_v49, %v4437_v11 }
  0xec   : > { %v719_v57 = vpack.c.b16 %v4406_v54, %v4404_v53  ;;  %v503_v0 = vadd.f32 %v502_v51, %v4387_v33  ;;  %v552_v1 = vadd.f32 %v551_v55, %v4389_v34 }
  0xed   : > { %v638_v22 = vpack.c.bf16 %v598_v14, %v598_v14 }
  0xee   : > { %v4425_v4 = vpack.c.bf16 %v552_v1, %v503_v0 }
  0xef   : > { %v1076_v25 = vunpack.c.l.b16 %v638_v22 }
  0xf0   : > { %1281 = vrot.lane.b32.xlu2 %v4410_v58, %s4206_s29  ;;  %v701_v10 = vunpack.c.l.b16 %v4425_v4 }
  0xf1   : > { %2331 = vrot.lane.b32.xlu0 %v637_v46, %s4207_s16  ;;  %v4459_v30 = vpack.c.b16 %v1076_v25, %v1075_v24 }
  0xf2   : > { %v4415_v59 = vpop.f32.mrf.mxu2  ;;  %v4417_v60 = vpop.f32.mrf.mxu3 }
  0xf3   : > { %v504_v61 = vpop.f32.mrf.mxu0  ;;  %v553_v63 = vpop.f32.mrf.mxu1  ;;  %6025 = vst [vmem:[#allocation15_spill] sm:$0xff] %v4459_v30  ;;  %v4483_v51 = vadd.f32 %v4415_v59, %v4437_v11  ;;  %v4490_v56 = vadd.f32 %v4417_v60, %v4437_v11 }
  0xf4   : > { %v505_v62 = vadd.f32 %v504_v61, %v4387_v33  ;;  %v554_v2 = vadd.f32 %v553_v63, %v4389_v34 }
  0xf6   : > { %v4423_v3 = vpack.c.bf16 %v554_v2, %v505_v62 }
  0xf8   : > { %1787 = vrot.lane.b32.xlu1 %v4423_v3, %s4205_s24  ;;  %1829 = vrot.lane.b32.xlu2 %v4410_v58, %s4205_s24  ;;  %v702_v8 = vunpack.c.l.b16 %v4423_v3 }
  0xf9   : > { %2377 = vrot.lane.b32.xlu0 %v4410_v58, %s4207_s16 }
  0xfa   : > { %v602_v5 = vpop.f32.mrf.mxu2  ;;  %v4433_v6 = vpop.f32.mrf.mxu3  ;;  %v4439_v12 = vpack.c.b16 %v702_v8, %v701_v10 }
  0xfb   : > { %v507_v7 = vpop.f32.mrf.mxu0  ;;  %v556_v9 = vpop.f32.mrf.mxu1  ;;  %v603_v61 = vadd.f32 %v602_v5, %v4437_v11 }
  0xfc   : > { %v508_v15 = vadd.f32 %v507_v7, %v4387_v33  ;;  %v557_v16 = vadd.f32 %v556_v9, %v4389_v34 }
  0xfe   : > { %v4451_v23 = vpack.c.bf16 %v557_v16, %v508_v15 }
 0x100   : > { %1831 = vrot.lane.b32.xlu1 %v4439_v12, %s4205_s24  ;;  %1237 = vrot.lane.b32.xlu2 %v4425_v4, %s4206_s29  ;;  %v687_v2 = vrot.slane %v4451_v23, 4  ;;  %v703_v8 = vunpack.c.l.b16 %v4451_v23 }
 0x101   : > { %1785 = vrot.lane.b32.xlu0 %v4425_v4, %s4205_s24 }
 0x102   : > { %v605_v17 = vpop.f32.mrf.mxu2  ;;  %v625_v18 = vpop.f32.mrf.mxu3 }
 0x103   : > { %v509_v19 = vpop.f32.mrf.mxu0  ;;  %v558_v20 = vpop.f32.mrf.mxu1  ;;  %v606_v47 = vadd.f32 %v605_v17, %v4437_v11  ;;  %v626_v62 = vadd.f32 %v625_v18, %v4437_v11  ;;  %v623_v18 = vadd.f32 %v4433_v6, %v4437_v11 }
 0x104   : > { %v510_v36 = vadd.f32 %v509_v19, %v4387_v33  ;;  %v559_v37 = vadd.f32 %v558_v20, %v4389_v34 }
 0x105   : > { %v644_v60 = vpack.c.bf16 %v606_v47, %v606_v47  ;;  %v660_v19 = vpack.c.bf16 %v626_v62, %v626_v62  ;;  %v618_v47 = vadd.f32 %v4402_v50, %v4437_v11 }
 0x106   : > { %v4478_v48 = vpack.c.bf16 %v559_v37, %v510_v36 }
 0x108   : > { %1241 = vrot.lane.b32.xlu1 %v4451_v23, %s4206_s29  ;;  %2333 = vrot.lane.b32.xlu2 %v4425_v4, %s4207_s16  ;;  %v704_v9 = vunpack.c.l.b16 %v4478_v48  ;;  %v688_v17 = vrot.slane %v4478_v48, 4 }
 0x109   : > { %2335 = vrot.lane.b32.xlu0 %v4423_v3, %s4207_s16 }
 0x10a   : > { %v607_v26 = vpop.f32.mrf.mxu2  ;;  %v627_v27 = vpop.f32.mrf.mxu3  ;;  %v716_v6 = vunpack.c.l.b16 %v688_v17 }
 0x10b   : > { %v512_v28 = vpop.f32.mrf.mxu0  ;;  %v561_v29 = vpop.f32.mrf.mxu1  ;;  %v608_v52 = vadd.f32 %v607_v26, %v4437_v11  ;;  %v628_v63 = vadd.f32 %v627_v27, %v4437_v11  ;;  %v715_v27 = vunpack.c.l.b16 %v687_v2  ;;  %v654_v2 = vpack.c.bf16 %v618_v47, %v618_v47 }
 0x10c   : > { %v513_v31 = vadd.f32 %v512_v28, %v4387_v33  ;;  %v562_v32 = vadd.f32 %v561_v29, %v4389_v34  ;;  %v1079_v28 = vunpack.c.l.b16 %v644_v60 }
 0x10d   : > { %v646_v10 = vpack.c.bf16 %v608_v52, %v608_v52  ;;  %v662_v20 = vpack.c.bf16 %v628_v63, %v628_v63  ;;  %v721_v62 = vpack.c.b16 %v716_v6, %v715_v27  ;;  %v686_v63 = vrot.slane %v4423_v3, 4 }
 0x10e   : > { %v4463_v35 = vpack.c.bf16 %v562_v32, %v513_v31  ;;  %v4514_v32 = vpack.c.b16 %v704_v9, %v703_v8 }
 0x10f   : > { %v1080_v36 = vunpack.c.l.b16 %v646_v10  ;;  %v714_v8 = vunpack.c.l.b16 %v686_v63  ;;  %v1161_v10 = vunpack.c.l.b16 %v654_v2 }
 0x110   : > { %2337 = vrot.lane.b32.xlu1 %v4451_v23, %s4207_s16  ;;  %1639 = vrot.lane.b32.xlu2 %v4459_v30, %s4206_s29  ;;  %v689_v46 = vrot.slane %v4463_v35, 4  ;;  %v705_v54 = vunpack.c.l.b16 %v4463_v35 }
 0x111   : > { %1283 = vrot.lane.b32.xlu0 %v4439_v12, %s4206_s29 }
 0x112   : > { %v610_v38 = vpop.f32.mrf.mxu2  ;;  %v630_v39 = vpop.f32.mrf.mxu3  ;;  %v717_v1 = vunpack.c.l.b16 %v689_v46 }
 0x113   : > { %v514_v40 = vpop.f32.mrf.mxu0  ;;  %v563_v43 = vpop.f32.mrf.mxu1  ;;  %v611_v44 = vadd.f32 %v610_v38, %v4437_v11  ;;  %v631_v49 = vadd.f32 %v630_v39, %v4437_v11  ;;  %v616_v39 = vadd.f32 %v4395_v41, %v4437_v11  ;;  %v656_v41 = vpack.c.bf16 %v4490_v56, %v4490_v56 }
 0x114   : > { %v515_v42 = vadd.f32 %v514_v40, %v4387_v33  ;;  %v564_v45 = vadd.f32 %v563_v43, %v4389_v34  ;;  %v1164_v40 = vunpack.c.l.b16 %v660_v19 }
 0x115   : > { %v648_v0 = vpack.c.bf16 %v611_v44, %v611_v44  ;;  %v664_v7 = vpack.c.bf16 %v631_v49, %v631_v49  ;;  %v640_v44 = vpack.c.bf16 %v4483_v51, %v4483_v51  ;;  %v658_v49 = vpack.c.bf16 %v623_v18, %v623_v18 }
 0x116   : > { %v4486_v55 = vpack.c.bf16 %v564_v45, %v515_v42  ;;  %v1165_v42 = vunpack.c.l.b16 %v662_v20  ;;  %v642_v45 = vpack.c.bf16 %v603_v61, %v603_v61  ;;  %v4535_v51 = vpack.c.b16 %v1080_v36, %v1079_v28 }
 0x117   : > { %v1081_v24 = vunpack.c.l.b16 %v648_v0  ;;  %v1166_v29 = vunpack.c.l.b16 %v664_v7  ;;  %v1162_v60 = vunpack.c.l.b16 %v656_v41  ;;  %v1163_v7 = vunpack.c.l.b16 %v658_v49 }
 0x118   : > { %1243 = vrot.lane.b32.xlu1 %v4478_v48, %s4206_s29  ;;  %1239 = vrot.lane.b32.xlu2 %v4423_v3, %s4206_s29  ;;  %v690_v59 = vrot.slane %v4486_v55, 4  ;;  %6028 = vst [vmem:[#allocation18_spill] sm:$0xff] %v4535_v51  ;;  %v4541_v0 = vpack.c.b16 %v1165_v42, %v1164_v40  ;;  %v1078_v56 = vunpack.c.l.b16 %v642_v45 }
 0x119   : > { %1791 = vrot.lane.b32.xlu0 %v4478_v48, %s4205_s24 }
 0x11a   : > { %v612_v5 = vpop.f32.mrf.mxu2  ;;  %v632_v14 = vpop.f32.mrf.mxu3  ;;  %v718_v16 = vunpack.c.l.b16 %v690_v59  ;;  %6029 = vst [vmem:[#allocation19_spill] sm:$0xff] %v4541_v0  ;;  %v685_v59 = vrot.slane %v4425_v4, 4 }
 0x11b   : > { %v613_v13 = vadd.f32 %v612_v5, %v4437_v11  ;;  %v4506_v15 = vpop.f32.mrf.mxu0  ;;  %v633_v21 = vadd.f32 %v632_v14, %v4437_v11  ;;  %v4512_v22 = vpop.f32.mrf.mxu1  ;;  %v1077_v11 = vunpack.c.l.b16 %v640_v44  ;;  %v743_v5 = vsel %vm723_vm0, %v721_v62, 0 }
 0x11c   : > { %v722_v26 = vpack.c.b16 %v718_v16, %v717_v1  ;;  %v652_v1 = vpack.c.bf16 %v616_v39, %v616_v39  ;;  %v713_v4 = vunpack.c.l.b16 %v685_v59 }
 0x11d   : > { %v650_v25 = vpack.c.bf16 %v613_v13, %v613_v13  ;;  %v666_v31 = vpack.c.bf16 %v633_v21, %v633_v21  ;;  %v4550_v3 = vpack.c.b16 %v1078_v56, %v1077_v11  ;;  %v4556_v13 = vpack.c.b16 %v1163_v7, %v1162_v60 }
 0x11e   : > { %v746_v38 = vsel %vm723_vm0, %v722_v26, 0  ;;  %v1160_v9 = vunpack.c.l.b16 %v652_v1  ;;  %v720_v16 = vpack.c.b16 %v714_v8, %v713_v4  ;;  %v737_v21 = vsel %vm723_vm0, %v719_v57, 0 }
 0x11f   : > { %v1082_v37 = vunpack.c.l.b16 %v650_v25  ;;  %v1167_v43 = vunpack.c.l.b16 %v666_v31  ;;  %752 = vmatpush.bf16.xpose.msrb.mxu3 %v746_v38  ;;  %6030 = vst [vmem:[#allocation20_spill] sm:$0xff] %v4550_v3  ;;  %v567_v25 = vadd.f32 %v4512_v22, %v4389_v34  ;;  %v706_v57 = vunpack.c.l.b16 %v4486_v55 }
 0x120   : > { %1833 = vrot.lane.b32.xlu1 %v4514_v32, %s4205_s24  ;;  %2379 = vrot.lane.b32.xlu2 %v4439_v12, %s4207_s16  ;;  %6031 = vst [vmem:[#allocation21_spill] sm:$0xff] %v4556_v13  ;;  %v4566_v18 = vpack.c.b16 %v1161_v10, %v1160_v9 }
 0x121   : > { %v4521_v46 = vpack.c.b16 %v1082_v37, %v1081_v24  ;;  %v4531_v52 = vpack.c.b16 %v1167_v43, %v1166_v29  ;;  %1245 = vrot.lane.b32.xlu0 %v4463_v35, %s4206_s29  ;;  %v518_v24 = vadd.f32 %v4506_v15, %v4387_v33 }
 0x122   : > { %6032 = vst [vmem:[#allocation22_spill] sm:$0xff] %v4566_v18 }
 0x123   : > { %6026 = vst [vmem:[#allocation16_spill] sm:$0xff] %v4521_v46  ;;  %1107 = vmatpush.bf16.msrb.mxu0 %v4521_v46  ;;  %v4538_v61 = vpop.f32.mrf.mxu0  ;;  %1192 = vmatpush.bf16.msrb.mxu1 %v4531_v52  ;;  %v4544_v50 = vpop.f32.mrf.mxu1  ;;  %v4595_v28 = vpack.c.bf16 %v567_v25, %v518_v24 }
 0x124   : > { %6027 = vst [vmem:[#allocation17_spill] sm:$0xff] %v4531_v52  ;;  %v569_v43 = vadd.f32 %v4544_v50, %v4389_v34 }
 0x127   : > { %1108 = vmatpush.bf16.msrb.mxu0 %v4535_v51  ;;  %1193 = vmatpush.bf16.msrb.mxu1 %v4541_v0 }
 0x128   : > { %753 = vmatpush.bf16.xpose.msrb.mxu3 %v743_v5  ;;  %2341 = vrot.lane.b32.xlu1 %v4463_v35, %s4207_s16 }
 0x129   : > { %1789 = vrot.lane.b32.xlu2 %v4451_v23, %s4205_s24  ;;  %1793 = vrot.lane.b32.xlu0 %v4463_v35, %s4205_s24  ;;  %v740_v23 = vsel %vm723_vm0, %v720_v16, 0 }
 0x12b   : > { %1109 = vmatpush.bf16.msrb.mxu0 %v4550_v3  ;;  %v4561_v14 = vpop.f32.mrf.mxu0  ;;  %1194 = vmatpush.bf16.msrb.mxu1 %v4556_v13  ;;  %v4564_v17 = vpop.f32.mrf.mxu1 }
 0x12c   : > { %v523_v50 = vadd.f32 %v4561_v14, %v4387_v33  ;;  %v572_v1 = vadd.f32 %v4564_v17, %v4389_v34 }
 0x12f   : > { %1110 = vmatpush.bf16.msrb.mxu0 %v4459_v30  ;;  %1195 = vmatpush.bf16.msrb.mxu1 %v4566_v18 }
 0x130   : > { %754 = vmatpush.bf16.xpose.msrb.mxu3 %v740_v23  ;;  %1716 = vrot.lane.b32.xlu1 %v4541_v0, %s4206_s29 }
 0x131   : > { %1641 = vrot.lane.b32.xlu2 %v4550_v3, %s4206_s29  ;;  %2191 = vrot.lane.b32.xlu0 %v4535_v51, %s4205_s24 }
 0x133   : > { %v524_v19 = vpop.f32.mrf.mxu0  ;;  %v573_v20 = vpop.f32.mrf.mxu1 }
 0x134   : > { %v525_v2 = vadd.f32 %v524_v19, %v4387_v33  ;;  %v574_v60 = vadd.f32 %v573_v20, %v4389_v34 }
 0x136   : > { %v657_v17 = vpack.c.bf16 %v574_v60, %v525_v2 }
 0x138   : > { %755 = vmatpush.bf16.xpose.msrb.mxu3 %v737_v21  ;;  %1795 = vrot.lane.b32.xlu1 %v4486_v55, %s4205_s24 }
 0x139   : > { %2339 = vrot.lane.b32.xlu2 %v4478_v48, %s4207_s16  ;;  %1247 = vrot.lane.b32.xlu0 %v4486_v55, %s4206_s29  ;;  %v4599_v48 = vpack.c.b16 %v706_v57, %v705_v54 }
 0x13a   : > { %v4591_v26 = vpop.permute.xlu2 %1781 }
 0x13b   : > { %v527_v53 = vpop.f32.mrf.mxu0  ;;  %v576_v27 = vpop.f32.mrf.mxu1 }
 0x13c   : > { %v528_v38 = vadd.f32 %v527_v53, %v4387_v33  ;;  %v577_v6 = vadd.f32 %v576_v27, %v4389_v34  ;;  %v694_v53 = vrot.slane %v657_v17, 4 }
 0x13e   : > { %v4641_v47 = vpack.c.bf16 %v577_v6, %v528_v38 }
 0x13f   : > { %3512 = vmatmul.msk.bf16.vlgmr.msrb.gmra.mxu3 %vm723_vm0, %v4410_v58 }
 0x140   : > { %2383 = vrot.lane.b32.xlu1 %v4599_v48, %s4207_s16  ;;  %v695_v8 = vrot.slane %v4641_v47, 4 }
 0x141   : > { %1285 = vrot.lane.b32.xlu2 %v4514_v32, %s4206_s29  ;;  %1249 = vrot.lane.b32.xlu0 %v4595_v28, %s4206_s29 }
 0x142   : > { %v4607_v35 = vpop.permute.xlu2 %2329  ;;  %v793_v23 = vunpack.c.l.b16 %v695_v8 }
 0x143   : > { %v529_v15 = vpop.f32.mrf.mxu0  ;;  %v578_v22 = vpop.f32.mrf.mxu1 }
 0x144   : > { %v530_v39 = vadd.f32 %v529_v15, %v4387_v33  ;;  %v579_v40 = vadd.f32 %v578_v22, %v4389_v34  ;;  %v792_v22 = vunpack.c.l.b16 %v694_v53 }
 0x146   : > { %v4643_v62 = vpack.c.bf16 %v579_v40, %v530_v39 }
 0x148   : > { %2345 = vrot.lane.b32.xlu1 %v4595_v28, %s4207_s16  ;;  %v696_v4 = vrot.slane %v4643_v62, 4  ;;  %v782_v8 = vunpack.c.l.b16 %v4643_v62 }
 0x149   : > { %2381 = vrot.lane.b32.xlu2 %v4514_v32, %s4207_s16  ;;  %1797 = vrot.lane.b32.xlu0 %v4595_v28, %s4205_s24 }
 0x14a   : > { %v4615_v58 = vpop.permute.xlu2 %1281  ;;  %v794_v19 = vunpack.c.l.b16 %v696_v4 }
 0x14b   : > { %v532_v29 = vpop.f32.mrf.mxu0  ;;  %v581_v31 = vpop.f32.mrf.mxu1 }
 0x14c   : > { %v533_v36 = vadd.f32 %v532_v29, %v4387_v33  ;;  %v582_v37 = vadd.f32 %v581_v31, %v4389_v34  ;;  %v799_v24 = vpack.c.b16 %v794_v19, %v793_v23 }
 0x14e   : > { %v4625_v42 = vpack.c.bf16 %v582_v37, %v533_v36  ;;  %v691_v37 = vrot.slane %v4595_v28, 4 }
 0x14f   : > { %3513 = vmatmul.msk.bf16.gmra.mxu3 %vm723_vm0, %v4439_v12  ;;  %v520_v12 = vadd.f32 %v4538_v61, %v4387_v33 }
 0x150   : > { %1645 = vrot.lane.b32.xlu1 %v4521_v46, %s4206_s29  ;;  %v697_v56 = vrot.slane %v4625_v42, 4  ;;  %v789_v40 = vunpack.c.l.b16 %v691_v37 }
 0x151   : > { %1643 = vrot.lane.b32.xlu2 %v4535_v51, %s4206_s29  ;;  %1718 = vrot.lane.b32.xlu0 %v4531_v52, %s4206_s29  ;;  %v653_v61 = vpack.c.bf16 %v569_v43, %v520_v12 }
 0x152   : > { %v4637_v44 = vpop.permute.xlu0 %1233  ;;  %v4639_v45 = vpop.permute.xlu2 %1829  ;;  %v795_v5 = vunpack.c.l.b16 %v697_v56 }
 0x153   : > { %v534_v41 = vpop.f32.mrf.mxu0  ;;  %v583_v49 = vpop.f32.mrf.mxu1  ;;  %v778_v16 = vunpack.c.l.b16 %v653_v61  ;;  %v692_v38 = vrot.slane %v653_v61, 4 }
 0x154   : > { %v535_v63 = vadd.f32 %v534_v41, %v4387_v33  ;;  %v584_v11 = vadd.f32 %v583_v49, %v4389_v34  ;;  %v655_v33 = vpack.c.bf16 %v572_v1, %v523_v50  ;;  %v777_v34 = vunpack.c.l.b16 %v4595_v28 }
 0x155   : > { %v790_v12 = vunpack.c.l.b16 %v692_v38  ;;  %v780_v28 = vunpack.c.l.b16 %v657_v17 }
 0x156   : > { %v4648_v59 = vpack.c.bf16 %v584_v11, %v535_v63  ;;  %v785_v21 = vpack.c.b16 %v778_v16, %v777_v34  ;;  %v693_v25 = vrot.slane %v655_v33, 4  ;;  %v779_v43 = vunpack.c.l.b16 %v655_v33 }
 0x157   : > { %v797_v63 = vpack.c.b16 %v790_v12, %v789_v40 }
 0x158   : > { %1251 = vrot.lane.b32.xlu1 %v653_v61, %s4206_s29  ;;  %v698_v7 = vrot.slane %v4648_v59, 4  ;;  %v791_v15 = vunpack.c.l.b16 %v693_v25  ;;  %v783_v25 = vunpack.c.l.b16 %v4625_v42 }
 0x159   : > { %2343 = vrot.lane.b32.xlu2 %v4486_v55, %s4207_s16  ;;  %2347 = vrot.lane.b32.xlu0 %v653_v61, %s4207_s16  ;;  %v814_v56 = vsel %vm723_vm0, %v797_v63, 0 }
 0x15a   : > { %v4663_v9 = vpop.permute.xlu2 %1237  ;;  %v796_v10 = vunpack.c.l.b16 %v698_v7  ;;  %v4675_v54 = vpop.permute.xlu1 %1235  ;;  %v798_v29 = vpack.c.b16 %v792_v22, %v791_v15 }
 0x15b   : > { %v4665_v14 = vpop.permute.xlu0 %1783 }
 0x15c   : > { %v800_v55 = vpack.c.b16 %v796_v10, %v795_v5  ;;  %v817_v39 = vsel %vm723_vm0, %v798_v29, 0  ;;  %v781_v5 = vunpack.c.l.b16 %v4641_v47 }
 0x15e   : > { %v823_v20 = vsel %vm723_vm0, %v800_v55, 0  ;;  %v787_v34 = vpack.c.b16 %v782_v8, %v781_v5 }
 0x15f   : > { %3514 = vmatmul.msk.bf16.gmra.mxu3 %vm723_vm0, %v4514_v32  ;;  %v820_v32 = vsel %vm723_vm0, %v799_v24, 0 }
 0x160   : > { %829 = vmatpush.bf16.xpose.msra.mxu3 %v823_v20  ;;  %1799 = vrot.lane.b32.xlu1 %v653_v61, %s4205_s24 }
 0x161   : > { %1287 = vrot.lane.b32.xlu2 %v4599_v48, %s4206_s29  ;;  %1902 = vrot.lane.b32.xlu0 %v785_v21, %s4205_s24 }
 0x162   : > { %v4677_v57 = vpop.permute.xlu2 %2333 }
 0x163   : > { %v4679_v27 = vpop.permute.xlu0 %2331 }
 0x168   : > { %830 = vmatpush.bf16.xpose.msra.mxu3 %v820_v32  ;;  %1354 = vrot.lane.b32.xlu1 %v785_v21, %s4206_s29 }
 0x169   : > { %1835 = vrot.lane.b32.xlu2 %v4599_v48, %s4205_s24  ;;  %1801 = vrot.lane.b32.xlu0 %v655_v33, %s4205_s24 }
 0x16a   : > { %v4686_v31 = vpop.permute.xlu1 %1787  ;;  %v4688_v36 = vpop.permute.xlu2 %1639 }
 0x16b   : > { %v4691_v6 = vpop.permute.xlu0 %2377 }
 0x16f   : > { %3515 = vmatmul.msk.bf16.gmra.mxu3 %vm723_vm0, %v4599_v48  ;;  %v786_v48 = vpack.c.b16 %v780_v28, %v779_v43 }
 0x170   : > { %831 = vmatpush.bf16.xpose.msra.mxu3 %v817_v39  ;;  %2450 = vrot.lane.b32.xlu1 %v785_v21, %s4207_s16 }
 0x171   : > { %2193 = vrot.lane.b32.xlu2 %v4521_v46, %s4205_s24  ;;  %2351 = vrot.lane.b32.xlu0 %v657_v17, %s4207_s16 }
 0x172   : > { %v4700_v41 = vpop.permute.xlu1 %1831  ;;  %v4702_v49 = vpop.permute.xlu2 %1239 }
 0x173   : > { %v4704_v11 = vpop.permute.xlu0 %1785 }
 0x178   : > { %832 = vmatpush.bf16.xpose.msra.mxu3 %v814_v56  ;;  %1253 = vrot.lane.b32.xlu1 %v655_v33, %s4206_s29 }
 0x179   : > { %1255 = vrot.lane.b32.xlu2 %v657_v17, %s4206_s29  ;;  %1356 = vrot.lane.b32.xlu0 %v786_v48, %s4206_s29 }
 0x17a   : > { %v4710_v61 = vpop.permute.xlu1 %1241  ;;  %v4712_v50 = vpop.permute.xlu2 %2379 }
 0x17b   : > { %v4714_v1 = vpop.permute.xlu0 %2335  ;;  %v1269_v12 = vrot.slane %v4710_v61, 4  ;;  %v1268_v61 = vrot.slane %v4702_v49, 4 }
 0x17d   : > { %v1293_v5 = vunpack.c.l.b16 %v1269_v12 }
 0x17f   : > { %3516 = vmatmul.msk.bf16.vlgmr.msra.gmra.mxu3 %vm723_vm0, %v785_v21 }
 0x180   : > { %2349 = vrot.lane.b32.xlu1 %v655_v33, %s4207_s16 }
 0x181   : > { %1805 = vrot.lane.b32.xlu2 %v4641_v47, %s4205_s24  ;;  %1257 = vrot.lane.b32.xlu0 %v4641_v47, %s4206_s29 }
 0x182   : > { %v4722_v2 = vpop.permute.xlu1 %2337 }
 0x183   : > { %v4724_v60 = vpop.permute.xlu2 %1789  ;;  %v4726_v7 = vpop.permute.xlu0 %1283 }
 0x188   : > { %1803 = vrot.lane.b32.xlu1 %v657_v17, %s4205_s24 }
 0x189   : > { %2355 = vrot.lane.b32.xlu2 %v4643_v62, %s4207_s16  ;;  %2353 = vrot.lane.b32.xlu0 %v4641_v47, %s4207_s16 }
 0x18a   : > { %v1244_v4 = vpop.permute.xlu1 %1243 }
 0x18b   : > { %v4735_v10 = vpop.permute.xlu2 %1641  ;;  %v4737_v33 = vpop.permute.xlu0 %1791  ;;  %v1270_v38 = vrot.slane %v1244_v4, 4  ;;  %v1267_v4 = vrot.slane %v4663_v9, 4 }
 0x18d   : > { %v1294_v43 = vunpack.c.l.b16 %v1270_v38  ;;  %v1291_v49 = vunpack.c.l.b16 %v1267_v4 }
 0x18f   : > { %3517 = vmatmul.msk.bf16.gmra.mxu3 %vm723_vm0, %v786_v48  ;;  %v1299_v8 = vpack.c.b16 %v1294_v43, %v1293_v5 }
 0x190   : > { %1904 = vrot.lane.b32.xlu1 %v786_v48, %s4205_s24 }
 0x191   : > { %1906 = vrot.lane.b32.xlu2 %v787_v34, %s4205_s24  ;;  %1807 = vrot.lane.b32.xlu0 %v4643_v62, %s4205_s24 }
 0x192   : > { %v4744_v16 = vpop.permute.xlu1 %1833 }
 0x193   : > { %v4746_v17 = vpop.permute.xlu2 %2339  ;;  %v1246_v47 = vpop.permute.xlu0 %1245 }
 0x194   : > { %v1271_v53 = vrot.slane %v1246_v47, 4  ;;  %v1320_v47 = vsel %vm723_vm0, %v1299_v8, 0 }
 0x196   : > { %v1295_v39 = vunpack.c.l.b16 %v1271_v53  ;;  %v1266_v53 = vrot.slane %v4675_v54, 4 }
 0x198   : > { %2452 = vrot.lane.b32.xlu1 %v786_v48, %s4207_s16 }
 0x199   : > { %1809 = vrot.lane.b32.xlu2 %v4625_v42, %s4205_s24  ;;  %1358 = vrot.lane.b32.xlu0 %v787_v34, %s4206_s29 }
 0x19a   : > { %v4752_v55 = vpop.permute.xlu1 %2341 }
 0x19b   : > { %v4754_v23 = vpop.permute.xlu2 %1285  ;;  %v4756_v19 = vpop.permute.xlu0 %1793 }
 0x19c   : > { %v1819_v38 = vrot.slane %v4756_v19, 4  ;;  %v1818_v19 = vrot.slane %v4737_v33, 4 }
 0x19f   : > { %3518 = vmatmul.msk.bf16.gmra.mxu3 %vm723_vm0, %v787_v34 }
 0x1a0   : > { %1259 = vrot.lane.b32.xlu1 %v4643_v62, %s4206_s29  ;;  %v784_v62 = vunpack.c.l.b16 %v4648_v59 }
 0x1a1   : > { %2357 = vrot.lane.b32.xlu2 %v4625_v42, %s4207_s16  ;;  %2454 = vrot.lane.b32.xlu0 %v787_v34, %s4207_s16 }
 0x1a2   : > { %v4764_v20 = vpop.permute.xlu1 %1716  ;;  %v788_v37 = vpack.c.b16 %v784_v62, %v783_v25 }
 0x1a3   : > { %v4766_v21 = vpop.permute.xlu2 %2381  ;;  %v4768_v24 = vpop.permute.xlu0 %2191 }
 0x1a8   : > { %1261 = vrot.lane.b32.xlu1 %v4625_v42, %s4206_s29 }
 0x1a9   : > { %1263 = vrot.lane.b32.xlu2 %v4648_v59, %s4206_s29  ;;  %1811 = vrot.lane.b32.xlu0 %v4648_v59, %s4205_s24 }
 0x1aa   : > { %v1796_v32 = vpop.permute.xlu1 %1795 }
 0x1ab   : > { %v1644_v15 = vpop.permute.xlu2 %1643  ;;  %v1248_v22 = vpop.permute.xlu0 %1247 }
 0x1ac   : > { %v1272_v29 = vrot.slane %v1248_v22, 4  ;;  %v1820_v22 = vrot.slane %v1796_v32, 4  ;;  %v1843_v32 = vunpack.c.l.b16 %v1819_v38 }
 0x1ae   : > { %v1296_v40 = vunpack.c.l.b16 %v1272_v29  ;;  %v1265_v29 = vrot.slane %v4637_v44, 4 }
 0x1af   : > { %3519 = vmatmul.msk.bf16.gmra.mxu3 %vm723_vm0, %v788_v37 }
 0x1b0   : > { %1360 = vrot.lane.b32.xlu1 %v788_v37, %s4206_s29  ;;  %v1300_v42 = vpack.c.b16 %v1296_v40, %v1295_v39  ;;  %v1290_v40 = vunpack.c.l.b16 %v1266_v53  ;;  %v1289_v54 = vunpack.c.l.b16 %v1265_v29 }
 0x1b1   : > { %1908 = vrot.lane.b32.xlu2 %v788_v37, %s4205_s24  ;;  %2359 = vrot.lane.b32.xlu0 %v4648_v59, %s4207_s16  ;;  %v1292_v59 = vunpack.c.l.b16 %v1268_v61 }
 0x1b2   : > { %v4784_v28 = vpop.permute.xlu1 %2383  ;;  %v1323_v63 = vsel %vm723_vm0, %v1300_v42, 0  ;;  %v1297_v44 = vpack.c.b16 %v1290_v40, %v1289_v54  ;;  %v2367_v54 = vrot.slane %v4752_v55, 4 }
 0x1b3   : > { %v4787_v48 = vpop.permute.xlu2 %2343  ;;  %1329 = vmatpush.bf16.xpose.msrb.mxu2 %v1323_v63  ;;  %v4789_v56 = vpop.permute.xlu0 %1249  ;;  %v1298_v9 = vpack.c.b16 %v1292_v59, %v1291_v49  ;;  %v1844_v63 = vunpack.c.l.b16 %v1820_v22  ;;  %v1842_v49 = vunpack.c.l.b16 %v1818_v19 }
 0x1b4   : > { %v1314_v59 = vsel %vm723_vm0, %v1297_v44, 0 }
 0x1b5   : > { %v1317_v42 = vsel %vm723_vm0, %v1298_v9, 0  ;;  %v1848_v61 = vpack.c.b16 %v1844_v63, %v1843_v32  ;;  %v1816_v9 = vrot.slane %v4686_v31, 4  ;;  %v1813_v63 = vrot.slane %v4591_v26, 4 }
 0x1b7   : > { %v1871_v33 = vsel %vm723_vm0, %v1848_v61, 0  ;;  %v1837_v26 = vunpack.c.l.b16 %v1813_v63  ;;  %v2363_v63 = vrot.slane %v4677_v57, 4  ;;  %v2362_v57 = vrot.slane %v4679_v27, 4 }
 0x1b9   : > { %1714 = vrot.lane.b32.xlu2 %v4556_v13, %s4206_s29  ;;  %2189 = vrot.lane.b32.xlu0 %v4550_v3, %s4205_s24 }
 0x1ba   : > { %v4797_v34 = vpop.permute.xlu1 %2345 }
 0x1bb   : > { %v4800_v25 = vpop.permute.xlu2 %1287  ;;  %1330 = vmatpush.bf16.xpose.msrb.mxu2 %v1320_v47  ;;  %v4802_v62 = vpop.permute.xlu0 %1797 }
 0x1c1   : > { %2456 = vrot.lane.b32.xlu0 %v788_v37, %s4207_s16  ;;  %v1817_v37 = vrot.slane %v4724_v60, 4  ;;  %v1815_v60 = vrot.slane %v4704_v11, 4  ;;  %v1840_v11 = vunpack.c.l.b16 %v1816_v9 }
 0x1c2   : > { %v4808_v39 = vpop.f32.mrf.mxu3  ;;  %v1646_v12 = vpop.permute.xlu1 %1645 }
 0x1c3   : > { %v4811_v43 = vpop.permute.xlu2 %1835  ;;  %v1719_v5 = vpop.permute.xlu0 %1718  ;;  %1331 = vmatpush.bf16.xpose.msrb.mxu2 %v1317_v42  ;;  %1667 = vmatpush.bf16.msra.mxu0 %v1646_v12  ;;  %v2368_v42 = vrot.slane %v4787_v48, 4 }
 0x1c4   : > { %1740 = vmatpush.bf16.msra.mxu1 %v1719_v5  ;;  %v855_v5 = vsel %vm854_vm1, %v4808_v39, -inf }
 0x1c5   : > { %v2392_v48 = vunpack.c.l.b16 %v2368_v42 }
 0x1c7   : > { %1668 = vmatpush.bf16.msra.mxu0 %v1644_v15 }
 0x1c8   : > { %1741 = vmatpush.bf16.msra.mxu1 %v4764_v20  ;;  %v1841_v20 = vunpack.c.l.b16 %v1817_v37  ;;  %v2391_v37 = vunpack.c.l.b16 %v2367_v54 }
 0x1ca   : > { %v4816_v8 = vpop.f32.mrf.mxu3  ;;  %v4818_v4 = vpop.permute.xlu1 %1251  ;;  %v1847_v15 = vpack.c.b16 %v1842_v49, %v1841_v20  ;;  %v2366_v49 = vrot.slane %v4746_v17, 4 }
 0x1cb   : > { %v4821_v47 = vpop.permute.xlu2 %2193  ;;  %v4823_v53 = vpop.permute.xlu0 %2347  ;;  %1332 = vmatpush.bf16.xpose.msrb.mxu2 %v1314_v59  ;;  %1669 = vmatpush.bf16.msra.mxu0 %v4735_v10  ;;  %v1839_v10 = vunpack.c.l.b16 %v1815_v60  ;;  %v858_v55 = vsel %vm854_vm1, %v4816_v8, -inf  ;;  %v2365_v60 = vrot.slane %v4722_v2, 4 }
 0x1cc   : > { %v1868_v12 = vsel %vm723_vm0, %v1847_v15, 0 }
 0x1cd   : > { %v1846_v31 = vpack.c.b16 %v1840_v11, %v1839_v10 }
 0x1cf   : > { %1670 = vmatpush.bf16.msra.mxu0 %v4688_v36  ;;  %v1814_v36 = vrot.slane %v4665_v14, 4  ;;  %v1865_v14 = vsel %vm723_vm0, %v1846_v31, 0  ;;  %v2364_v31 = vrot.slane %v4714_v1, 4 }
 0x1d1   : > { %v1838_v19 = vunpack.c.l.b16 %v1814_v36  ;;  %v2389_v36 = vunpack.c.l.b16 %v2365_v60  ;;  %v2388_v1 = vunpack.c.l.b16 %v2364_v31 }
 0x1d2   : > { %v4830_v22 = vpop.f32.mrf.mxu3  ;;  %3528 = vmatmul.msk.bf16.vlgmr.msrb.gmra.mxu2 %vm723_vm0, %v4615_v58  ;;  %v4834_v29 = vpop.permute.xlu1 %1799 }
 0x1d3   : > { %1877 = vmatpush.bf16.xpose.msra.mxu2 %v1871_v33  ;;  %v4836_v38 = vpop.permute.xlu2 %1255  ;;  %v4838_v40 = vpop.permute.xlu0 %1902  ;;  %v1845_v59 = vpack.c.b16 %v1838_v19, %v1837_v26  ;;  %v2396_v33 = vpack.c.b16 %v2392_v48, %v2391_v37  ;;  %v861_v19 = vsel %vm854_vm1, %v4830_v22, -inf  ;;  %v2387_v26 = vunpack.c.l.b16 %v2363_v63 }
 0x1d5   : > { %v1862_v10 = vsel %vm723_vm0, %v1845_v59, 0  ;;  %v2419_v17 = vsel %vm723_vm0, %v2396_v33, 0  ;;  %v2394_v59 = vpack.c.b16 %v2388_v1, %v2387_v26  ;;  %v2361_v33 = vrot.slane %v4607_v35, 4 }
 0x1d7   : > { %v2385_v27 = vunpack.c.l.b16 %v2361_v33 }
 0x1da   : > { %v4844_v58 = vpop.f32.mrf.mxu3  ;;  %v4849_v32 = vpop.permute.xlu1 %1354  ;;  %856 = vmax.xlane.f32.xlu1 %v855_v5 }
 0x1db   : > { %1878 = vmatpush.bf16.xpose.msra.mxu2 %v1868_v12  ;;  %v4851_v44 = vpop.permute.xlu2 %1805  ;;  %v4853_v61 = vpop.permute.xlu0 %1801  ;;  %v2390_v12 = vunpack.c.l.b16 %v2366_v49  ;;  %v864_v2 = vsel %vm854_vm1, %v4844_v58, -inf }
 0x1e2   : > { %859 = vmax.xlane.f32.xlu2 %v858_v55  ;;  %v4859_v20 = vpop.f32.mrf.mxu3  ;;  %3529 = vmatmul.msk.bf16.gmra.mxu2 %vm723_vm0, %v4726_v7  ;;  %v4864_v15 = vpop.permute.xlu1 %2450  ;;  %v2395_v7 = vpack.c.b16 %v2390_v12, %v2389_v36  ;;  %v2386_v12 = vunpack.c.l.b16 %v2362_v57 }
 0x1e3   : > { %1879 = vmatpush.bf16.xpose.msra.mxu2 %v1865_v14  ;;  %v4866_v9 = vpop.permute.xlu2 %2355  ;;  %v4870_v11 = vpop.permute.xlu0 %2351 }
 0x1e4   : > { %v2416_v48 = vsel %vm723_vm0, %v2395_v7, 0  ;;  %v2393_v36 = vpack.c.b16 %v2386_v12, %v2385_v27 }
 0x1ea   : > { %865 = vmax.xlane.f32.xlu2 %v864_v2  ;;  %v4875_v42 = vpop.f32.mrf.mxu3  ;;  %v4878_v5 = vpop.permute.xlu1 %1253 }
 0x1eb   : > { %1880 = vmatpush.bf16.xpose.msra.mxu2 %v1862_v10  ;;  %v4880_v54 = vpop.permute.xlu2 %1906  ;;  %v870_v14 = vsel %vm854_vm1, %v4875_v42, -inf  ;;  %862 = vmax.xlane.f32.xlu0 %v861_v19  ;;  %v4887_v37 = vpop.permute.xlu0 %1356  ;;  %v867_v10 = vsel %vm854_vm1, %v4859_v20, -inf  ;;  %v2410_v19 = vsel %vm723_vm0, %v2393_v36, 0 }
 0x1ec   : > { %871 = vmax.xlane.f32.xlu1 %v870_v14 }
 0x1f2   : > { %v4890_v49 = vpop.f32.mrf.mxu3  ;;  %3530 = vmatmul.msk.bf16.gmra.mxu2 %vm723_vm0, %v4754_v23  ;;  %v4895_v55 = vpop.permute.xlu1 %2349 }
 0x1f3   : > { %2425 = vmatpush.bf16.xpose.msrb.mxu2 %v2419_v17  ;;  %v4897_v60 = vpop.permute.xlu2 %1809  ;;  %868 = vmax.xlane.f32.xlu0 %v867_v10  ;;  %v2413_v17 = vsel %vm723_vm0, %v2394_v59, 0  ;;  %v1258_v31 = vpop.permute.xlu0 %1257  ;;  %v873_v7 = vsel %vm854_vm1, %v4890_v49, -inf }
 0x1f4   : > { %v1277_v46 = vrot.slane %v1258_v31, 4 }
 0x1fa   : > { %v4902_v2 = vpop.f32.mrf.mxu3  ;;  %v4904_v35 = vpop.permute.xlu1 %1803 }
 0x1fb   : > { %2426 = vmatpush.bf16.xpose.msrb.mxu2 %v2416_v48  ;;  %v4906_v23 = vpop.permute.xlu2 %2357  ;;  %v876_v63 = vsel %vm854_vm1, %v4902_v2, -inf  ;;  %874 = vmax.xlane.f32.xlu0 %v873_v7  ;;  %v4921_v57 = vpop.permute.xlu0 %2353 }
 0x1fc   : > { %877 = vmax.xlane.f32.xlu2 %v876_v63 }
 0x202   : > { %v4913_v14 = vpop.f32.mrf.mxu3  ;;  %3531 = vmatmul.msk.bf16.gmra.mxu2 %vm723_vm0, %v4800_v25  ;;  %v4917_v1 = vpop.permute.xlu1 %1904 }
 0x203   : > { %2427 = vmatpush.bf16.xpose.msrb.mxu2 %v2413_v17  ;;  %v1264_v48 = vpop.permute.xlu2 %1263  ;;  %v879_v26 = vsel %vm854_vm1, %v4913_v14, -inf  ;;  %v1808_v25 = vpop.permute.xlu0 %1807 }
 0x204   : > { %880 = vmax.xlane.f32.xlu1 %v879_v26 }
 0x20a   : > { %v4923_v59 = vpop.f32.mrf.mxu3  ;;  %v4925_v33 = vpop.permute.xlu1 %2452 }
 0x20b   : > { %2428 = vmatpush.bf16.xpose.msrb.mxu2 %v2410_v19  ;;  %v4927_v10 = vpop.permute.xlu2 %1908  ;;  %v882_v12 = vsel %vm854_vm1, %v4923_v59, -inf  ;;  %v4937_v63 = vpop.permute.xlu0 %1358  ;;  %v1280_v19 = vrot.slane %v1264_v48, 4 }
 0x20c   : > { %883 = vmax.xlane.f32.xlu2 %v882_v12 }
 0x20d   : > { %v1369_v13 = vunpack.c.l.b16 %v1280_v19 }
 0x212   : > { %v4931_v17 = vpop.f32.mrf.mxu3  ;;  %3544 = vmatmul.msk.bf16.vlgmr.msra.gmra.mxu2 %vm723_vm0, %v4639_v45  ;;  %v1260_v27 = vpop.permute.xlu1 %1259 }
 0x213   : > { %v1715_v36 = vpop.permute.xlu2 %1714  ;;  %v885_v7 = vsel %vm854_vm1, %v4931_v17, -inf  ;;  %v1278_v45 = vrot.slane %v1260_v27, 4  ;;  %v4943_v18 = vpop.permute.xlu0 %2454 }
 0x214   : > { %1742 = vmatpush.bf16.msra.mxu1 %v1715_v36  ;;  %886 = vmax.xlane.f32.xlu2 %v885_v7  ;;  %v1366_v7 = vunpack.c.l.b16 %v1277_v46  ;;  %v1274_v46 = vrot.slane %v4818_v4, 4 }
 0x215   : > { %v1367_v30 = vunpack.c.l.b16 %v1278_v45 }
 0x217   : > { %v1372_v31 = vpack.c.b16 %v1367_v30, %v1366_v7  ;;  %v1273_v30 = vrot.slane %v4789_v56, 4  ;;  %v1826_v56 = vrot.slane %v1808_v25, 4 }
 0x219   : > { %v1393_v19 = vsel %vm723_vm0, %v1372_v31, 0  ;;  %v1362_v4 = vunpack.c.l.b16 %v1273_v30  ;;  %v1823_v30 = vrot.slane %v4853_v61, 4  ;;  %v2375_v61 = vrot.slane %v4906_v23, 4 }
 0x21a   : > { %v4939_v26 = vpop.f32.mrf.mxu3  ;;  %v1262_v0 = vpop.permute.xlu1 %1261 }
 0x21b   : > { %v888_v12 = vsel %vm854_vm1, %v4939_v26, -inf  ;;  %v1279_v3 = vrot.slane %v1262_v0, 4 }
 0x21c   : > { %889 = vmax.xlane.f32.xlu0 %v888_v12  ;;  %v1812_v12 = vpop.permute.xlu0 %1811 }
 0x21d   : > { %v1368_v51 = vunpack.c.l.b16 %v1279_v3  ;;  %v1275_v3 = vrot.slane %v4878_v5, 4  ;;  %v1363_v5 = vunpack.c.l.b16 %v1274_v46 }
 0x21f   : > { %v1373_v52 = vpack.c.b16 %v1369_v13, %v1368_v51  ;;  %v1276_v51 = vrot.slane %v4836_v38, 4  ;;  %v1364_v13 = vunpack.c.l.b16 %v1275_v3  ;;  %v1827_v38 = vrot.slane %v4897_v60, 4 }
 0x220   : > { %v1825_v60 = vrot.slane %v4851_v44, 4 }
 0x221   : > { %v1396_v48 = vsel %vm723_vm0, %v1373_v52, 0 }
 0x222   : > { %v4945_v36 = vpop.f32.mrf.mxu3  ;;  %3545 = vmatmul.msk.bf16.gmra.mxu2 %vm723_vm0, %v4700_v41  ;;  %1402 = vmatpush.bf16.xpose.msrb.mxu3 %v1396_v48  ;;  %v1365_v41 = vunpack.c.l.b16 %v1276_v51  ;;  %v1828_v48 = vrot.slane %v1812_v12, 4  ;;  %v1916_v51 = vunpack.c.l.b16 %v1827_v38  ;;  %v1915_v12 = vunpack.c.l.b16 %v1826_v56 }
 0x223   : > { %v891_v0 = vsel %vm854_vm1, %v4945_v36, -inf }
 0x224   : > { %892 = vmax.xlane.f32.xlu2 %v891_v0  ;;  %v1371_v45 = vpack.c.b16 %v1365_v41, %v1364_v13  ;;  %v1917_v3 = vunpack.c.l.b16 %v1828_v48  ;;  %v1370_v13 = vpack.c.b16 %v1363_v5, %v1362_v4  ;;  %v1824_v48 = vrot.slane %v4904_v35, 4  ;;  %v2360_v38 = vpop.permute.xlu0 %2359 }
 0x225   : > { %v2376_v4 = vrot.slane %v2360_v38, 4  ;;  %v1821_v35 = vrot.slane %v4802_v62, 4  ;;  %v2372_v38 = vrot.slane %v4870_v11, 4 }
 0x226   : > { %v1390_v7 = vsel %vm723_vm0, %v1371_v45, 0  ;;  %v1387_v41 = vsel %vm723_vm0, %v1370_v13, 0  ;;  %v1914_v45 = vunpack.c.l.b16 %v1825_v60  ;;  %v1913_v44 = vunpack.c.l.b16 %v1824_v48  ;;  %v4986_v13 = vpop.permute.xlu1 %1360 }
 0x227   : > { %v2465_v56 = vunpack.c.l.b16 %v2376_v4  ;;  %v2464_v60 = vunpack.c.l.b16 %v2375_v61  ;;  %v2370_v61 = vrot.slane %v4823_v53, 4 }
 0x228   : > { %v1920_v25 = vpack.c.b16 %v1915_v12, %v1914_v45 }
 0x229   : > { %v2469_v12 = vpack.c.b16 %v2465_v56, %v2464_v60 }
 0x22a   : > { %v4954_v27 = vpop.f32.mrf.mxu3  ;;  %1403 = vmatpush.bf16.xpose.msrb.mxu3 %v1393_v19  ;;  %v1921_v19 = vpack.c.b16 %v1917_v3, %v1916_v51  ;;  %v1941_v5 = vsel %vm723_vm0, %v1920_v25, 0  ;;  %v1822_v3 = vrot.slane %v4834_v29, 4  ;;  %v2373_v29 = vrot.slane %v4921_v57, 4 }
 0x22b   : > { %v894_v52 = vsel %vm854_vm1, %v4954_v27, -inf  ;;  %v2492_v45 = vsel %vm723_vm0, %v2469_v12, 0 }
 0x22c   : > { %895 = vmax.xlane.f32.xlu0 %v894_v52  ;;  %v1911_v51 = vunpack.c.l.b16 %v1822_v3 }
 0x232   : > { %v4962_v0 = vpop.f32.mrf.mxu3  ;;  %3546 = vmatmul.msk.bf16.gmra.mxu2 %vm723_vm0, %v4744_v16  ;;  %1404 = vmatpush.bf16.xpose.msrb.mxu3 %v1390_v7  ;;  %v1944_v16 = vsel %vm723_vm0, %v1921_v19, 0  ;;  %v1912_v7 = vunpack.c.l.b16 %v1823_v30  ;;  %v4989_v19 = vpop.permute.xlu0 %2189  ;;  %v2371_v30 = vrot.slane %v4895_v55, 4 }
 0x233   : > { %v897_v31 = vsel %vm854_vm1, %v4962_v0, -inf }
 0x234   : > { %898 = vmax.xlane.f32.xlu2 %v897_v31  ;;  %v1919_v31 = vpack.c.b16 %v1913_v44, %v1912_v7  ;;  %v2460_v7 = vunpack.c.l.b16 %v2371_v30 }
 0x23a   : > { %v4970_v52 = vpop.f32.mrf.mxu3  ;;  %1405 = vmatpush.bf16.xpose.msrb.mxu3 %v1387_v41 }
 0x23b   : > { %v900_v46 = vsel %vm854_vm1, %v4970_v52, -inf }
 0x23c   : > { %901 = vmax.xlane.f32.xlu2 %v900_v46  ;;  %v2462_v46 = vunpack.c.l.b16 %v2373_v29 }
 0x241   : > { %3532 = vmatmul.msk.bf16.vlgmr.msrb.gmra.mxu3 %vm723_vm0, %v4849_v32  ;;  %v1938_v32 = vsel %vm723_vm0, %v1919_v31, 0 }
 0x242   : > { %1950 = vmatpush.bf16.xpose.msra.mxu3 %v1944_v16  ;;  %3547 = vmatmul.msk.bf16.gmra.mxu2 %vm723_vm0, %v4811_v43  ;;  %v1910_v43 = vunpack.c.l.b16 %v1821_v35  ;;  %v2374_v16 = vrot.slane %v4866_v9, 4  ;;  %v5002_v9 = vpop.permute.xlu0 %2456 }
 0x244   : > { %v1918_v41 = vpack.c.b16 %v1911_v51, %v1910_v43  ;;  %v2463_v48 = vunpack.c.l.b16 %v2374_v16 }
 0x246   : > { %v1935_v23 = vsel %vm723_vm0, %v1918_v41, 0  ;;  %v2459_v41 = vunpack.c.l.b16 %v2370_v61 }
 0x24a   : > { %1951 = vmatpush.bf16.xpose.msra.mxu3 %v1941_v5 }
 0x24d   : > { %v857_v62 = vpop.xlane.xlu1 %856 }
 0x24e   : > { %v903_v57 = vsub.f32 %v4808_v39, %v857_v62  ;;  %v2461_v39 = vunpack.c.l.b16 %v2372_v38 }
 0x250   : > { %v919_v5 = vmul.f32 1.442695, %v903_v57  ;;  %v2467_v11 = vpack.c.b16 %v2461_v39, %v2460_v7 }
 0x251   : > { %3533 = vmatmul.msk.bf16.gmra.mxu3 %vm723_vm0, %v4887_v37 }
 0x252   : > { %1952 = vmatpush.bf16.xpose.msra.mxu3 %v1938_v32  ;;  %3560 = vmatmul.msk.bf16.vlgmr.msrb.gmra.mxu2 %vm723_vm0, %v4691_v6  ;;  %v2468_v6 = vpack.c.b16 %v2463_v48, %v2462_v46  ;;  %3744 = vpow2.f32 %v919_v5  ;;  %v2369_v32 = vrot.slane %v4797_v34, 4  ;;  %v2486_v53 = vsel %vm723_vm0, %v2467_v11, 0 }
 0x254   : > { %v2489_v3 = vsel %vm723_vm0, %v2468_v6, 0 }
 0x255   : > { %v5000_v25 = vpop.f32.mrf.mxu2  ;;  %v860_v44 = vpop.xlane.xlu2 %859 }
 0x256   : > { %v1427_v37 = vsel %vm854_vm1, %v5000_v25, -inf  ;;  %v904_v31 = vsub.f32 %v4816_v8, %v860_v44 }
 0x257   : > { %1428 = vmax.xlane.f32.xlu0 %v1427_v37 }
 0x258   : > { %v921_v56 = vmul.f32 1.442695, %v904_v31  ;;  %v5021_v60 = vpop.eup %3744 }
 0x25a   : > { %1953 = vmatpush.bf16.xpose.msra.mxu3 %v1935_v23  ;;  %3746 = vpow2.f32 %v921_v56 }
 0x25d   : > { %v5010_v4 = vpop.f32.mrf.mxu2  ;;  %v866_v43 = vpop.xlane.xlu2 %865 }
 0x25e   : > { %v863_v35 = vpop.xlane.xlu0 %862  ;;  %v1430_v55 = vsel %vm854_vm1, %v5010_v4, -inf  ;;  %v906_v29 = vsub.f32 %v4844_v58, %v866_v43 }
 0x25f   : > { %v905_v51 = vsub.f32 %v4830_v22, %v863_v35  ;;  %1431 = vmax.xlane.f32.xlu1 %v1430_v55  ;;  %v2458_v22 = vunpack.c.l.b16 %v2369_v32 }
 0x260   : > { %v925_v16 = vmul.f32 1.442695, %v906_v29  ;;  %v5031_v62 = vpop.eup %3746 }
 0x261   : > { %3534 = vmatmul.msk.bf16.gmra.mxu3 %vm723_vm0, %v4937_v63  ;;  %v923_v8 = vmul.f32 1.442695, %v905_v51  ;;  %v951_v63 = vsel %vm854_vm1, %v5021_v60, 0.0 }
 0x262   : > { %2498 = vmatpush.bf16.xpose.msrb.mxu3 %v2492_v45  ;;  %3561 = vmatmul.msk.bf16.gmra.mxu2 %vm723_vm0, %v4712_v50  ;;  %v2466_v50 = vpack.c.b16 %v2459_v41, %v2458_v22  ;;  %v954_v45 = vsel %vm854_vm1, %v5031_v62, 0.0 }
 0x263   : > { %3748 = vpow2.f32 %v923_v8 }
 0x264   : > { %v2483_v23 = vsel %vm723_vm0, %v2466_v50, 0  ;;  %3750 = vpow2.f32 %v925_v16 }
 0x265   : > { %v5025_v34 = vpop.f32.mrf.mxu2 }
 0x266   : > { %v1433_v12 = vsel %vm854_vm1, %v5025_v34, -inf  ;;  %v869_v37 = vpop.xlane.xlu0 %868 }
 0x267   : > { %952 = vadd.xlane.f32.xlu1 %v951_v63  ;;  %1434 = vmax.xlane.f32.xlu2 %v1433_v12  ;;  %v907_v6 = vsub.f32 %v4859_v20, %v869_v37 }
 0x269   : > { %v5034_v46 = vpop.eup %3748  ;;  %v927_v7 = vmul.f32 1.442695, %v907_v6 }
 0x26a   : > { %2499 = vmatpush.bf16.xpose.msrb.mxu3 %v2489_v3  ;;  %v957_v57 = vsel %vm854_vm1, %v5034_v46, 0.0  ;;  %v5048_v30 = vpop.eup %3750 }
 0x26b   : > { %v960_v5 = vsel %vm854_vm1, %v5048_v30, 0.0  ;;  %3752 = vpow2.f32 %v927_v7 }
 0x26d   : > { %v5036_v58 = vpop.f32.mrf.mxu2 }
 0x26e   : > { %v1436_v48 = vsel %vm854_vm1, %v5036_v58, -inf  ;;  %v875_v31 = vpop.xlane.xlu0 %874 }
 0x26f   : > { %955 = vadd.xlane.f32.xlu1 %v954_v45  ;;  %1437 = vmax.xlane.f32.xlu0 %v1436_v48  ;;  %v878_v35 = vpop.xlane.xlu2 %877 }
 0x270   : > { %958 = vadd.xlane.f32.xlu2 %v957_v57  ;;  %v910_v61 = vsub.f32 %v4902_v2, %v878_v35 }
 0x271   : > { %3535 = vmatmul.msk.bf16.gmra.mxu3 %vm723_vm0, %v4986_v13  ;;  %v872_v13 = vpop.xlane.xlu1 %871  ;;  %v5066_v55 = vpop.eup %3752 }
 0x272   : > { %2500 = vmatpush.bf16.xpose.msrb.mxu3 %v2486_v53  ;;  %3562 = vmatmul.msk.bf16.gmra.mxu2 %vm723_vm0, %v4766_v21  ;;  %v908_v3 = vsub.f32 %v4875_v42, %v872_v13  ;;  %v909_v42 = vsub.f32 %v4890_v49, %v875_v31  ;;  %v963_v32 = vsel %vm854_vm1, %v5066_v55, 0.0  ;;  %v933_v56 = vmul.f32 1.442695, %v910_v61 }
 0x274   : > { %v929_v39 = vmul.f32 1.442695, %v908_v3 }
 0x275   : > { %v5051_v44 = vpop.f32.mrf.mxu2 }
 0x276   : > { %v1439_v38 = vsel %vm854_vm1, %v5051_v44, -inf  ;;  %3754 = vpow2.f32 %v929_v39 }
 0x277   : > { %1440 = vmax.xlane.f32.xlu1 %v1439_v38  ;;  %961 = vadd.xlane.f32.xlu0 %v960_v5 }
 0x279   : > { %v881_v16 = vpop.xlane.xlu1 %880 }
 0x27a   : > { %2501 = vmatpush.bf16.xpose.msrb.mxu3 %v2483_v23  ;;  %v911_v23 = vsub.f32 %v4913_v14, %v881_v16 }
 0x27d   : > { %v5058_v21 = vpop.f32.mrf.mxu2 }
 0x27e   : > { %v1442_v20 = vsel %vm854_vm1, %v5058_v21, -inf }
 0x27f   : > { %1443 = vmax.xlane.f32.xlu2 %v1442_v20 }
 0x281   : > { %3548 = vmatmul.msk.bf16.vlgmr.msra.gmra.mxu3 %vm723_vm0, %v4838_v40  ;;  %v931_v40 = vmul.f32 1.442695, %v909_v42 }
 0x282   : > { %3563 = vmatmul.msk.bf16.gmra.mxu2 %vm723_vm0, %v4784_v28  ;;  %v5076_v28 = vpop.eup %3754 }
 0x283   : > { %3756 = vpow2.f32 %v931_v40  ;;  %v966_v2 = vsel %vm854_vm1, %v5076_v28, 0.0 }
 0x284   : > { %3758 = vpow2.f32 %v933_v56 }
 0x285   : > { %v5070_v51 = vpop.f32.mrf.mxu2 }
 0x286   : > { %v1445_v11 = vsel %vm854_vm1, %v5070_v51, -inf }
 0x287   : > { %1446 = vmax.xlane.f32.xlu0 %v1445_v11  ;;  %964 = vadd.xlane.f32.xlu2 %v963_v32 }
 0x289   : > { %v5086_v8 = vpop.eup %3756 }
 0x28a   : > { %v5088_v41 = vpop.eup %3758  ;;  %v969_v53 = vsel %vm854_vm1, %v5086_v8, 0.0 }
 0x28b   : > { %v972_v22 = vsel %vm854_vm1, %v5088_v41, 0.0 }
 0x28d   : > { %v5078_v49 = vpop.f32.mrf.mxu2 }
 0x28e   : > { %v1448_v43 = vsel %vm854_vm1, %v5078_v49, -inf }
 0x28f   : > { %967 = vadd.xlane.f32.xlu0 %v966_v2  ;;  %1449 = vmax.xlane.f32.xlu2 %v1448_v43  ;;  %v890_v37 = vpop.xlane.xlu0 %889 }
 0x290   : > { %v914_v16 = vsub.f32 %v4939_v26, %v890_v37 }
 0x291   : > { %3549 = vmatmul.msk.bf16.gmra.mxu3 %vm723_vm0, %v4917_v1  ;;  %v884_v1 = vpop.xlane.xlu2 %883 }
 0x292   : > { %v912_v38 = vsub.f32 %v4923_v59, %v884_v1 }
 0x294   : > { %v937_v7 = vmul.f32 1.442695, %v912_v38 }
 0x295   : > { %v5094_v29 = vpop.f32.mrf.mxu2 }
 0x296   : > { %v1975_v63 = vsel %vm854_vm1, %v5094_v29, -inf }
 0x297   : > { %970 = vadd.xlane.f32.xlu0 %v969_v53  ;;  %973 = vadd.xlane.f32.xlu2 %v972_v22 }
 0x299   : > { %v887_v12 = vpop.xlane.xlu2 %886 }
 0x29a   : > { %v913_v32 = vsub.f32 %v4931_v17, %v887_v12 }
 0x29c   : > { %v939_v22 = vmul.f32 1.442695, %v913_v32 }
 0x29d   : > { %v5102_v50 = vpop.f32.mrf.mxu2 }
 0x29f   : > { %1976 = vmax.xlane.f32.xlu0 %v1975_v63  ;;  %v5128_v3 = vpop.xlane.xlu0 %895 }
 0x2a1   : > { %3550 = vmatmul.msk.bf16.gmra.mxu3 %vm723_vm0, %v4880_v54  ;;  %v5111_v57 = vpop.xlane.xlu2 %892  ;;  %v935_v54 = vmul.f32 1.442695, %v911_v23 }
 0x2a3   : > { %3760 = vpow2.f32 %v935_v54 }
 0x2a4   : > { %3762 = vpow2.f32 %v937_v7 }
 0x2a9   : > { %v5122_v5 = vpop.xlane.xlu2 %898  ;;  %v5126_v13 = vpop.eup %3760 }
 0x2aa   : > { %v975_v31 = vsel %vm854_vm1, %v5126_v13, 0.0  ;;  %v5144_v11 = vpop.eup %3762 }
 0x2ab   : > { %v978_v53 = vsel %vm854_vm1, %v5144_v11, 0.0 }
 0x2b1   : > { %3551 = vmatmul.msk.bf16.gmra.mxu3 %vm723_vm0, %v4927_v10  ;;  %v5113_v10 = vpop.f32.mrf.mxu2 }
 0x2b2   : > { %v1981_v35 = vsel %vm854_vm1, %v5113_v10, -inf }
 0x2b9   : > { %v5132_v59 = vpop.f32.mrf.mxu2 }
 0x2c1   : > { %3564 = vmatmul.msk.bf16.vlgmr.msrb.gmra.mxu3 %vm723_vm0, %v4864_v15  ;;  %v1978_v15 = vsel %vm854_vm1, %v5102_v50, -inf  ;;  %v5149_v56 = vpop.f32.mrf.mxu2 }
 0x2c4   : > { %v5107_v45 = vpop.f32.mrf.mxu3 }
 0x2c5   : > { %v1451_v48 = vsel %vm854_vm1, %v5107_v45, -inf }
 0x2c6   : > { %1452 = vmax.xlane.f32.xlu1 %v1451_v48  ;;  %v1984_v48 = vsel %vm854_vm1, %v5132_v59, -inf }
 0x2ca   : > { %v5142_v42 = vpop.xlane.xlu0 %1428 }
 0x2cc   : > { %v5115_v6 = vpop.f32.mrf.mxu3 }
 0x2cd   : > { %v1454_v14 = vsel %vm854_vm1, %v5115_v6, -inf }
 0x2ce   : > { %1979 = vmax.xlane.f32.xlu1 %v1978_v15  ;;  %1455 = vmax.xlane.f32.xlu2 %v1454_v14  ;;  %v941_v15 = vmul.f32 1.442695, %v914_v16 }
 0x2d1   : > { %3565 = vmatmul.msk.bf16.gmra.mxu3 %vm723_vm0, %v4925_v33  ;;  %v5140_v33 = vpop.xlane.xlu2 %901 }
 0x2d2   : > { %v5130_v20 = vpop.xlane.xlu1 %1431 }
 0x2d4   : > { %v5134_v39 = vpop.f32.mrf.mxu3 }
 0x2d5   : > { %v1457_v2 = vsel %vm854_vm1, %v5134_v39, -inf }
 0x2d6   : > { %976 = vadd.xlane.f32.xlu1 %v975_v31  ;;  %1982 = vmax.xlane.f32.xlu2 %v1981_v35 }
 0x2da   : > { %v953_v61 = vpop.xlane.xlu1 %952  ;;  %v5157_v63 = vpop.xlane.xlu2 %1434 }
 0x2db   : > { %3764 = vrcp.f32 %v953_v61  ;;  %v915_v61 = vsub.f32 %v4945_v36, %v5111_v57 }
 0x2dc   : > { %v5147_v40 = vpop.f32.mrf.mxu3 }
 0x2dd   : > { %v1460_v43 = vsel %vm854_vm1, %v5147_v40, -inf }
 0x2de   : > { %1458 = vmax.xlane.f32.xlu1 %v1457_v2  ;;  %1461 = vmax.xlane.f32.xlu0 %v1460_v43  ;;  %v1987_v43 = vsel %vm854_vm1, %v5149_v56, -inf }
 0x2df   : > { %979 = vadd.xlane.f32.xlu2 %v978_v53 }
 0x2e1   : > { %3566 = vmatmul.msk.bf16.gmra.mxu3 %vm723_vm0, %v4943_v18  ;;  %v3765_v12 = vpop.eup %3764  ;;  %v5171_v18 = vpop.f32.mrf.mxu2 }
 0x2e2   : > { %v956_v17 = vpop.xlane.xlu1 %955  ;;  %v5161_v1 = vpop.xlane.xlu0 %1437  ;;  %v1015_v38 = vmul.f32 %v3765_v12, %v5021_v60 }
 0x2e3   : > { %3766 = vrcp.f32 %v956_v17  ;;  %v959_v37 = vpop.xlane.xlu2 %958 }
 0x2e4   : > { %3768 = vpow2.f32 %v939_v22  ;;  %v5164_v23 = vpop.f32.mrf.mxu3  ;;  %v1031_v31 = vpack.c.bf16 %v1015_v38, %v1015_v38  ;;  %v943_v22 = vmul.f32 1.442695, %v915_v61  ;;  %v918_v38 = vsub.f32 %v4970_v52, %v5140_v33 }
 0x2e5   : > { %v1463_v54 = vsel %vm854_vm1, %v5164_v23, -inf }
 0x2e6   : > { %1985 = vmax.xlane.f32.xlu1 %v1984_v48  ;;  %1464 = vmax.xlane.f32.xlu0 %v1463_v54  ;;  %v916_v54 = vsub.f32 %v4954_v27, %v5128_v3  ;;  %v949_v52 = vmul.f32 1.442695, %v918_v38 }
 0x2e8   : > { %v945_v27 = vmul.f32 1.442695, %v916_v54 }
 0x2e9   : > { %v3767_v14 = vpop.eup %3766  ;;  %v5184_v16 = vpop.f32.mrf.mxu2 }
 0x2ea   : > { %v5173_v7 = vpop.eup %3768  ;;  %v1016_v26 = vmul.f32 %v3767_v14, %v5031_v62  ;;  %v962_v35 = vpop.xlane.xlu0 %961  ;;  %v1055_v62 = vunpack.c.l.b16 %v1031_v31  ;;  %v1993_v38 = vsel %vm854_vm1, %v5184_v16, -inf }
 0x2eb   : > { %3770 = vrcp.f32 %v962_v35  ;;  %v981_v2 = vsel %vm854_vm1, %v5173_v7, 0.0 }
 0x2ec   : > { %3772 = vpow2.f32 %v941_v15  ;;  %v1032_v32 = vpack.c.bf16 %v1016_v26, %v1016_v26  ;;  %v5178_v60 = vpop.f32.mrf.mxu3 }
 0x2ed   : > { %3774 = vrcp.f32 %v959_v37  ;;  %v1466_v31 = vsel %vm854_vm1, %v5178_v60, -inf }
 0x2ee   : > { %982 = vadd.xlane.f32.xlu1 %v981_v2  ;;  %1988 = vmax.xlane.f32.xlu0 %v1987_v43  ;;  %v1056_v53 = vunpack.c.l.b16 %v1032_v32  ;;  %3776 = vpow2.f32 %v943_v22  ;;  %v1990_v43 = vsel %vm854_vm1, %v5171_v18, -inf }
 0x2ef   : > { %3778 = vpow2.f32 %v945_v27 }
 0x2f0   : > { %v1063_v17 = vpack.c.b16 %v1056_v53, %v1055_v62  ;;  %3780 = vpow2.f32 %v949_v52 }
 0x2f1   : > { %v3771_v12 = vpop.eup %3770  ;;  %3567 = vmatmul.msk.bf16.gmra.mxu3 %vm723_vm0, %v5002_v9  ;;  %v5213_v61 = vpop.f32.mrf.mxu2 }
 0x2f2   : > { %v5188_v36 = vpop.eup %3772  ;;  %3520 = vmatmul.msk.bf16.vlgmr.msrb.gmra.mxu0 %vm854_vm1, %v1063_v17  ;;  %v5191_v57 = vpop.xlane.xlu2 %1443  ;;  %v1018_v9 = vmul.f32 %v3771_v12, %v5048_v30  ;;  %v1475_v17 = vsub.f32 %v5000_v25, %v5142_v42 }
 0x2f3   : > { %v3775_v48 = vpop.eup %3774  ;;  %2215 = vmatpush.bf16.msrb.mxu0 %v4821_v47  ;;  %v984_v14 = vsel %vm854_vm1, %v5188_v36, 0.0 }
 0x2f4   : > { %v5198_v15 = vpop.f32.mrf.mxu3  ;;  %v1017_v47 = vmul.f32 %v3775_v48, %v5034_v46  ;;  %v1034_v3 = vpack.c.bf16 %v1018_v9, %v1018_v9  ;;  %v5209_v30 = vpop.eup %3776  ;;  %v917_v46 = vsub.f32 %v4962_v0, %v5122_v5 }
 0x2f5   : > { %v1469_v26 = vsel %vm854_vm1, %v5198_v15, -inf  ;;  %v987_v2 = vsel %vm854_vm1, %v5209_v30, 0.0  ;;  %v5228_v22 = vpop.eup %3778 }
 0x2f6   : > { %985 = vadd.xlane.f32.xlu0 %v984_v14  ;;  %1467 = vmax.xlane.f32.xlu1 %v1466_v31  ;;  %v1033_v35 = vpack.c.bf16 %v1017_v47, %v1017_v47  ;;  %v1058_v32 = vunpack.c.l.b16 %v1034_v3  ;;  %v947_v0 = vmul.f32 1.442695, %v917_v46  ;;  %v990_v9 = vsel %vm854_vm1, %v5228_v22, 0.0 }
 0x2f7   : > { %2216 = vmatpush.bf16.msrb.mxu0 %v4768_v24  ;;  %1470 = vmax.xlane.f32.xlu2 %v1469_v26  ;;  %v1476_v24 = vsub.f32 %v5010_v4, %v5130_v20  ;;  %v5230_v20 = vpop.eup %3780  ;;  %v1491_v14 = vmul.f32 1.442695, %v1475_v17  ;;  %v1478_v46 = vsub.f32 %v5036_v58, %v5161_v1 }
 0x2f8   : > { %v1057_v62 = vunpack.c.l.b16 %v1033_v35  ;;  %v996_v25 = vsel %vm854_vm1, %v5230_v20, 0.0 }
 0x2f9   : > { %v1493_v4 = vmul.f32 1.442695, %v1476_v24 }
 0x2fa   : > { %v5211_v33 = vpop.xlane.xlu0 %1446  ;;  %v965_v37 = vpop.xlane.xlu2 %964  ;;  %v1064_v5 = vpack.c.b16 %v1058_v32, %v1057_v62  ;;  %v1497_v62 = vmul.f32 1.442695, %v1478_v46 }
 0x2fb   : > { %2217 = vmatpush.bf16.msrb.mxu0 %v4989_v19  ;;  %3782 = vrcp.f32 %v965_v37  ;;  %v1996_v19 = vsel %vm854_vm1, %v5213_v61, -inf }
 0x2fc   : > { %v5226_v53 = vpop.f32.mrf.mxu3 }
 0x2fd   : > { %v1472_v24 = vsel %vm854_vm1, %v5226_v53, -inf }
 0x2fe   : > { %988 = vadd.xlane.f32.xlu0 %v987_v2  ;;  %1991 = vmax.xlane.f32.xlu1 %v1990_v43 }
 0x2ff   : > { %1997 = vmax.xlane.f32.xlu2 %v1996_v19 }
 0x301   : > { %v3783_v54 = vpop.eup %3782 }
 0x302   : > { %v968_v12 = vpop.xlane.xlu0 %967  ;;  %3521 = vmatmul.msk.bf16.gmra.mxu0 %vm854_vm1, %v1064_v5  ;;  %v5235_v48 = vpop.xlane.xlu2 %1449  ;;  %v1019_v42 = vmul.f32 %v3783_v54, %v5066_v55 }
 0x303   : > { %3784 = vrcp.f32 %v968_v12 }
 0x304   : > { %3786 = vpow2.f32 %v947_v0  ;;  %v5244_v26 = vpop.f32.mrf.mxu3  ;;  %v1035_v37 = vpack.c.bf16 %v1019_v42, %v1019_v42  ;;  %v1441_v0 = vpop.xlane.xlu1 %1440 }
 0x305   : > { %3788 = vpow2.f32 %v1493_v4  ;;  %v5261_v4 = vpop.f32.mrf.mxu2  ;;  %v1479_v12 = vsub.f32 %v5051_v44, %v1441_v0 }
 0x306   : > { %1994 = vmax.xlane.f32.xlu0 %v1993_v38  ;;  %991 = vadd.xlane.f32.xlu1 %v990_v9  ;;  %3790 = vpow2.f32 %v1491_v14  ;;  %v1059_v2 = vunpack.c.l.b16 %v1035_v37  ;;  %v2523_v9 = vsel %vm854_vm1, %v5261_v4, -inf  ;;  %v1999_v37 = vsel %vm854_vm1, %v5244_v26, -inf }
 0x307   : > { %997 = vadd.xlane.f32.xlu2 %v996_v25  ;;  %v1499_v42 = vmul.f32 1.442695, %v1479_v12 }
 0x309   : > { %v3785_v31 = vpop.eup %3784 }
 0x30a   : > { %v5246_v47 = vpop.eup %3786  ;;  %v971_v27 = vpop.xlane.xlu0 %970  ;;  %v1020_v3 = vmul.f32 %v3785_v31, %v5076_v28 }
 0x30b   : > { %v974_v52 = vpop.xlane.xlu2 %973  ;;  %v5249_v35 = vpop.eup %3788  ;;  %3792 = vrcp.f32 %v971_v27  ;;  %v993_v32 = vsel %vm854_vm1, %v5246_v47, 0.0 }
 0x30c   : > { %3794 = vrcp.f32 %v974_v52  ;;  %v1036_v55 = vpack.c.bf16 %v1020_v3, %v1020_v3  ;;  %v1526_v28 = vsel %vm854_vm1, %v5249_v35, 0.0  ;;  %v5259_v19 = vpop.eup %3790  ;;  %v5264_v17 = vpop.f32.mrf.mxu3 }
 0x30d   : > { %3796 = vpow2.f32 %v1497_v62  ;;  %v1523_v14 = vsel %vm854_vm1, %v5259_v19, 0.0  ;;  %v2002_v25 = vsel %vm854_vm1, %v5264_v17, -inf  ;;  %v1481_v62 = vsub.f32 %v5070_v51, %v5211_v33  ;;  %v6034_v33 = vld [vmem:[#allocation15_spill] sm:$0xff] }
 0x30e   : > { %994 = vadd.xlane.f32.xlu0 %v993_v32  ;;  %1473 = vmax.xlane.f32.xlu1 %v1472_v24  ;;  %v1060_v43 = vunpack.c.l.b16 %v1036_v55  ;;  %3798 = vpow2.f32 %v1499_v42  ;;  %v5285_v24 = vpop.f32.mrf.mxu2 }
 0x30f   : > { %1527 = vadd.xlane.f32.xlu2 %v1526_v28  ;;  %v2526_v28 = vsel %vm854_vm1, %v5285_v24, -inf }
 0x310   : > { %v1065_v58 = vpack.c.b16 %v1060_v43, %v1059_v2 }
 0x311   : > { %v3793_v1 = vpop.eup %3792 }
 0x312   : > { %v3795_v5 = vpop.eup %3794  ;;  %3522 = vmatmul.msk.bf16.gmra.mxu0 %vm854_vm1, %v1065_v58  ;;  %v1021_v54 = vmul.f32 %v3793_v1, %v5086_v8  ;;  %v1477_v8 = vsub.f32 %v5025_v34, %v5157_v63  ;;  %v1480_v34 = vsub.f32 %v5058_v21, %v5191_v57  ;;  %v6033_v21 = vld [vmem:[#allocation22_spill] sm:$0xff]  ;;  %v1503_v57 = vmul.f32 1.442695, %v1481_v62  ;;  %v1977_v42 = vpop.xlane.xlu0 %1976 }
 0x313   : > { %v1022_v38 = vmul.f32 %v3795_v5, %v5088_v41  ;;  %v5275_v44 = vpop.eup %3796 }
 0x314   : > { %v1037_v31 = vpack.c.bf16 %v1021_v54, %v1021_v54  ;;  %v1532_v3 = vsel %vm854_vm1, %v5275_v44, 0.0  ;;  %v1495_v46 = vmul.f32 1.442695, %v1477_v8  ;;  %v5283_v32 = vpop.eup %3798  ;;  %v1501_v2 = vmul.f32 1.442695, %v1480_v34 }
 0x315   : > { %v1038_v27 = vpack.c.bf16 %v1022_v38, %v1022_v38  ;;  %v1535_v63 = vsel %vm854_vm1, %v5283_v32, 0.0  ;;  %v2023_v8 = vsub.f32 %v5094_v29, %v1977_v42  ;;  %v1482_v34 = vsub.f32 %v5078_v49, %v5235_v48 }
 0x316   : > { %2524 = vmax.xlane.f32.xlu0 %v2523_v9  ;;  %1524 = vadd.xlane.f32.xlu1 %v1523_v14  ;;  %v1061_v41 = vunpack.c.l.b16 %v1037_v31  ;;  %3800 = vpow2.f32 %v1495_v46 }
 0x317   : > { %2003 = vmax.xlane.f32.xlu2 %v2002_v25  ;;  %v1062_v52 = vunpack.c.l.b16 %v1038_v27  ;;  %3802 = vpow2.f32 %v1501_v2 }
 0x318   : > { %3804 = vpow2.f32 %v1503_v57  ;;  %v1505_v57 = vmul.f32 1.442695, %v1482_v34 }
 0x319   : > { %v1066_v55 = vpack.c.b16 %v1062_v52, %v1061_v41 }
 0x31c   : > { %v5294_v43 = vpop.eup %3800 }
 0x31d   : > { %v1529_v58 = vsel %vm854_vm1, %v5294_v43, 0.0  ;;  %v5302_v1 = vpop.eup %3802 }
 0x31e   : > { %1533 = vadd.xlane.f32.xlu0 %v1532_v3  ;;  %2000 = vmax.xlane.f32.xlu1 %v1999_v37  ;;  %v1538_v0 = vsel %vm854_vm1, %v5302_v1, 0.0  ;;  %v5306_v12 = vpop.eup %3804  ;;  %v2039_v3 = vmul.f32 1.442695, %v2023_v8 }
 0x31f   : > { %v1541_v38 = vsel %vm854_vm1, %v5306_v12, 0.0 }
 0x322   : > { %3523 = vmatmul.msk.bf16.gmra.mxu0 %vm854_vm1, %v1066_v55 }
 0x326   : > { %1536 = vadd.xlane.f32.xlu0 %v1535_v63  ;;  %2527 = vmax.xlane.f32.xlu1 %v2526_v28 }
 0x32e   : > { %1530 = vadd.xlane.f32.xlu1 %v1529_v58 }
 0x32f   : > { %1712 = vrot.lane.b32.xlu2 %v6033_v21, %s4206_s29 }
 0x336   : > { %1539 = vadd.xlane.f32.xlu1 %v1538_v0 }
 0x339   : > { %v1453_v5 = vpop.xlane.xlu1 %1452 }
 0x33a   : > { %v1483_v51 = vsub.f32 %v5107_v45, %v1453_v5  ;;  %2187 = vrot.lane.b32.xlu0 %v6034_v33, %s4205_s24 }
 0x33c   : > { %v1507_v54 = vmul.f32 1.442695, %v1483_v51 }
 0x33e   : > { %3806 = vpow2.f32 %v1507_v54  ;;  %1542 = vadd.xlane.f32.xlu1 %v1541_v38 }
 0x341   : > { %v1980_v9 = vpop.xlane.xlu1 %1979  ;;  %v1456_v14 = vpop.xlane.xlu2 %1455 }
 0x342   : > { %v2024_v25 = vsub.f32 %v5102_v50, %v1980_v9  ;;  %v1484_v54 = vsub.f32 %v5115_v6, %v1456_v14 }
 0x344   : > { %v5314_v31 = vpop.eup %3806  ;;  %v2041_v27 = vmul.f32 1.442695, %v2024_v25 }
 0x345   : > { %v1547_v45 = vsel %vm854_vm1, %v5314_v31, 0.0 }
 0x346   : > { %3808 = vpow2.f32 %v2041_v27  ;;  %1548 = vadd.xlane.f32.xlu1 %v1547_v45  ;;  %v1509_v45 = vmul.f32 1.442695, %v1484_v54 }
 0x349   : > { %v977_v41 = vpop.xlane.xlu1 %976  ;;  %v1983_v52 = vpop.xlane.xlu2 %1982 }
 0x34a   : > { %3810 = vrcp.f32 %v977_v41  ;;  %v2025_v62 = vsub.f32 %v5113_v10, %v1983_v52 }
 0x34b   : > { %3812 = vpow2.f32 %v2039_v3 }
 0x34c   : > { %v5319_v37 = vpop.eup %3808  ;;  %v2043_v51 = vmul.f32 1.442695, %v2025_v62 }
 0x34d   : > { %v2074_v50 = vsel %vm854_vm1, %v5319_v37, 0.0 }
 0x34e   : > { %2075 = vadd.xlane.f32.xlu1 %v2074_v50 }
 0x350   : > { %v3811_v28 = vpop.eup %3810 }
 0x351   : > { %v1459_v46 = vpop.xlane.xlu1 %1458  ;;  %v1462_v55 = vpop.xlane.xlu0 %1461  ;;  %v1023_v0 = vmul.f32 %v3811_v28, %v5126_v13 }
 0x352   : > { %v1485_v29 = vsub.f32 %v5134_v39, %v1459_v46  ;;  %v980_v63 = vpop.xlane.xlu2 %979  ;;  %v5326_v2 = vpop.eup %3812  ;;  %v1486_v9 = vsub.f32 %v5147_v40, %v1462_v55 }
 0x353   : > { %3814 = vrcp.f32 %v980_v63  ;;  %v2071_v5 = vsel %vm854_vm1, %v5326_v2, 0.0  ;;  %v1039_v38 = vpack.c.bf16 %v1023_v0, %v1023_v0  ;;  %v5339_v13 = vpop.f32.mrf.mxu3 }
 0x354   : > { %v1511_v58 = vmul.f32 1.442695, %v1485_v29  ;;  %v1513_v52 = vmul.f32 1.442695, %v1486_v9  ;;  %v2005_v6 = vsel %vm854_vm1, %v5339_v13, -inf }
 0x355   : > { %v1140_v41 = vunpack.c.l.b16 %v1039_v38 }
 0x356   : > { %3816 = vpow2.f32 %v1511_v58 }
 0x357   : > { %3818 = vpow2.f32 %v1505_v57 }
 0x358   : > { %2072 = vadd.xlane.f32.xlu2 %v2071_v5  ;;  %3820 = vpow2.f32 %v2043_v51 }
 0x359   : > { %v3815_v49 = vpop.eup %3814  ;;  %v1986_v48 = vpop.xlane.xlu1 %1985  ;;  %3822 = vpow2.f32 %v1509_v45 }
 0x35a   : > { %v5332_v39 = vpop.xlane.xlu0 %1464  ;;  %v1024_v10 = vmul.f32 %v3815_v49, %v5144_v11  ;;  %v2026_v14 = vsub.f32 %v5132_v59, %v1986_v48  ;;  %3824 = vpow2.f32 %v1513_v52  ;;  %v5357_v59 = vpop.f32.mrf.mxu2 }
 0x35b   : > { %v5366_v49 = vpop.f32.mrf.mxu3 }
 0x35c   : > { %v5337_v25 = vpop.eup %3816  ;;  %v1040_v42 = vpack.c.bf16 %v1024_v10, %v1024_v10  ;;  %v2045_v34 = vmul.f32 1.442695, %v2026_v14  ;;  %v2008_v14 = vsel %vm854_vm1, %v5366_v49, -inf }
 0x35d   : > { %v1553_v27 = vsel %vm854_vm1, %v5337_v25, 0.0  ;;  %v5345_v11 = vpop.eup %3818 }
 0x35e   : > { %v1141_v8 = vunpack.c.l.b16 %v1040_v42  ;;  %1554 = vadd.xlane.f32.xlu1 %v1553_v27  ;;  %v5348_v46 = vpop.eup %3820  ;;  %v1544_v55 = vsel %vm854_vm1, %v5345_v11, 0.0 }
 0x35f   : > { %v2077_v29 = vsel %vm854_vm1, %v5348_v46, 0.0  ;;  %v5355_v63 = vpop.eup %3822 }
 0x360   : > { %2006 = vmax.xlane.f32.xlu2 %v2005_v6  ;;  %v1148_v40 = vpack.c.b16 %v1141_v8, %v1140_v41  ;;  %v5359_v28 = vpop.eup %3824  ;;  %v1550_v51 = vsel %vm854_vm1, %v5355_v63, 0.0 }
 0x361   : > { %v983_v3 = vpop.xlane.xlu1 %982  ;;  %v1556_v48 = vsel %vm854_vm1, %v5359_v28, 0.0 }
 0x362   : > { %v1989_v50 = vpop.xlane.xlu0 %1988  ;;  %3524 = vmatmul.msk.bf16.vlgmr.msrb.gmra.mxu1 %vm854_vm1, %v1148_v40  ;;  %3826 = vrcp.f32 %v983_v3  ;;  %v5374_v8 = vpop.f32.mrf.mxu2 }
 0x363   : > { %3828 = vpow2.f32 %v2045_v34  ;;  %v2027_v0 = vsub.f32 %v5149_v56, %v1989_v50 }
 0x364   : > { %1545 = vadd.xlane.f32.xlu0 %v1544_v55 }
 0x365   : > { %v2047_v38 = vmul.f32 1.442695, %v2027_v0 }
 0x366   : > { %2078 = vadd.xlane.f32.xlu1 %v2077_v29 }
 0x368   : > { %v3827_v57 = vpop.eup %3826 }
 0x369   : > { %v5361_v58 = vpop.xlane.xlu1 %1467  ;;  %v1025_v54 = vmul.f32 %v3827_v57, %v5173_v7  ;;  %v5371_v10 = vpop.eup %3828 }
 0x36a   : > { %v986_v62 = vpop.xlane.xlu0 %985  ;;  %v1471_v5 = vpop.xlane.xlu2 %1470  ;;  %v2080_v6 = vsel %vm854_vm1, %v5371_v10, 0.0 }
 0x36b   : > { %3830 = vrcp.f32 %v986_v62  ;;  %v1041_v45 = vpack.c.bf16 %v1025_v54, %v1025_v54  ;;  %v1489_v29 = vsub.f32 %v5198_v15, %v1471_v5 }
 0x36c   : > { %1551 = vadd.xlane.f32.xlu0 %v1550_v51  ;;  %3832 = vpow2.f32 %v2047_v38  ;;  %v5395_v38 = vpop.f32.mrf.mxu2 }
 0x36d   : > { %v1142_v3 = vunpack.c.l.b16 %v1041_v45 }
 0x36e   : > { %1557 = vadd.xlane.f32.xlu1 %v1556_v48 }
 0x371   : > { %v3831_v9 = vpop.eup %3830  ;;  %v1992_v56 = vpop.xlane.xlu1 %1991 }
 0x372   : > { %v989_v42 = vpop.xlane.xlu0 %988  ;;  %v1026_v27 = vmul.f32 %v3831_v9, %v5188_v36  ;;  %v2028_v41 = vsub.f32 %v5171_v18, %v1992_v56  ;;  %v1998_v52 = vpop.xlane.xlu2 %1997  ;;  %v1487_v18 = vsub.f32 %v5164_v23, %v5332_v39  ;;  %v1519_v23 = vmul.f32 1.442695, %v1489_v29 }
 0x373   : > { %3834 = vrcp.f32 %v989_v42  ;;  %v5381_v36 = vpop.f32.mrf.mxu3  ;;  %v5383_v34 = vpop.eup %3832  ;;  %v2529_v39 = vsel %vm854_vm1, %v5357_v59, -inf }
 0x374   : > { %v1042_v7 = vpack.c.bf16 %v1026_v27, %v1026_v27  ;;  %v2049_v40 = vmul.f32 1.442695, %v2028_v41  ;;  %2081 = vadd.xlane.f32.xlu0 %v2080_v6  ;;  %v2083_v48 = vsel %vm854_vm1, %v5383_v34, 0.0  ;;  %v1515_v9 = vmul.f32 1.442695, %v1487_v18 }
 0x375   : > { %v2030_v27 = vsub.f32 %v5213_v61, %v1998_v52  ;;  %v2532_v61 = vsel %vm854_vm1, %v5374_v8, -inf  ;;  %v2535_v52 = vsel %vm854_vm1, %v5395_v38, -inf }
 0x376   : > { %v1143_v50 = vunpack.c.l.b16 %v1042_v7  ;;  %3836 = vpow2.f32 %v2049_v40  ;;  %2009 = vmax.xlane.f32.xlu1 %v2008_v14 }
 0x378   : > { %v1149_v55 = vpack.c.b16 %v1143_v50, %v1142_v3  ;;  %v1488_v50 = vsub.f32 %v5178_v60, %v5361_v58 }
 0x379   : > { %v992_v57 = vpop.xlane.xlu1 %991  ;;  %v3835_v0 = vpop.eup %3834 }
 0x37a   : > { %v5388_v62 = vpop.xlane.xlu0 %1994  ;;  %3525 = vmatmul.msk.bf16.gmra.mxu1 %vm854_vm1, %v1149_v55  ;;  %3838 = vrcp.f32 %v992_v57  ;;  %v998_v51 = vpop.xlane.xlu2 %997  ;;  %v1027_v5 = vmul.f32 %v3835_v0, %v5209_v30 }
 0x37b   : > { %v5402_v56 = vpop.f32.mrf.mxu3  ;;  %3840 = vpow2.f32 %v1515_v9  ;;  %v5417_v57 = vpop.f32.mrf.mxu2 }
 0x37c   : > { %v5393_v54 = vpop.eup %3836  ;;  %2084 = vadd.xlane.f32.xlu0 %v2083_v48  ;;  %3842 = vpow2.f32 %v1519_v23  ;;  %v1043_v7 = vpack.c.bf16 %v1027_v5, %v1027_v5  ;;  %v2014_v30 = vsel %vm854_vm1, %v5402_v56, -inf }
 0x37d   : > { %v2086_v15 = vsel %vm854_vm1, %v5393_v54, 0.0 }
 0x37e   : > { %2087 = vadd.xlane.f32.xlu2 %v2086_v15  ;;  %2530 = vmax.xlane.f32.xlu1 %v2529_v39 }
 0x380   : > { %v3839_v42 = vpop.eup %3838 }
 0x381   : > { %v1474_v41 = vpop.xlane.xlu1 %1473  ;;  %v1028_v6 = vmul.f32 %v3839_v42, %v5228_v22  ;;  %v2053_v22 = vmul.f32 1.442695, %v2030_v27  ;;  %v5415_v29 = vpop.eup %3840 }
 0x382   : > { %v995_v45 = vpop.xlane.xlu0 %994  ;;  %v1490_v40 = vsub.f32 %v5226_v53, %v1474_v41  ;;  %v1528_v14 = vpop.xlane.xlu2 %1527  ;;  %v1144_v53 = vunpack.c.l.b16 %v1043_v7  ;;  %v1559_v41 = vsel %vm854_vm1, %v5415_v29, 0.0 }
 0x383   : > { %3844 = vrcp.f32 %v995_v45  ;;  %v1044_v3 = vpack.c.bf16 %v1028_v6, %v1028_v6  ;;  %v5419_v60 = vpop.eup %3842 }
 0x384   : > { %3846 = vrcp.f32 %v998_v51  ;;  %v1521_v55 = vmul.f32 1.442695, %v1490_v40  ;;  %2015 = vmax.xlane.f32.xlu0 %v2014_v30  ;;  %v1517_v51 = vmul.f32 1.442695, %v1488_v50  ;;  %v1565_v39 = vsel %vm854_vm1, %v5419_v60, 0.0  ;;  %v5435_v30 = vpop.f32.mrf.mxu2 }
 0x385   : > { %3848 = vrcp.f32 %v1528_v14  ;;  %v1145_v18 = vunpack.c.l.b16 %v1044_v3  ;;  %v5437_v3 = vpop.f32.mrf.mxu3 }
 0x386   : > { %3850 = vpow2.f32 %v1521_v55  ;;  %2536 = vmax.xlane.f32.xlu2 %v2535_v52  ;;  %2533 = vmax.xlane.f32.xlu1 %v2532_v61 }
 0x387   : > { %v1150_v58 = vpack.c.b16 %v1145_v18, %v1144_v53  ;;  %3852 = vpow2.f32 %v2053_v22 }
 0x389   : > { %v3845_v0 = vpop.eup %3844  ;;  %v1525_v9 = vpop.xlane.xlu1 %1524 }
 0x38a   : > { %v3847_v48 = vpop.eup %3846  ;;  %3526 = vmatmul.msk.bf16.gmra.mxu1 %vm854_vm1, %v1150_v58  ;;  %3854 = vrcp.f32 %v1525_v9  ;;  %v2004_v15 = vpop.xlane.xlu2 %2003  ;;  %v1029_v5 = vmul.f32 %v3845_v0, %v5246_v47 }
 0x38b   : > { %v3849_v23 = vpop.eup %3848  ;;  %3856 = vpow2.f32 %v1517_v51  ;;  %v1030_v6 = vmul.f32 %v3847_v48, %v5230_v20  ;;  %v2525_v40 = vpop.xlane.xlu0 %2524  ;;  %v2032_v20 = vsub.f32 %v5264_v17, %v2004_v15 }
 0x38c   : > { %v5425_v42 = vpop.eup %3850  ;;  %1566 = vadd.xlane.f32.xlu0 %v1565_v39  ;;  %v1588_v27 = vmul.f32 %v3849_v23, %v5249_v35  ;;  %v1045_v47 = vpack.c.bf16 %v1029_v5, %v1029_v5  ;;  %v2571_v53 = vsub.f32 %v5261_v4, %v2525_v40 }
 0x38d   : > { %v1568_v45 = vsel %vm854_vm1, %v5425_v42, 0.0  ;;  %v5433_v7 = vpop.eup %3852  ;;  %v1046_v61 = vpack.c.bf16 %v1030_v6, %v1030_v6  ;;  %v2057_v17 = vmul.f32 1.442695, %v2032_v20  ;;  %v2029_v6 = vsub.f32 %v5184_v16, %v5388_v62 }
 0x38e   : > { %1569 = vadd.xlane.f32.xlu2 %v1568_v45  ;;  %1560 = vadd.xlane.f32.xlu1 %v1559_v41  ;;  %v1604_v35 = vpack.c.bf16 %v1588_v27, %v1588_v27  ;;  %v2092_v58 = vsel %vm854_vm1, %v5433_v7, 0.0  ;;  %v1146_v0 = vunpack.c.l.b16 %v1045_v47  ;;  %v2587_v4 = vmul.f32 1.442695, %v2571_v53  ;;  %v5454_v45 = vpop.f32.mrf.mxu2 }
 0x38f   : > { %v1147_v23 = vunpack.c.l.b16 %v1046_v61  ;;  %3858 = vpow2.f32 %v2057_v17  ;;  %v2541_v41 = vsel %vm854_vm1, %v5435_v30, -inf  ;;  %v2544_v40 = vsel %vm854_vm1, %v5454_v45, -inf }
 0x390   : > { %v3855_v14 = vpop.eup %3854  ;;  %v1628_v51 = vunpack.c.l.b16 %v1604_v35  ;;  %3860 = vpow2.f32 %v2587_v4  ;;  %v2011_v47 = vsel %vm854_vm1, %v5381_v36, -inf  ;;  %v2051_v35 = vmul.f32 1.442695, %v2029_v6  ;;  %v5483_v6 = vpop.f32.mrf.mxu3 }
 0x391   : > { %v1587_v50 = vmul.f32 %v3855_v14, %v5259_v19  ;;  %v5440_v55 = vpop.xlane.xlu1 %2000  ;;  %v5442_v22 = vpop.eup %3856  ;;  %v2017_v19 = vsel %vm854_vm1, %v5437_v3, -inf  ;;  %v1151_v39 = vpack.c.b16 %v1147_v23, %v1146_v0 }
 0x392   : > { %v1713_v52 = vpop.permute.xlu2 %1712  ;;  %v1562_v9 = vsel %vm854_vm1, %v5442_v22, 0.0 }
 0x393   : > { %v1603_v18 = vpack.c.bf16 %v1587_v50, %v1587_v50  ;;  %1743 = vmatpush.bf16.msra.mxu1 %v1713_v52  ;;  %v1534_v5 = vpop.xlane.xlu0 %1533 }
 0x394   : > { %2093 = vadd.xlane.f32.xlu0 %v2092_v58  ;;  %3862 = vrcp.f32 %v1534_v5 }
 0x395   : > { %v1627_v48 = vunpack.c.l.b16 %v1603_v18  ;;  %v5464_v14 = vpop.eup %3858  ;;  %v2538_v18 = vsel %vm854_vm1, %v5417_v57, -inf }
 0x396   : > { %2018 = vmax.xlane.f32.xlu2 %v2017_v19  ;;  %1563 = vadd.xlane.f32.xlu1 %v1562_v9  ;;  %v5466_v50 = vpop.eup %3860  ;;  %v2098_v16 = vsel %vm854_vm1, %v5464_v14, 0.0 }
 0x397   : > { %v1635_v15 = vpack.c.b16 %v1628_v51, %v1627_v48  ;;  %v2619_v53 = vsel %vm854_vm1, %v5466_v50, 0.0 }
 0x399   : > { %v2528_v27 = vpop.xlane.xlu1 %2527  ;;  %3536 = vmatmul.msk.bf16.vlgmr.msra.gmra.mxu0 %vm854_vm1, %v1635_v15 }
 0x39a   : > { %3527 = vmatmul.msk.bf16.gmra.mxu1 %vm854_vm1, %v1151_v39  ;;  %v3863_v20 = vpop.eup %3862 }
 0x39b   : > { %v1537_v62 = vpop.xlane.xlu0 %1536  ;;  %v1590_v52 = vmul.f32 %v3863_v20, %v5275_v44  ;;  %v2031_v44 = vsub.f32 %v5244_v26, %v5440_v55  ;;  %v2572_v26 = vsub.f32 %v5285_v24, %v2528_v27 }
 0x39c   : > { %2542 = vmax.xlane.f32.xlu0 %v2541_v41 }
 0x39d   : > { %v1606_v0 = vpack.c.bf16 %v1590_v52, %v1590_v52  ;;  %v2589_v20 = vmul.f32 1.442695, %v2572_v26 }
 0x39e   : > { %2545 = vmax.xlane.f32.xlu2 %v2544_v40  ;;  %2012 = vmax.xlane.f32.xlu1 %v2011_v47 }
 0x39f   : > { %v1630_v17 = vunpack.c.l.b16 %v1606_v0 }
 0x3a1   : > { %v1531_v61 = vpop.xlane.xlu1 %1530 }
 0x3a2   : > { %3864 = vrcp.f32 %v1531_v61 }
 0x3a3   : > { %3866 = vpow2.f32 %v2051_v35  ;;  %v2020_v35 = vsel %vm854_vm1, %v5483_v6, -inf }
 0x3a4   : > { %2099 = vadd.xlane.f32.xlu0 %v2098_v16  ;;  %v6035_v16 = vld [vmem:[#allocation17_spill] sm:$0xff] }
 0x3a6   : > { %2620 = vadd.xlane.f32.xlu2 %v2619_v53  ;;  %2539 = vmax.xlane.f32.xlu1 %v2538_v18 }
 0x3a8   : > { %v3865_v58 = vpop.eup %3864 }
 0x3a9   : > { %v1589_v19 = vmul.f32 %v3865_v58, %v5294_v43  ;;  %v1540_v51 = vpop.xlane.xlu1 %1539  ;;  %v5476_v48 = vpop.eup %3866  ;;  %v2055_v43 = vmul.f32 1.442695, %v2031_v44  ;;  %v6037_v58 = vld [vmem:[#allocation18_spill] sm:$0xff]  ;;  %v6039_v44 = vld [vmem:[#allocation20_spill] sm:$0xff] }
 0x3aa   : > { %3868 = vrcp.f32 %v1540_v51  ;;  %v2089_v15 = vsel %vm854_vm1, %v5476_v48, 0.0  ;;  %v6038_v51 = vld [vmem:[#allocation21_spill] sm:$0xff] }
 0x3ab   : > { %v1605_v9 = vpack.c.bf16 %v1589_v19, %v1589_v19  ;;  %3870 = vrcp.f32 %v1537_v62 }
 0x3ac   : > { %v2188_v23 = vpop.permute.xlu0 %2187  ;;  %3872 = vpow2.f32 %v2055_v43 }
 0x3ad   : > { %v1629_v4 = vunpack.c.l.b16 %v1605_v9  ;;  %2218 = vmatpush.bf16.msrb.mxu0 %v2188_v23  ;;  %3874 = vpow2.f32 %v2589_v20  ;;  %v5507_v9 = vpop.f32.mrf.mxu0 }
 0x3ae   : > { %2090 = vadd.xlane.f32.xlu1 %v2089_v15 }
 0x3af   : > { %v1636_v39 = vpack.c.b16 %v1630_v17, %v1629_v4 }
 0x3b0   : > { %v3869_v5 = vpop.eup %3868 }
 0x3b1   : > { %3537 = vmatmul.msk.bf16.gmra.mxu0 %vm854_vm1, %v1636_v39  ;;  %v3871_v41 = vpop.eup %3870  ;;  %v1592_v40 = vmul.f32 %v3869_v5, %v5302_v1  ;;  %v1543_v47 = vpop.xlane.xlu1 %1542 }
 0x3b2   : > { %v1591_v55 = vmul.f32 %v3871_v41, %v5283_v32  ;;  %v5492_v52 = vpop.eup %3872  ;;  %v6036_v32 = vld [vmem:[#allocation16_spill] sm:$0xff]  ;;  %3876 = vrcp.f32 %v1543_v47 }
 0x3b3   : > { %v1608_v61 = vpack.c.bf16 %v1592_v40, %v1592_v40  ;;  %v2095_v24 = vsel %vm854_vm1, %v5492_v52, 0.0  ;;  %v5501_v0 = vpop.eup %3874 }
 0x3b4   : > { %v1607_v62 = vpack.c.bf16 %v1591_v55, %v1591_v55  ;;  %v2622_v19 = vsel %vm854_vm1, %v5501_v0, 0.0 }
 0x3b5   : > { %v1632_v53 = vunpack.c.l.b16 %v1608_v61  ;;  %v5513_v4 = vpop.f32.mrf.mxu0 }
 0x3b6   : > { %2021 = vmax.xlane.f32.xlu1 %v2020_v35  ;;  %v1631_v1 = vunpack.c.l.b16 %v1607_v62  ;;  %v6040_v35 = vld [vmem:[#allocation19_spill] sm:$0xff] }
 0x3b8   : > { %2266 = vrot.lane.b32.xlu0 %v6035_v16, %s4205_s24  ;;  %v1637_v18 = vpack.c.b16 %v1632_v53, %v1631_v1  ;;  %v3877_v39 = vpop.eup %3876 }
 0x3b9   : > { %v1549_v27 = vpop.xlane.xlu1 %1548  ;;  %v1593_v41 = vmul.f32 %v3877_v39, %v5306_v12 }
 0x3bb   : > { %v1609_v47 = vpack.c.bf16 %v1593_v41, %v1593_v41 }
 0x3bd   : > { %v5517_v43 = vpop.f32.mrf.mxu0  ;;  %v1633_v12 = vunpack.c.l.b16 %v1609_v47 }
 0x3be   : > { %2741 = vrot.lane.b32.xlu2 %v6036_v32, %s4207_s16  ;;  %2096 = vadd.xlane.f32.xlu1 %v2095_v24 }
 0x3c0   : > { %2739 = vrot.lane.b32.xlu0 %v6037_v58, %s4207_s16 }
 0x3c1   : > { %3538 = vmatmul.msk.bf16.gmra.mxu0 %vm854_vm1, %v1637_v18  ;;  %v2076_v23 = vpop.xlane.xlu1 %2075 }
 0x3c6   : > { %2262 = vrot.lane.b32.xlu2 %v6038_v51, %s4205_s24  ;;  %2623 = vadd.xlane.f32.xlu1 %v2622_v19 }
 0x3c8   : > { %2737 = vrot.lane.b32.xlu0 %v6039_v44, %s4207_s16 }
 0x3cb   : > { %v2073_v40 = vpop.xlane.xlu2 %2072 }
 0x3d0   : > { %2260 = vrot.lane.b32.xlu0 %v6033_v21, %s4205_s24 }
 0x3d1   : > { %v1555_v17 = vpop.xlane.xlu1 %1554 }
 0x3d3   : > { %v2007_v39 = vpop.xlane.xlu2 %2006 }
 0x3d7   : > { %v1546_v15 = vpop.xlane.xlu0 %1545 }
 0x3d8   : > { %2735 = vrot.lane.b32.xlu0 %v6034_v33, %s4207_s16  ;;  %3878 = vrcp.f32 %v1546_v15  ;;  %v5523_v33 = vpop.f32.mrf.mxu3 }
 0x3d9   : > { %v2079_v5 = vpop.xlane.xlu1 %2078  ;;  %3880 = vrcp.f32 %v1549_v27  ;;  %v5526_v27 = vpop.f32.mrf.mxu0 }
 0x3de   : > { %v3879_v26 = vpop.eup %3878 }
 0x3df   : > { %v1552_v55 = vpop.xlane.xlu0 %1551  ;;  %2264 = vrot.lane.b32.xlu1 %v6040_v35, %s4205_s24  ;;  %v3881_v61 = vpop.eup %3880  ;;  %v1594_v20 = vmul.f32 %v3879_v26, %v5345_v11 }
 0x3e0   : > { %3882 = vrcp.f32 %v1552_v55  ;;  %v1595_v1 = vmul.f32 %v3881_v61, %v5314_v31 }
 0x3e1   : > { %3884 = vrcp.f32 %v2073_v40  ;;  %v1558_v62 = vpop.xlane.xlu1 %1557  ;;  %v1610_v53 = vpack.c.bf16 %v1594_v20, %v1594_v20 }
 0x3e2   : > { %3886 = vrcp.f32 %v2076_v23  ;;  %v1611_v19 = vpack.c.bf16 %v1595_v1, %v1595_v1  ;;  %v5533_v23 = vpop.f32.mrf.mxu3 }
 0x3e3   : > { %v1634_v24 = vunpack.c.l.b16 %v1610_v53  ;;  %3888 = vrcp.f32 %v1558_v62  ;;  %v2550_v62 = vsel %vm854_vm1, %v5533_v23, -inf }
 0x3e4   : > { %3890 = vrcp.f32 %v1555_v17  ;;  %v1700_v26 = vunpack.c.l.b16 %v1611_v19  ;;  %v2033_v17 = vsub.f32 %v5339_v13, %v2007_v39 }
 0x3e5   : > { %v1638_v18 = vpack.c.b16 %v1634_v24, %v1633_v12  ;;  %v5539_v12 = vpop.f32.mrf.mxu0 }
 0x3e6   : > { %v3883_v32 = vpop.eup %3882 }
 0x3e7   : > { %v3885_v58 = vpop.eup %3884  ;;  %v1596_v44 = vmul.f32 %v3883_v32, %v5355_v63  ;;  %v2082_v11 = vpop.xlane.xlu0 %2081  ;;  %3539 = vmatmul.msk.bf16.gmra.mxu0 %vm854_vm1, %v1638_v18 }
 0x3e8   : > { %v3887_v15 = vpop.eup %3886  ;;  %v2135_v31 = vmul.f32 %v3885_v58, %v5326_v2  ;;  %3892 = vrcp.f32 %v2082_v11 }
 0x3e9   : > { %v1612_v41 = vpack.c.bf16 %v1596_v44, %v1596_v44  ;;  %v5530_v40 = vpop.xlane.xlu1 %2009  ;;  %v2136_v61 = vmul.f32 %v3887_v15, %v5319_v37  ;;  %v3889_v63 = vpop.eup %3888  ;;  %3894 = vrcp.f32 %v2079_v5  ;;  %v2059_v15 = vmul.f32 1.442695, %v2033_v17 }
 0x3ea   : > { %v2151_v20 = vpack.c.bf16 %v2135_v31, %v2135_v31  ;;  %v3891_v1 = vpop.eup %3890  ;;  %v1598_v24 = vmul.f32 %v3889_v63, %v5359_v28  ;;  %v5545_v39 = vpop.f32.mrf.mxu3 }
 0x3eb   : > { %v1701_v55 = vunpack.c.l.b16 %v1612_v41  ;;  %v2152_v2 = vpack.c.bf16 %v2136_v61, %v2136_v61  ;;  %v1597_v19 = vmul.f32 %v3891_v1, %v5337_v25 }
 0x3ec   : > { %v2175_v18 = vunpack.c.l.b16 %v2151_v20  ;;  %v1614_v31 = vpack.c.bf16 %v1598_v24, %v1598_v24 }
 0x3ed   : > { %v1708_v47 = vpack.c.b16 %v1701_v55, %v1700_v26  ;;  %v2176_v44 = vunpack.c.l.b16 %v2152_v2  ;;  %v1613_v61 = vpack.c.bf16 %v1597_v19, %v1597_v19 }
 0x3ee   : > { %v3893_v55 = vpop.eup %3892  ;;  %v1703_v11 = vunpack.c.l.b16 %v1614_v31 }
 0x3ef   : > { %2551 = vmax.xlane.f32.xlu2 %v2550_v62  ;;  %v2085_v53 = vpop.xlane.xlu0 %2084  ;;  %3540 = vmatmul.msk.bf16.vlgmr.msra.gmra.mxu1 %vm854_vm1, %v1708_v47  ;;  %v2183_v26 = vpack.c.b16 %v2176_v44, %v2175_v18  ;;  %v5551_v47 = vpop.f32.mrf.mxu0  ;;  %v2138_v63 = vmul.f32 %v3893_v55, %v5371_v10  ;;  %v1702_v20 = vunpack.c.l.b16 %v1613_v61  ;;  %v2034_v18 = vsub.f32 %v5366_v49, %v5530_v40 }
 0x3f0   : > { %v2553_v40 = vsel %vm854_vm1, %v5545_v39, -inf }
 0x3f1   : > { %v2531_v37 = vpop.xlane.xlu1 %2530  ;;  %v2088_v32 = vpop.xlane.xlu2 %2087  ;;  %v1709_v17 = vpack.c.b16 %v1703_v11, %v1702_v20 }
 0x3f2   : > { %v2573_v58 = vsub.f32 %v5357_v59, %v2531_v37  ;;  %v3895_v59 = vpop.eup %3894  ;;  %v2154_v37 = vpack.c.bf16 %v2138_v63, %v2138_v63 }
 0x3f3   : > { %v2137_v1 = vmul.f32 %v3895_v59, %v5348_v46 }
 0x3f4   : > { %v2591_v41 = vmul.f32 1.442695, %v2573_v58  ;;  %v2178_v44 = vunpack.c.l.b16 %v2154_v37 }
 0x3f5   : > { %v2153_v10 = vpack.c.bf16 %v2137_v1, %v2137_v1 }
 0x3f6   : > { %3896 = vpow2.f32 %v2591_v41  ;;  %v2061_v41 = vmul.f32 1.442695, %v2034_v18 }
 0x3f7   : > { %v2016_v13 = vpop.xlane.xlu0 %2015  ;;  %3898 = vpow2.f32 %v2059_v15  ;;  %3552 = vmatmul.msk.bf16.vlgmr.msrb.gmra.mxu0 %vm854_vm1, %v2183_v26  ;;  %v5566_v15 = vpop.f32.mrf.mxu3  ;;  %v2177_v26 = vunpack.c.l.b16 %v2153_v10 }
 0x3f8   : > { %v2036_v28 = vsub.f32 %v5402_v56, %v2016_v13  ;;  %v5568_v31 = vpop.f32.mrf.mxu0 }
 0x3f9   : > { %v2534_v25 = vpop.xlane.xlu1 %2533  ;;  %v5549_v5 = vpop.xlane.xlu2 %2536  ;;  %v2184_v55 = vpack.c.b16 %v2178_v44, %v2177_v26 }
 0x3fa   : > { %v2065_v2 = vmul.f32 1.442695, %v2036_v28  ;;  %v2574_v13 = vsub.f32 %v5374_v8, %v2534_v25 }
 0x3fc   : > { %v5554_v62 = vpop.eup %3896  ;;  %3900 = vpow2.f32 %v2065_v2  ;;  %v2593_v2 = vmul.f32 1.442695, %v2574_v13 }
 0x3fd   : > { %v2625_v56 = vsel %vm854_vm1, %v5554_v62, 0.0  ;;  %v5559_v24 = vpop.eup %3898  ;;  %3902 = vrcp.f32 %v2088_v32 }
 0x3fe   : > { %2626 = vadd.xlane.f32.xlu2 %v2625_v56  ;;  %v2101_v46 = vsel %vm854_vm1, %v5559_v24, 0.0  ;;  %3904 = vrcp.f32 %v2085_v53  ;;  %v2547_v53 = vsel %vm854_vm1, %v5523_v33, -inf }
 0x3ff   : > { %3541 = vmatmul.msk.bf16.gmra.mxu1 %vm854_vm1, %v1709_v17  ;;  %v1567_v49 = vpop.xlane.xlu0 %1566  ;;  %v5586_v56 = vpop.f32.mrf.mxu3 }
 0x400   : > { %v5589_v37 = vpop.f32.mrf.mxu0 }
 0x401   : > { %v1561_v58 = vpop.xlane.xlu1 %1560  ;;  %v1570_v19 = vpop.xlane.xlu2 %1569 }
 0x402   : > { %2102 = vadd.xlane.f32.xlu0 %v2101_v46  ;;  %3906 = vrcp.f32 %v1561_v58  ;;  %v5572_v32 = vpop.eup %3900 }
 0x403   : > { %v3903_v61 = vpop.eup %3902  ;;  %3908 = vpow2.f32 %v2061_v41  ;;  %v2110_v63 = vsel %vm854_vm1, %v5572_v32, 0.0 }
 0x404   : > { %v3905_v28 = vpop.eup %3904  ;;  %v2140_v1 = vmul.f32 %v3903_v61, %v5393_v54 }
 0x405   : > { %v2139_v8 = vmul.f32 %v3905_v28, %v5383_v34 }
 0x406   : > { %2554 = vmax.xlane.f32.xlu2 %v2553_v40  ;;  %v2156_v18 = vpack.c.bf16 %v2140_v1, %v2140_v1  ;;  %v2575_v1 = vsub.f32 %v5395_v38, %v5549_v5 }
 0x407   : > { %3553 = vmatmul.msk.bf16.gmra.mxu0 %vm854_vm1, %v2184_v55  ;;  %v2094_v10 = vpop.xlane.xlu0 %2093  ;;  %v2155_v46 = vpack.c.bf16 %v2139_v8, %v2139_v8 }
 0x408   : > { %v3907_v20 = vpop.eup %3906  ;;  %v2180_v40 = vunpack.c.l.b16 %v2156_v18 }
 0x409   : > { %2548 = vmax.xlane.f32.xlu1 %v2547_v53  ;;  %v1564_v59 = vpop.xlane.xlu1 %1563  ;;  %v5578_v11 = vpop.xlane.xlu2 %2018  ;;  %v1599_v17 = vmul.f32 %v3907_v20, %v5415_v29  ;;  %v2559_v29 = vsel %vm854_vm1, %v5586_v56, -inf  ;;  %v2179_v13 = vunpack.c.l.b16 %v2155_v46  ;;  %v2595_v46 = vmul.f32 1.442695, %v2575_v1 }
 0x40a   : > { %3910 = vrcp.f32 %v1564_v59  ;;  %2111 = vadd.xlane.f32.xlu0 %v2110_v63  ;;  %v5584_v25 = vpop.eup %3908 }
 0x40b   : > { %3912 = vpow2.f32 %v2593_v2  ;;  %v2104_v54 = vsel %vm854_vm1, %v5584_v25, 0.0  ;;  %v1615_v44 = vpack.c.bf16 %v1599_v17, %v1599_v17  ;;  %v2185_v20 = vpack.c.b16 %v2180_v40, %v2179_v13 }
 0x40c   : > { %3914 = vrcp.f32 %v1570_v19 }
 0x40d   : > { %3916 = vrcp.f32 %v1567_v49  ;;  %v1704_v59 = vunpack.c.l.b16 %v1615_v44 }
 0x40f   : > { %v2543_v19 = vpop.xlane.xlu0 %2542 }
 0x410   : > { %v3911_v58 = vpop.eup %3910 }
 0x411   : > { %v1600_v41 = vmul.f32 %v3911_v58, %v5442_v22  ;;  %2105 = vadd.xlane.f32.xlu1 %v2104_v54  ;;  %v2013_v34 = vpop.xlane.xlu1 %2012  ;;  %v5594_v26 = vpop.xlane.xlu2 %2545  ;;  %v2037_v54 = vsub.f32 %v5437_v3, %v5578_v11 }
 0x412   : > { %v2035_v55 = vsub.f32 %v5381_v36, %v2013_v34  ;;  %2560 = vmax.xlane.f32.xlu0 %v2559_v29  ;;  %v5599_v28 = vpop.eup %3912  ;;  %v2578_v1 = vsub.f32 %v5454_v45, %v5594_v26 }
 0x413   : > { %v1616_v61 = vpack.c.bf16 %v1600_v41, %v1600_v41  ;;  %v3915_v8 = vpop.eup %3914  ;;  %v2628_v36 = vsel %vm854_vm1, %v5599_v28, 0.0 }
 0x414   : > { %v2063_v53 = vmul.f32 1.442695, %v2035_v55  ;;  %v3917_v18 = vpop.eup %3916  ;;  %v1602_v38 = vmul.f32 %v3915_v8, %v5425_v42  ;;  %v2067_v42 = vmul.f32 1.442695, %v2037_v54 }
 0x415   : > { %v1705_v22 = vunpack.c.l.b16 %v1616_v61  ;;  %v1601_v41 = vmul.f32 %v3917_v18, %v5419_v60  ;;  %v2577_v18 = vsub.f32 %v5435_v30, %v2543_v19 }
 0x416   : > { %3918 = vpow2.f32 %v2063_v53  ;;  %v1672_v63 = vpop.f32.mrf.mxu0 }
 0x417   : > { %v1710_v2 = vpack.c.b16 %v1705_v22, %v1704_v59  ;;  %3554 = vmatmul.msk.bf16.gmra.mxu0 %vm854_vm1, %v2185_v20  ;;  %3920 = vrcp.f32 %v2094_v10  ;;  %v1765_v34 = vpack.c.bf16 %v1672_v63, %v1672_v63  ;;  %v2556_v10 = vsel %vm854_vm1, %v5566_v15, -inf  ;;  %v5624_v59 = vpop.xlane.xlu0 %2099 }
 0x418   : > { %v1617_v61 = vpack.c.bf16 %v1601_v41, %v1601_v41  ;;  %v2599_v19 = vmul.f32 1.442695, %v2577_v18 }
 0x419   : > { %2629 = vadd.xlane.f32.xlu1 %v2628_v36  ;;  %v2540_v49 = vpop.xlane.xlu1 %2539  ;;  %3542 = vmatmul.msk.bf16.gmra.mxu1 %vm854_vm1, %v1710_v2  ;;  %v5607_v17 = vpop.xlane.xlu2 %2620  ;;  %v5620_v13 = vunpack.c.l.b16 %v1765_v34 }
 0x41a   : > { %v2576_v58 = vsub.f32 %v5417_v57, %v2540_v49  ;;  %v1618_v57 = vpack.c.bf16 %v1602_v38, %v1602_v38  ;;  %v1706_v8 = vunpack.c.l.b16 %v1617_v61  ;;  %v2601_v38 = vmul.f32 1.442695, %v2578_v1 }
 0x41c   : > { %v5611_v5 = vpop.eup %3918  ;;  %v2597_v44 = vmul.f32 1.442695, %v2576_v58  ;;  %v1707_v22 = vunpack.c.l.b16 %v1618_v57 }
 0x41d   : > { %v2107_v29 = vsel %vm854_vm1, %v5611_v5, 0.0  ;;  %v3921_v53 = vpop.eup %3920 }
 0x41e   : > { %3922 = vpow2.f32 %v2597_v44  ;;  %2108 = vadd.xlane.f32.xlu2 %v2107_v29  ;;  %v1674_v40 = vpop.f32.mrf.mxu0  ;;  %v2142_v36 = vmul.f32 %v3921_v53, %v5433_v7  ;;  %v1711_v58 = vpack.c.b16 %v1707_v22, %v1706_v8  ;;  %v5640_v44 = vpop.f32.mrf.mxu3 }
 0x41f   : > { %3924 = vpow2.f32 %v2595_v46  ;;  %v1766_v55 = vpack.c.bf16 %v1674_v40, %v1674_v40  ;;  %v2562_v61 = vsel %vm854_vm1, %v5640_v44, -inf }
 0x420   : > { %v2158_v45 = vpack.c.bf16 %v2142_v36, %v2142_v36 }
 0x421   : > { %v5622_v3 = vunpack.c.l.b16 %v1766_v55  ;;  %2557 = vmax.xlane.f32.xlu1 %v2556_v10  ;;  %v2091_v60 = vpop.xlane.xlu1 %2090  ;;  %v2742_v11 = vpop.permute.xlu2 %2741 }
 0x422   : > { %3926 = vrcp.f32 %v2091_v60  ;;  %2763 = vmatpush.bf16.msra.mxu0 %v2742_v11  ;;  %v2182_v57 = vunpack.c.l.b16 %v2158_v45 }
 0x423   : > { %3928 = vpow2.f32 %v2067_v42 }
 0x424   : > { %v5628_v20 = vpop.eup %3922  ;;  %3930 = vpow2.f32 %v2601_v38 }
 0x425   : > { %v5632_v2 = vpop.eup %3924  ;;  %v2634_v49 = vsel %vm854_vm1, %v5628_v20, 0.0 }
 0x426   : > { %2635 = vadd.xlane.f32.xlu2 %v2634_v49  ;;  %v2631_v54 = vsel %vm854_vm1, %v5632_v2, 0.0  ;;  %v5654_v53 = vpop.f32.mrf.mxu3 }
 0x428   : > { %v3927_v46 = vpop.eup %3926 }
 0x429   : > { %v2141_v26 = vmul.f32 %v3927_v46, %v5476_v48  ;;  %v2022_v41 = vpop.xlane.xlu1 %2021  ;;  %2632 = vadd.xlane.f32.xlu1 %v2631_v54  ;;  %3543 = vmatmul.msk.bf16.gmra.mxu1 %vm854_vm1, %v1711_v58  ;;  %v5644_v7 = vpop.eup %3928 }
 0x42a   : > { %v2038_v34 = vsub.f32 %v5483_v6, %v2022_v41  ;;  %v2267_v30 = vpop.permute.xlu0 %2266  ;;  %v2113_v42 = vsel %vm854_vm1, %v5644_v7, 0.0  ;;  %v5652_v60 = vpop.eup %3930 }
 0x42b   : > { %v2157_v29 = vpack.c.bf16 %v2141_v26, %v2141_v26  ;;  %2288 = vmatpush.bf16.msrb.mxu1 %v2267_v30  ;;  %v2640_v49 = vsel %vm854_vm1, %v5652_v60, 0.0  ;;  %v2565_v30 = vsel %vm854_vm1, %v5654_v53, -inf }
 0x42c   : > { %v2069_v40 = vmul.f32 1.442695, %v2038_v34 }
 0x42d   : > { %v2181_v55 = vunpack.c.l.b16 %v2157_v29 }
 0x42e   : > { %3932 = vpow2.f32 %v2069_v40  ;;  %v1677_v48 = vpop.f32.mrf.mxu0  ;;  %2114 = vadd.xlane.f32.xlu2 %v2113_v42  ;;  %v5673_v34 = vpop.f32.mrf.mxu3 }
 0x42f   : > { %3934 = vpow2.f32 %v2599_v19  ;;  %v2186_v10 = vpack.c.b16 %v2182_v57, %v2181_v55  ;;  %v1767_v8 = vpack.c.bf16 %v1677_v48, %v1677_v48  ;;  %v2568_v40 = vsel %vm854_vm1, %v5673_v34, -inf }
 0x430   : > { %3936 = vrcp.f32 %v5607_v17 }
 0x431   : > { %v2097_v6 = vpop.xlane.xlu1 %2096  ;;  %3555 = vmatmul.msk.bf16.gmra.mxu0 %vm854_vm1, %v2186_v10  ;;  %2563 = vmax.xlane.f32.xlu1 %v2562_v61  ;;  %v5667_v38 = vunpack.c.l.b16 %v1767_v8 }
 0x432   : > { %v2740_v11 = vpop.permute.xlu0 %2739 }
 0x433   : > { %2764 = vmatpush.bf16.msra.mxu0 %v2740_v11 }
 0x434   : > { %v5656_v22 = vpop.eup %3932 }
 0x435   : > { %v5658_v1 = vpop.eup %3934  ;;  %v2116_v36 = vsel %vm854_vm1, %v5656_v22, 0.0 }
 0x436   : > { %v1679_v18 = vpop.f32.mrf.mxu0  ;;  %2117 = vadd.xlane.f32.xlu0 %v2116_v36  ;;  %2641 = vadd.xlane.f32.xlu2 %v2640_v49  ;;  %v2637_v46 = vsel %vm854_vm1, %v5658_v1, 0.0  ;;  %v3937_v17 = vpop.eup %3936 }
 0x437   : > { %v1768_v58 = vpack.c.bf16 %v1679_v18, %v1679_v18  ;;  %v2683_v55 = vmul.f32 %v3937_v17, %v5466_v50 }
 0x439   : > { %v5669_v54 = vunpack.c.l.b16 %v1768_v58  ;;  %v2624_v45 = vpop.xlane.xlu1 %2623  ;;  %2638 = vadd.xlane.f32.xlu1 %v2637_v46  ;;  %v2699_v61 = vpack.c.bf16 %v2683_v55, %v2683_v55  ;;  %v5693_v55 = vpop.f32.mrf.mxu1 }
 0x43a   : > { %3938 = vrcp.f32 %v2624_v45  ;;  %v2738_v26 = vpop.permute.xlu0 %2737 }
 0x43b   : > { %2765 = vmatpush.bf16.msra.mxu0 %v2738_v26  ;;  %3940 = vrcp.f32 %v2097_v6  ;;  %v2723_v58 = vunpack.c.l.b16 %v2699_v61 }
 0x43c   : > { %3942 = vrcp.f32 %v5624_v59 }
 0x43e   : > { %v1682_v19 = vpop.f32.mrf.mxu0  ;;  %2566 = vmax.xlane.f32.xlu0 %v2565_v30 }
 0x43f   : > { %v1769_v10 = vpack.c.bf16 %v1682_v19, %v1682_v19 }
 0x440   : > { %v3939_v29 = vpop.eup %3938 }
 0x441   : > { %v2684_v57 = vmul.f32 %v3939_v29, %v5501_v0  ;;  %2569 = vmax.xlane.f32.xlu1 %v2568_v40  ;;  %v5682_v49 = vunpack.c.l.b16 %v1769_v10  ;;  %v3941_v50 = vpop.eup %3940  ;;  %v2263_v29 = vpop.permute.xlu2 %2262 }
 0x442   : > { %v2261_v42 = vpop.permute.xlu0 %2260  ;;  %v3943_v26 = vpop.eup %3942  ;;  %v2143_v6 = vmul.f32 %v3941_v50, %v5492_v52 }
 0x443   : > { %v2700_v48 = vpack.c.bf16 %v2684_v57, %v2684_v57  ;;  %v2144_v59 = vmul.f32 %v3943_v26, %v5464_v14  ;;  %v5699_v10 = vpop.f32.mrf.mxu1 }
 0x444   : > { %v2159_v19 = vpack.c.bf16 %v2143_v6, %v2143_v6 }
 0x445   : > { %v2724_v36 = vunpack.c.l.b16 %v2700_v48  ;;  %v2160_v17 = vpack.c.bf16 %v2144_v59, %v2144_v59 }
 0x446   : > { %v1684_v11 = vpop.f32.mrf.mxu0  ;;  %v2248_v40 = vunpack.c.l.b16 %v2159_v19 }
 0x447   : > { %v1770_v8 = vpack.c.bf16 %v1684_v11, %v1684_v11  ;;  %v2731_v45 = vpack.c.b16 %v2724_v36, %v2723_v58  ;;  %v2249_v57 = vunpack.c.l.b16 %v2160_v17 }
 0x449   : > { %v5684_v18 = vunpack.c.l.b16 %v1770_v8  ;;  %v2256_v48 = vpack.c.b16 %v2249_v57, %v2248_v40 }
 0x44a   : > { %v2736_v46 = vpop.permute.xlu0 %2735 }
 0x44b   : > { %2766 = vmatpush.bf16.msra.mxu0 %v2736_v46 }
 0x44e   : > { %3568 = vmatmul.msk.bf16.vlgmr.msra.gmra.mxu0 %vm854_vm1, %v2731_v45 }
 0x451   : > { %v2265_v30 = vpop.permute.xlu1 %2264 }
 0x452   : > { %2289 = vmatpush.bf16.msrb.mxu1 %v2265_v30 }
 0x456   : > { %2290 = vmatpush.bf16.msrb.mxu1 %v2263_v29 }
 0x45a   : > { %2814 = vrot.lane.b32.xlu1 %v6035_v16, %s4207_s16  ;;  %2291 = vmatpush.bf16.msrb.mxu1 %v2261_v42  ;;  %v5703_v16 = vpop.f32.mrf.mxu1 }
 0x45d   : > { %3556 = vmatmul.msk.bf16.vlgmr.msrb.gmra.mxu1 %vm854_vm1, %v2256_v48 }
 0x462   : > { %2808 = vrot.lane.b32.xlu1 %v6033_v21, %s4207_s16  ;;  %v2552_v14 = vpop.xlane.xlu2 %2551  ;;  %v5715_v6 = vpop.f32.mrf.mxu1 }
 0x463   : > { %v2580_v52 = vsub.f32 %v5533_v23, %v2552_v14 }
 0x464   : > { %v1687_v11 = vpop.f32.mrf.mxu0 }
 0x465   : > { %v2605_v61 = vmul.f32 1.442695, %v2580_v52  ;;  %v1771_v8 = vpack.c.bf16 %v1687_v11, %v1687_v11 }
 0x467   : > { %3944 = vpow2.f32 %v2605_v61  ;;  %v5707_v21 = vunpack.c.l.b16 %v1771_v8 }
 0x46a   : > { %v5720_v57 = vpop.f32.mrf.mxu1 }
 0x46c   : > { %v1689_v42 = vpop.f32.mrf.mxu0 }
 0x46d   : > { %v5701_v36 = vpop.eup %3944  ;;  %v1772_v58 = vpack.c.bf16 %v1689_v42, %v1689_v42 }
 0x46e   : > { %v2646_v46 = vsel %vm854_vm1, %v5701_v36, 0.0 }
 0x46f   : > { %2647 = vadd.xlane.f32.xlu0 %v2646_v46  ;;  %v5709_v50 = vunpack.c.l.b16 %v1772_v58 }
 0x471   : > { %v2627_v29 = vpop.xlane.xlu2 %2626 }
 0x474   : > { %v5713_v45 = vpop.f32.mrf.mxu0 }
 0x475   : > { %v2103_v26 = vpop.xlane.xlu0 %2102 }
 0x476   : > { %3946 = vrcp.f32 %v2103_v26  ;;  %v5730_v26 = vpop.f32.mrf.mxu1 }
 0x479   : > { %v2555_v46 = vpop.xlane.xlu2 %2554 }
 0x47c   : > { %v2549_v59 = vpop.xlane.xlu1 %2548  ;;  %v5718_v19 = vpop.f32.mrf.mxu0 }
 0x47d   : > { %v2579_v30 = vsub.f32 %v5523_v33, %v2549_v59  ;;  %v2112_v17 = vpop.xlane.xlu0 %2111  ;;  %v3947_v14 = vpop.eup %3946 }
 0x47e   : > { %v2145_v8 = vmul.f32 %v3947_v14, %v5559_v24 }
 0x47f   : > { %v2603_v40 = vmul.f32 1.442695, %v2579_v30 }
 0x480   : > { %v2161_v30 = vpack.c.bf16 %v2145_v8, %v2145_v8 }
 0x481   : > { %3948 = vpow2.f32 %v2603_v40 }
 0x483   : > { %2810 = vrot.lane.b32.xlu0 %v6038_v51, %s4207_s16 }
 0x484   : > { %v2106_v48 = vpop.xlane.xlu1 %2105  ;;  %v2225_v52 = vpop.f32.mrf.mxu0 }
 0x485   : > { %3950 = vrcp.f32 %v2106_v48  ;;  %v2561_v61 = vpop.xlane.xlu0 %2560  ;;  %v2315_v40 = vpack.c.bf16 %v2225_v52, %v2225_v52 }
 0x486   : > { %3952 = vrcp.f32 %v2627_v29  ;;  %v2583_v33 = vsub.f32 %v5586_v56, %v2561_v61 }
 0x487   : > { %v5725_v11 = vpop.eup %3948  ;;  %v5736_v23 = vunpack.c.l.b16 %v2315_v40  ;;  %v5748_v40 = vpop.f32.mrf.mxu1 }
 0x488   : > { %v2611_v42 = vmul.f32 1.442695, %v2583_v33  ;;  %v2643_v58 = vsel %vm854_vm1, %v5725_v11, 0.0  ;;  %6041 = vst [vmem:[#allocation22_spill] sm:$0xff] %v5748_v40 }
 0x489   : > { %2644 = vadd.xlane.f32.xlu2 %v2643_v58  ;;  %v2250_v58 = vunpack.c.l.b16 %v2161_v30 }
 0x48a   : > { %3954 = vpow2.f32 %v2611_v42 }
 0x48b   : > { %v3951_v51 = vpop.eup %3950 }
 0x48c   : > { %v3953_v59 = vpop.eup %3952  ;;  %v2146_v29 = vmul.f32 %v3951_v51, %v5584_v25  ;;  %v2630_v56 = vpop.xlane.xlu1 %2629 }
 0x48d   : > { %3956 = vrcp.f32 %v2630_v56  ;;  %v2227_v48 = vpop.f32.mrf.mxu0  ;;  %v2685_v14 = vmul.f32 %v3953_v59, %v5554_v62 }
 0x48e   : > { %v2162_v61 = vpack.c.bf16 %v2146_v29, %v2146_v29  ;;  %v2316_v24 = vpack.c.bf16 %v2227_v48, %v2227_v48  ;;  %3958 = vrcp.f32 %v2112_v17 }
 0x48f   : > { %v2701_v17 = vpack.c.bf16 %v2685_v14, %v2685_v14  ;;  %v5754_v40 = vpop.f32.mrf.mxu1 }
 0x490   : > { %v5734_v33 = vpop.eup %3954  ;;  %v2251_v42 = vunpack.c.l.b16 %v2162_v61  ;;  %v5738_v63 = vunpack.c.l.b16 %v2316_v24 }
 0x491   : > { %v2109_v8 = vpop.xlane.xlu2 %2108  ;;  %v2655_v25 = vsel %vm854_vm1, %v5734_v33, 0.0  ;;  %v2725_v24 = vunpack.c.l.b16 %v2701_v17 }
 0x492   : > { %3960 = vrcp.f32 %v2109_v8  ;;  %2656 = vadd.xlane.f32.xlu1 %v2655_v25  ;;  %v2257_v51 = vpack.c.b16 %v2251_v42, %v2250_v58 }
 0x493   : > { %v3957_v62 = vpop.eup %3956 }
 0x494   : > { %v2686_v59 = vmul.f32 %v3957_v62, %v5599_v28  ;;  %v5745_v30 = vpop.xlane.xlu1 %2557  ;;  %3557 = vmatmul.msk.bf16.gmra.mxu1 %vm854_vm1, %v2257_v51  ;;  %v3959_v29 = vpop.eup %3958  ;;  %v2581_v28 = vsub.f32 %v5545_v39, %v2555_v46 }
 0x495   : > { %v2230_v56 = vpop.f32.mrf.mxu0  ;;  %v2148_v52 = vmul.f32 %v3959_v29, %v5572_v32 }
 0x496   : > { %v2702_v48 = vpack.c.bf16 %v2686_v59, %v2686_v59  ;;  %v2317_v51 = vpack.c.bf16 %v2230_v56, %v2230_v56  ;;  %v2607_v32 = vmul.f32 1.442695, %v2581_v28 }
 0x497   : > { %v2164_v62 = vpack.c.bf16 %v2148_v52, %v2148_v52 }
 0x498   : > { %v3961_v61 = vpop.eup %3960  ;;  %v2726_v8 = vunpack.c.l.b16 %v2702_v48  ;;  %v5756_v48 = vunpack.c.l.b16 %v2317_v51 }
 0x499   : > { %v2147_v58 = vmul.f32 %v3961_v61, %v5611_v5  ;;  %v2636_v42 = vpop.xlane.xlu2 %2635  ;;  %v2253_v5 = vunpack.c.l.b16 %v2164_v62 }
 0x49a   : > { %3962 = vrcp.f32 %v2636_v42  ;;  %v2732_v14 = vpack.c.b16 %v2726_v8, %v2725_v24  ;;  %v5767_v42 = vpop.f32.mrf.mxu1 }
 0x49b   : > { %v2163_v25 = vpack.c.bf16 %v2147_v58, %v2147_v58 }
 0x49c   : > { %v2633_v0 = vpop.xlane.xlu1 %2632  ;;  %3569 = vmatmul.msk.bf16.gmra.mxu0 %vm854_vm1, %v2732_v14 }
 0x49d   : > { %v2232_v41 = vpop.f32.mrf.mxu0  ;;  %3964 = vrcp.f32 %v2633_v0  ;;  %v2252_v59 = vunpack.c.l.b16 %v2163_v25 }
 0x49e   : > { %v2318_v17 = vpack.c.bf16 %v2232_v41, %v2232_v41  ;;  %3966 = vpow2.f32 %v2607_v32 }
 0x49f   : > { %v2258_v52 = vpack.c.b16 %v2253_v5, %v2252_v59 }
 0x4a0   : > { %v3963_v29 = vpop.eup %3962  ;;  %v5758_v61 = vunpack.c.l.b16 %v2318_v17 }
 0x4a1   : > { %v2688_v39 = vmul.f32 %v3963_v29, %v5628_v20  ;;  %2812 = vrot.lane.b32.xlu2 %v6040_v35, %s4207_s16  ;;  %v2115_v46 = vpop.xlane.xlu2 %2114 }
 0x4a2   : > { %v3007_v0 = vpack.c.b16 %v5758_v61, %v5756_v48  ;;  %3968 = vrcp.f32 %v2115_v46  ;;  %v5775_v5 = vpop.f32.mrf.mxu1 }
 0x4a3   : > { %v3965_v41 = vpop.eup %3964  ;;  %v2704_v56 = vpack.c.bf16 %v2688_v39, %v2688_v39 }
 0x4a4   : > { %v2687_v24 = vmul.f32 %v3965_v41, %v5632_v2  ;;  %v2564_v8 = vpop.xlane.xlu1 %2563  ;;  %3558 = vmatmul.msk.bf16.gmra.mxu1 %vm854_vm1, %v2258_v52  ;;  %v5769_v35 = vpop.eup %3966 }
 0x4a5   : > { %v2728_v20 = vunpack.c.l.b16 %v2704_v56  ;;  %v2649_v2 = vsel %vm854_vm1, %v5769_v35, 0.0 }
 0x4a6   : > { %v2703_v58 = vpack.c.bf16 %v2687_v24, %v2687_v24 }
 0x4a8   : > { %v2727_v14 = vunpack.c.l.b16 %v2703_v58  ;;  %v3969_v62 = vpop.eup %3968 }
 0x4a9   : > { %v2118_v28 = vpop.xlane.xlu0 %2117  ;;  %v2642_v25 = vpop.xlane.xlu2 %2641  ;;  %v2149_v17 = vmul.f32 %v3969_v62, %v5644_v7 }
 0x4aa   : > { %3970 = vrcp.f32 %v2118_v28  ;;  %v2733_v51 = vpack.c.b16 %v2728_v20, %v2727_v14 }
 0x4ab   : > { %3972 = vrcp.f32 %v2642_v25  ;;  %v2165_v39 = vpack.c.bf16 %v2149_v17, %v2149_v17 }
 0x4ac   : > { %v2639_v59 = vpop.xlane.xlu1 %2638  ;;  %3570 = vmatmul.msk.bf16.gmra.mxu0 %vm854_vm1, %v2733_v51 }
 0x4ad   : > { %3974 = vrcp.f32 %v2639_v59  ;;  %2650 = vadd.xlane.f32.xlu0 %v2649_v2  ;;  %v2254_v25 = vunpack.c.l.b16 %v2165_v39 }
 0x4b0   : > { %v3971_v32 = vpop.eup %3970 }
 0x4b1   : > { %v3973_v29 = vpop.eup %3972  ;;  %v2150_v46 = vmul.f32 %v3971_v32, %v5656_v22  ;;  %v2567_v52 = vpop.xlane.xlu0 %2566 }
 0x4b2   : > { %v2690_v41 = vmul.f32 %v3973_v29, %v5652_v60  ;;  %v2585_v56 = vsub.f32 %v5654_v53, %v2567_v52  ;;  %v2582_v60 = vsub.f32 %v5566_v15, %v5745_v30  ;;  %v5784_v32 = vpop.f32.mrf.mxu0  ;;  %v1750_v29 = vpop.f32.mrf.mxu1  ;;  %v2584_v15 = vsub.f32 %v5640_v44, %v2564_v8 }
 0x4b3   : > { %v3975_v24 = vpop.eup %3974  ;;  %v2166_v58 = vpack.c.bf16 %v2150_v46, %v2150_v46 }
 0x4b4   : > { %v2706_v20 = vpack.c.bf16 %v2690_v41, %v2690_v41  ;;  %v2689_v14 = vmul.f32 %v3975_v24, %v5658_v1  ;;  %v2615_v7 = vmul.f32 1.442695, %v2585_v56  ;;  %v2570_v28 = vpop.xlane.xlu1 %2569  ;;  %v2609_v46 = vmul.f32 1.442695, %v2582_v60 }
 0x4b5   : > { %v2255_v62 = vunpack.c.l.b16 %v2166_v58  ;;  %v2586_v51 = vsub.f32 %v5673_v34, %v2570_v28  ;;  %v2613_v56 = vmul.f32 1.442695, %v2584_v15  ;;  %v6043_v15 = vpack.c.b16 %v5684_v18, %v5682_v49 }
 0x4b6   : > { %v2705_v59 = vpack.c.bf16 %v2689_v14, %v2689_v14  ;;  %3976 = vpow2.f32 %v2615_v7  ;;  %v2730_v17 = vunpack.c.l.b16 %v2706_v20  ;;  %v2314_v20 = vpack.c.bf16 %v5718_v19, %v5718_v19 }
 0x4b7   : > { %v2617_v2 = vmul.f32 1.442695, %v2586_v51  ;;  %v2259_v22 = vpack.c.b16 %v2255_v62, %v2254_v25  ;;  %v2313_v7 = vpack.c.bf16 %v5713_v45, %v5713_v45 }
 0x4b8   : > { %v2729_v53 = vunpack.c.l.b16 %v2705_v59  ;;  %v2990_v8 = vunpack.c.l.b16 %v2314_v20  ;;  %v6044_v20 = vpack.c.b16 %v5622_v3, %v5620_v13 }
 0x4b9   : > { %3978 = vpow2.f32 %v2617_v2  ;;  %3559 = vmatmul.msk.bf16.gmra.mxu1 %vm854_vm1, %v2259_v22  ;;  %v2989_v51 = vunpack.c.l.b16 %v2313_v7 }
 0x4ba   : > { %v2734_v1 = vpack.c.b16 %v2730_v17, %v2729_v53  ;;  %3980 = vpow2.f32 %v2609_v46  ;;  %v2237_v41 = vpop.f32.mrf.mxu0  ;;  %v1752_v24 = vpop.f32.mrf.mxu1  ;;  %v6042_v46 = vpack.c.b16 %v5669_v54, %v5667_v38  ;;  %v6045_v38 = vpack.c.b16 %v5709_v50, %v5707_v21 }
 0x4bb   : > { %3982 = vpow2.f32 %v2613_v56  ;;  %v3005_v59 = vpack.c.b16 %v2990_v8, %v2989_v51  ;;  %v1773_v56 = vpack.c.bf16 %v5767_v42, %v5767_v42  ;;  %v1776_v7 = vpack.c.bf16 %v1752_v24, %v1752_v24 }
 0x4bc   : > { %v5787_v39 = vpop.eup %3976  ;;  %3571 = vmatmul.msk.bf16.gmra.mxu0 %vm854_vm1, %v2734_v1  ;;  %v6046_v42 = vpack.c.b16 %v5738_v63, %v5736_v23  ;;  %v2320_v21 = vpack.c.bf16 %v2237_v41, %v2237_v41 }
 0x4bd   : > { %v2661_v34 = vsel %vm854_vm1, %v5787_v39, 0.0  ;;  %v2941_v49 = vunpack.c.l.b16 %v1773_v56  ;;  %v2944_v3 = vunpack.c.l.b16 %v1776_v7  ;;  %v3645_v7 = vld [vmem:[#allocation8 + $0x38] sm:$0xff] }
 0x4be   : > { %2662 = vadd.xlane.f32.xlu0 %v2661_v34  ;;  %v2996_v23 = vunpack.c.l.b16 %v2320_v21  ;;  %3218 = vmatpush.bf16.msra.mxu2 %v3645_v7 }
 0x4bf   : > { %v5792_v52 = vpop.eup %3978 }
 0x4c0   : > { %v2664_v30 = vsel %vm854_vm1, %v5792_v52, 0.0  ;;  %v5797_v58 = vpop.eup %3980 }
 0x4c1   : > { %2665 = vadd.xlane.f32.xlu1 %v2664_v30  ;;  %v2652_v14 = vsel %vm854_vm1, %v5797_v58, 0.0  ;;  %v5805_v62 = vpop.eup %3982  ;;  %v1774_v30 = vpack.c.bf16 %v5775_v5, %v5775_v5 }
 0x4c2   : > { %v1755_v25 = vpop.f32.mrf.mxu1  ;;  %v2658_v19 = vsel %vm854_vm1, %v5805_v62, 0.0 }
 0x4c3   : > { %v1777_v51 = vpack.c.bf16 %v1755_v25, %v1755_v25 }
 0x4ca   : > { %2653 = vadd.xlane.f32.xlu2 %v2652_v14  ;;  %v1757_v53 = vpop.f32.mrf.mxu1  ;;  %v2942_v14 = vunpack.c.l.b16 %v1774_v30 }
 0x4cb   : > { %v2768_v44 = vpop.f32.mrf.mxu0 }
 0x4cc   : > { %v2815_v28 = vpop.permute.xlu1 %2814  ;;  %v2861_v2 = vpack.c.bf16 %v2768_v44, %v2768_v44  ;;  %v2953_v18 = vpack.c.b16 %v2942_v14, %v2941_v49  ;;  %v1775_v44 = vpack.c.bf16 %v1750_v29, %v1750_v29 }
 0x4cd   : > { %2836 = vmatpush.bf16.msra.mxu1 %v2815_v28  ;;  %v1778_v28 = vpack.c.bf16 %v1757_v53, %v1757_v53 }
 0x4ce   : > { %v3045_v45 = vunpack.c.l.b16 %v2861_v2  ;;  %v2943_v5 = vunpack.c.l.b16 %v1775_v44  ;;  %v3644_v44 = vld [vmem:[#allocation8 + $0x30] sm:$0xff] }
 0x4cf   : > { %v2946_v63 = vunpack.c.l.b16 %v1778_v28  ;;  %3219 = vmatpush.bf16.msra.mxu2 %v3644_v44 }
 0x4d0   : > { %v2954_v8 = vpack.c.b16 %v2944_v3, %v2943_v5 }
 0x4d2   : > { %2659 = vadd.xlane.f32.xlu2 %v2658_v19  ;;  %3013 = vrot.lane.b32.xlu0 %v3005_v59, %s4205_s24  ;;  %v1760_v34 = vpop.f32.mrf.mxu1  ;;  %v2319_v59 = vpack.c.bf16 %v5784_v32, %v5784_v32  ;;  %v2945_v19 = vunpack.c.l.b16 %v1777_v51  ;;  %v3642_v51 = vld [vmem:[#allocation8 + $0x20] sm:$0xff] }
 0x4d3   : > { %v2770_v22 = vpop.f32.mrf.mxu0 }
 0x4d4   : > { %v2862_v60 = vpack.c.bf16 %v2770_v22, %v2770_v22  ;;  %v2995_v41 = vunpack.c.l.b16 %v2319_v59  ;;  %v2955_v2 = vpack.c.b16 %v2946_v63, %v2945_v19  ;;  %v2809_v49 = vpop.permute.xlu1 %2808 }
 0x4d6   : > { %v3046_v17 = vunpack.c.l.b16 %v2862_v60  ;;  %v3008_v22 = vpack.c.b16 %v2996_v23, %v2995_v41 }
 0x4d8   : > { %v3061_v1 = vpack.c.b16 %v3046_v17, %v3045_v45  ;;  %v1779_v45 = vpack.c.bf16 %v1760_v34, %v1760_v34 }
 0x4da   : > { %3069 = vrot.lane.b32.xlu1 %v3061_v1, %s4206_s29  ;;  %2959 = vrot.lane.b32.xlu0 %v6042_v46, %s4207_s16  ;;  %v1762_v54 = vpop.f32.mrf.mxu1 }
 0x4db   : > { %v1780_v25 = vpack.c.bf16 %v1762_v54, %v1762_v54 }
 0x4dd   : > { %v2948_v61 = vunpack.c.l.b16 %v1780_v25  ;;  %v3640_v25 = vld [vmem:[#allocation8 + $0x10] sm:$0xff] }
 0x4e2   : > { %2961 = vrot.lane.b32.xlu1 %v6043_v15, %s4207_s16  ;;  %v2293_v13 = vpop.f32.mrf.mxu1  ;;  %v2648_v50 = vpop.xlane.xlu0 %2647  ;;  %v2947_v15 = vunpack.c.l.b16 %v1779_v45 }
 0x4e3   : > { %3984 = vrcp.f32 %v2648_v50  ;;  %v2321_v17 = vpack.c.bf16 %v2293_v13, %v2293_v13 }
 0x4e5   : > { %v2997_v30 = vunpack.c.l.b16 %v2321_v17  ;;  %v3639_v17 = vld [vmem:[#allocation8 + $0x8] sm:$0xff] }
 0x4e9   : > { %v3985_v32 = vpop.eup %3984 }
 0x4ea   : > { %2957 = vrot.lane.b32.xlu2 %v6044_v20, %s4207_s16  ;;  %2963 = vrot.lane.b32.xlu1 %v6045_v38, %s4207_s16  ;;  %v2295_v24 = vpop.f32.mrf.mxu1  ;;  %v2692_v53 = vmul.f32 %v3985_v32, %v5701_v36  ;;  %v2956_v20 = vpack.c.b16 %v2948_v61, %v2947_v15 }
 0x4eb   : > { %v2322_v60 = vpack.c.bf16 %v2295_v24, %v2295_v24  ;;  %v3641_v24 = vld [vmem:[#allocation8 + $0x18] sm:$0xff] }
 0x4ec   : > { %v2708_v34 = vpack.c.bf16 %v2692_v53, %v2692_v53  ;;  %v3638_v53 = vld [vmem:[#allocation8] sm:$0xff] }
 0x4f2   : > { %3015 = vrot.lane.b32.xlu2 %v6046_v42, %s4205_s24  ;;  %2965 = vrot.lane.b32.xlu1 %v2953_v18, %s4207_s16  ;;  %v2797_v18 = vunpack.c.l.b16 %v2708_v34 }
 0x4f5   : > { %v2811_v54 = vpop.permute.xlu0 %2810 }
 0x4fa   : > { %3017 = vrot.lane.b32.xlu2 %v3007_v0, %s4205_s24  ;;  %2967 = vrot.lane.b32.xlu1 %v2954_v8, %s4207_s16  ;;  %v2998_v0 = vunpack.c.l.b16 %v2322_v60  ;;  %v3643_v8 = vld [vmem:[#allocation8 + $0x28] sm:$0xff] }
 0x4fb   : > { %3220 = vmatpush.bf16.msra.mxu2 %v3643_v8 }
 0x4fc   : > { %v2645_v29 = vpop.xlane.xlu2 %2644  ;;  %v3009_v38 = vpack.c.b16 %v2998_v0, %v2997_v30 }
 0x4fd   : > { %3986 = vrcp.f32 %v2645_v29 }
 0x4ff   : > { %3221 = vmatpush.bf16.msra.mxu2 %v3642_v51 }
 0x502   : > { %3019 = vrot.lane.b32.xlu2 %v3008_v22, %s4205_s24  ;;  %2969 = vrot.lane.b32.xlu1 %v2955_v2, %s4207_s16 }
 0x503   : > { %v3987_v48 = vpop.eup %3986  ;;  %3222 = vmatpush.bf16.msra.mxu2 %v3641_v24 }
 0x504   : > { %v2691_v1 = vmul.f32 %v3987_v48, %v5725_v11  ;;  %v2813_v46 = vpop.permute.xlu2 %2812 }
 0x505   : > { %2837 = vmatpush.bf16.msra.mxu1 %v2813_v46 }
 0x506   : > { %v2707_v56 = vpack.c.bf16 %v2691_v1, %v2691_v1 }
 0x507   : > { %3223 = vmatpush.bf16.msra.mxu2 %v3640_v25 }
 0x508   : > { %v2796_v14 = vunpack.c.l.b16 %v2707_v56 }
 0x509   : > { %2838 = vmatpush.bf16.msra.mxu1 %v2811_v54 }
 0x50a   : > { %2971 = vrot.lane.b32.xlu1 %v2956_v20, %s4207_s16  ;;  %3021 = vrot.lane.b32.xlu2 %v3009_v38, %s4205_s24  ;;  %v2804_v36 = vpack.c.b16 %v2797_v18, %v2796_v14 }
 0x50b   : > { %3224 = vmatpush.bf16.msra.mxu2 %v3639_v17 }
 0x50d   : > { %2839 = vmatpush.bf16.msra.mxu1 %v2809_v49 }
 0x50f   : > { %3225 = vmatpush.bf16.msra.mxu2 %v3638_v53 }
 0x510   : > { %3572 = vmatmul.msk.bf16.vlgmr.msra.gmra.mxu1 %vm854_vm1, %v2804_v36 }
 0x511   : > { %v2298_v11 = vpop.f32.mrf.mxu1 }
 0x512   : > { %v2323_v42 = vpack.c.bf16 %v2298_v11, %v2298_v11  ;;  %v2657_v11 = vpop.xlane.xlu1 %2656 }
 0x514   : > { %v2999_v28 = vunpack.c.l.b16 %v2323_v42 }
 0x519   : > { %v2300_v13 = vpop.f32.mrf.mxu1  ;;  %v2773_v3 = vpop.f32.mrf.mxu0 }
 0x51a   : > { %v2324_v5 = vpack.c.bf16 %v2300_v13, %v2300_v13  ;;  %v2863_v59 = vpack.c.bf16 %v2773_v3, %v2773_v3 }
 0x51c   : > { %v3000_v21 = vunpack.c.l.b16 %v2324_v5  ;;  %v3047_v19 = vunpack.c.l.b16 %v2863_v59 }
 0x51e   : > { %v3010_v50 = vpack.c.b16 %v3000_v21, %v2999_v28 }
 0x520   : > { %3023 = vrot.lane.b32.xlu2 %v3010_v50, %s4205_s24  ;;  %v2651_v20 = vpop.xlane.xlu0 %2650  ;;  %v1218_v50 = vpack.c.bf16 %v5513_v4, %v5513_v4 }
 0x521   : > { %v2303_v63 = vpop.f32.mrf.mxu1  ;;  %v2775_v23 = vpop.f32.mrf.mxu0  ;;  %3988 = vrcp.f32 %v2651_v20 }
 0x522   : > { %v2864_v29 = vpack.c.bf16 %v2775_v23, %v2775_v23  ;;  %v2325_v22 = vpack.c.bf16 %v2303_v63, %v2303_v63  ;;  %v2894_v25 = vunpack.c.l.b16 %v1218_v50 }
 0x524   : > { %v3048_v41 = vunpack.c.l.b16 %v2864_v29  ;;  %v3001_v48 = vunpack.c.l.b16 %v2325_v22 }
 0x526   : > { %v3062_v2 = vpack.c.b16 %v3048_v41, %v3047_v19 }
 0x527   : > { %v3989_v18 = vpop.eup %3988 }
 0x528   : > { %3071 = vrot.lane.b32.xlu0 %v3062_v2, %s4206_s29  ;;  %v2693_v42 = vmul.f32 %v3989_v18, %v5769_v35  ;;  %v1217_v35 = vpack.c.bf16 %v5507_v9, %v5507_v9 }
 0x529   : > { %v2305_v60 = vpop.f32.mrf.mxu1  ;;  %v2778_v32 = vpop.f32.mrf.mxu0 }
 0x52a   : > { %v2326_v45 = vpack.c.bf16 %v2305_v60, %v2305_v60  ;;  %v2865_v1 = vpack.c.bf16 %v2778_v32, %v2778_v32  ;;  %v2709_v63 = vpack.c.bf16 %v2693_v42, %v2693_v42  ;;  %v2893_v60 = vunpack.c.l.b16 %v1217_v35 }
 0x52b   : > { %v1220_v42 = vpack.c.bf16 %v5526_v27, %v5526_v27 }
 0x52c   : > { %v3002_v61 = vunpack.c.l.b16 %v2326_v45  ;;  %v3049_v30 = vunpack.c.l.b16 %v2865_v1  ;;  %v2798_v4 = vunpack.c.l.b16 %v2709_v63  ;;  %v2909_v45 = vpack.c.b16 %v2894_v25, %v2893_v60 }
 0x52e   : > { %v3011_v0 = vpack.c.b16 %v3002_v61, %v3001_v48 }
 0x530   : > { %3025 = vrot.lane.b32.xlu2 %v3011_v0, %s4205_s24 }
 0x531   : > { %v2780_v46 = vpop.f32.mrf.mxu0  ;;  %v2663_v24 = vpop.xlane.xlu0 %2662 }
 0x532   : > { %v2866_v15 = vpack.c.bf16 %v2780_v46, %v2780_v46 }
 0x534   : > { %v3050_v56 = vunpack.c.l.b16 %v2866_v15  ;;  %v2666_v41 = vpop.xlane.xlu1 %2665 }
 0x536   : > { %v3063_v38 = vpack.c.b16 %v3050_v56, %v3049_v30  ;;  %v2308_v34 = vpop.f32.mrf.mxu1 }
 0x537   : > { %v2327_v14 = vpack.c.bf16 %v2308_v34, %v2308_v34 }
 0x538   : > { %3073 = vrot.lane.b32.xlu0 %v3063_v38, %s4206_s29 }
 0x539   : > { %v2783_v54 = vpop.f32.mrf.mxu0  ;;  %v3003_v13 = vunpack.c.l.b16 %v2327_v14 }
 0x53a   : > { %v2867_v44 = vpack.c.bf16 %v2783_v54, %v2783_v54 }
 0x53c   : > { %v3051_v51 = vunpack.c.l.b16 %v2867_v44 }
 0x53d   : > { %v2654_v49 = vpop.xlane.xlu2 %2653 }
 0x53e   : > { %3990 = vrcp.f32 %v2654_v49  ;;  %v2310_v36 = vpop.f32.mrf.mxu1 }
 0x53f   : > { %v2328_v7 = vpack.c.bf16 %v2310_v36, %v2310_v36 }
 0x541   : > { %v3004_v3 = vunpack.c.l.b16 %v2328_v7  ;;  %v2785_v5 = vpop.f32.mrf.mxu0 }
 0x542   : > { %v2868_v8 = vpack.c.bf16 %v2785_v5, %v2785_v5  ;;  %v2896_v5 = vunpack.c.l.b16 %v1220_v42 }
 0x543   : > { %v3012_v28 = vpack.c.b16 %v3004_v3, %v3003_v13  ;;  %v1219_v13 = vpack.c.bf16 %v5517_v43, %v5517_v43  ;;  %v1222_v43 = vpack.c.bf16 %v5551_v47, %v5551_v47  ;;  %v1223_v47 = vpack.c.bf16 %v5568_v31, %v5568_v31  ;;  %v5897_v31 = vld [vmem:[%s6004_s4] ss:$0 sm:$0xff] }
 0x544   : > { %v3991_v21 = vpop.eup %3990  ;;  %v3052_v59 = vunpack.c.l.b16 %v2868_v8  ;;  %v3014_v48 = vpop.permute.xlu0 %3013 }
 0x545   : > { %v2694_v23 = vmul.f32 %v3991_v21, %v5797_v58  ;;  %3027 = vrot.lane.b32.xlu2 %v3012_v28, %s4205_s24  ;;  %v2660_v29 = vpop.xlane.xlu2 %2659 }
 0x546   : > { %v3064_v19 = vpack.c.b16 %v3052_v59, %v3051_v51  ;;  %3992 = vrcp.f32 %v2660_v29 }
 0x547   : > { %v2710_v2 = vpack.c.bf16 %v2694_v23, %v2694_v23  ;;  %3994 = vrcp.f32 %v2657_v11 }
 0x548   : > { %3075 = vrot.lane.b32.xlu0 %v3064_v19, %s4206_s29  ;;  %3996 = vrcp.f32 %v2666_v41  ;;  %v2898_v19 = vunpack.c.l.b16 %v1222_v43 }
 0x549   : > { %v2799_v22 = vunpack.c.l.b16 %v2710_v2  ;;  %3998 = vrcp.f32 %v2663_v24  ;;  %v1221_v24 = vpack.c.bf16 %v5539_v12, %v5539_v12 }
 0x54b   : > { %v2805_v32 = vpack.c.b16 %v2799_v22, %v2798_v4  ;;  %v2897_v41 = vunpack.c.l.b16 %v1221_v24 }
 0x54c   : > { %v3993_v58 = vpop.eup %3992  ;;  %v3070_v53 = vpop.permute.xlu1 %3069 }
 0x54d   : > { %3573 = vmatmul.msk.bf16.gmra.mxu1 %vm854_vm1, %v2805_v32  ;;  %v2958_v17 = vpop.permute.xlu2 %2957  ;;  %v3995_v9 = vpop.eup %3994  ;;  %v2696_v0 = vmul.f32 %v3993_v58, %v5805_v62  ;;  %v2911_v25 = vpack.c.b16 %v2898_v19, %v2897_v41 }
 0x54e   : > { %v3087_v61 = vsel %vm723_vm0, %v2909_v45, %v2958_v17  ;;  %v2695_v15 = vmul.f32 %v3995_v9, %v5734_v33  ;;  %v3997_v54 = vpop.eup %3996  ;;  %v2960_v3 = vpop.permute.xlu0 %2959  ;;  %v1224_v45 = vpack.c.bf16 %v5589_v37, %v5589_v37  ;;  %v2899_v17 = vunpack.c.l.b16 %v1223_v47 }
 0x54f   : > { %v3110_v1 = vsel %vm854_vm1, %v3087_v61, %v3014_v48  ;;  %v2712_v30 = vpack.c.bf16 %v2696_v0, %v2696_v0  ;;  %v3999_v14 = vpop.eup %3998  ;;  %v2698_v62 = vmul.f32 %v3997_v54, %v5792_v52  ;;  %v2895_v52 = vunpack.c.l.b16 %v1219_v13 }
 0x550   : > { %v3127_v46 = vsel %vm3125_vm2, %v3110_v1, %v3070_v53  ;;  %v2711_v56 = vpack.c.bf16 %v2695_v15, %v2695_v15  ;;  %v2697_v49 = vmul.f32 %v3999_v14, %v5787_v39  ;;  %v2900_v12 = vunpack.c.l.b16 %v1224_v45 }
 0x551   : > { %3226 = vmatmul.bf16.vlgmr.msra.gmra.mxu2 %v3127_v46  ;;  %v2801_v20 = vunpack.c.l.b16 %v2712_v30  ;;  %v2714_v18 = vpack.c.bf16 %v2698_v62, %v2698_v62  ;;  %v2910_v21 = vpack.c.b16 %v2896_v5, %v2895_v52  ;;  %v1227_v45 = vpack.c.bf16 %v5703_v16, %v5703_v16 }
 0x552   : > { %v2800_v38 = vunpack.c.l.b16 %v2711_v56  ;;  %v2713_v36 = vpack.c.bf16 %v2697_v49, %v2697_v49  ;;  %v2912_v48 = vpack.c.b16 %v2900_v12, %v2899_v17  ;;  %v1230_v16 = vpack.c.bf16 %v5730_v26, %v5730_v26 }
 0x553   : > { %v2803_v11 = vunpack.c.l.b16 %v2714_v18  ;;  %v3090_v63 = vsel %vm723_vm0, %v2910_v21, %v2960_v3  ;;  %v1226_v21 = vpack.c.bf16 %v5699_v10, %v5699_v10  ;;  %v2903_v12 = vunpack.c.l.b16 %v1227_v45 }
 0x554   : > { %v2806_v34 = vpack.c.b16 %v2801_v20, %v2800_v38  ;;  %v2802_v33 = vunpack.c.l.b16 %v2713_v36  ;;  %v2962_v2 = vpop.permute.xlu1 %2961  ;;  %v1232_v26 = vpack.c.bf16 %v5754_v40, %v5754_v40 }
 0x555   : > { %v3016_v50 = vpop.permute.xlu2 %3015  ;;  %v3093_v22 = vsel %vm723_vm0, %v2911_v25, %v2962_v2 }
 0x556   : > { %v2807_v7 = vpack.c.b16 %v2803_v11, %v2802_v33  ;;  %v3112_v23 = vsel %vm854_vm1, %v3090_v63, %v3016_v50  ;;  %v1225_v50 = vpack.c.bf16 %v5693_v55, %v5693_v55 }
 0x55c   : > { %v2964_v9 = vpop.permute.xlu1 %2963 }
 0x55d   : > { %3574 = vmatmul.msk.bf16.gmra.mxu1 %vm854_vm1, %v2806_v34  ;;  %v3018_v4 = vpop.permute.xlu2 %3017  ;;  %v3096_v0 = vsel %vm723_vm0, %v2912_v48, %v2964_v9 }
 0x55e   : > { %v3114_v60 = vsel %vm854_vm1, %v3093_v22, %v3018_v4 }
 0x564   : > { %v2966_v63 = vpop.permute.xlu1 %2965 }
 0x565   : > { %v3020_v61 = vpop.permute.xlu2 %3019 }
 0x566   : > { %v3116_v53 = vsel %vm854_vm1, %v3096_v0, %v3020_v61 }
 0x56c   : > { %v2968_v17 = vpop.permute.xlu1 %2967 }
 0x56d   : > { %3575 = vmatmul.msk.bf16.gmra.mxu1 %vm854_vm1, %v2807_v7 }
 0x58d   : > { %v2841_v44 = vpop.f32.mrf.mxu1 }
 0x58e   : > { %v2869_v8 = vpack.c.bf16 %v2841_v44, %v2841_v44 }
 0x590   : > { %v3053_v51 = vunpack.c.l.b16 %v2869_v8 }
 0x595   : > { %v2843_v28 = vpop.f32.mrf.mxu1 }
 0x596   : > { %v2870_v39 = vpack.c.bf16 %v2843_v28, %v2843_v28 }
 0x598   : > { %v3054_v59 = vunpack.c.l.b16 %v2870_v39 }
 0x59a   : > { %v3065_v29 = vpack.c.b16 %v3054_v59, %v3053_v51  ;;  %v3072_v35 = vpop.permute.xlu0 %3071  ;;  %v2902_v51 = vunpack.c.l.b16 %v1226_v21  ;;  %v2901_v59 = vunpack.c.l.b16 %v1225_v50 }
 0x59b   : > { %v3130_v27 = vsel %vm3125_vm2, %v3112_v23, %v3072_v35 }
 0x59c   : > { %3077 = vrot.lane.b32.xlu0 %v3065_v29, %s4206_s29  ;;  %3231 = vmatmul.bf16.gmra.mxu2 %v3130_v27  ;;  %v2913_v23 = vpack.c.b16 %v2902_v51, %v2901_v59  ;;  %v3022_v29 = vpop.permute.xlu2 %3021 }
 0x59e   : > { %v3099_v35 = vsel %vm723_vm0, %v2913_v23, %v2966_v63 }
 0x59f   : > { %v3118_v27 = vsel %vm854_vm1, %v3099_v35, %v3022_v29 }
 0x5a4   : > { %v3024_v61 = vpop.permute.xlu2 %3023 }
 0x5aa   : > { %v3074_v32 = vpop.permute.xlu0 %3073 }
 0x5ab   : > { %v3133_v58 = vsel %vm3125_vm2, %v3114_v60, %v3074_v32  ;;  %v1228_v32 = vpack.c.bf16 %v5715_v6, %v5715_v6 }
 0x5ac   : > { %3236 = vmatmul.bf16.gmra.mxu2 %v3133_v58 }
 0x5ad   : > { %v2904_v47 = vunpack.c.l.b16 %v1228_v32 }
 0x5af   : > { %v2914_v48 = vpack.c.b16 %v2904_v47, %v2903_v12 }
 0x5ba   : > { %v3076_v1 = vpop.permute.xlu0 %3075 }
 0x5bb   : > { %v3136_v46 = vsel %vm3125_vm2, %v3116_v53, %v3076_v1  ;;  %v3102_v53 = vsel %vm723_vm0, %v2914_v48, %v2968_v17 }
 0x5bc   : > { %3241 = vmatmul.bf16.gmra.mxu2 %v3136_v46  ;;  %v3120_v1 = vsel %vm854_vm1, %v3102_v53, %v3024_v61 }
 0x5ca   : > { %v2846_v15 = vpop.f32.mrf.mxu1 }
 0x5cb   : > { %v2871_v30 = vpack.c.bf16 %v2846_v15, %v2846_v15  ;;  %v1229_v15 = vpack.c.bf16 %v5720_v57, %v5720_v57 }
 0x5cd   : > { %v3055_v38 = vunpack.c.l.b16 %v2871_v30  ;;  %v2906_v30 = vunpack.c.l.b16 %v1230_v16 }
 0x5d2   : > { %v2848_v37 = vpop.f32.mrf.mxu1 }
 0x5d3   : > { %v2872_v56 = vpack.c.bf16 %v2848_v37, %v2848_v37  ;;  %v2905_v37 = vunpack.c.l.b16 %v1229_v15 }
 0x5d4   : > { %v3227_v20 = vpop.f32.mrf.mxu2 }
 0x5d5   : > { %v3056_v34 = vunpack.c.l.b16 %v2872_v56  ;;  %v3228_v54 = vadd.f32 %v5897_v31, %v3227_v20  ;;  %v2970_v56 = vpop.permute.xlu1 %2969  ;;  %v2915_v20 = vpack.c.b16 %v2906_v30, %v2905_v37 }
 0x5d7   : > { %v3066_v14 = vpack.c.b16 %v3056_v34, %v3055_v38  ;;  %3267 = vst [vmem:[%s5902_s27] sm:$0xff] %v3228_v54  ;;  %v3026_v38 = vpop.permute.xlu2 %3025  ;;  %v3105_v34 = vsel %vm723_vm0, %v2915_v20, %v2970_v56 }
 0x5d8   : > { %v3122_v54 = vsel %vm854_vm1, %v3105_v34, %v3026_v38 }
 0x5d9   : > { %3079 = vrot.lane.b32.xlu0 %v3066_v14, %s4206_s29 }
 0x5da   : > { %v2851_v62 = vpop.f32.mrf.mxu1 }
 0x5db   : > { %v2873_v36 = vpack.c.bf16 %v2851_v62, %v2851_v62 }
 0x5dc   : > { %v3229_v49 = vpop.f32.mrf.mxu2 }
 0x5dd   : > { %v3230_v18 = vadd.f32 %v5897_v31, %v3229_v49  ;;  %v3057_v7 = vunpack.c.l.b16 %v2873_v36  ;;  %v6047_v49 = vld [vmem:[#allocation22_spill] sm:$0xff] }
 0x5de   : > { %v1231_v57 = vpack.c.bf16 %v6047_v49, %v6047_v49 }
 0x5df   : > { %3268 = vst [vmem:[%s5902_s27 + $0x8] sm:$0xff] %v3230_v18  ;;  %v2908_v18 = vunpack.c.l.b16 %v1232_v26 }
 0x5e0   : > { %v2907_v36 = vunpack.c.l.b16 %v1231_v57 }
 0x5e2   : > { %v2853_v11 = vpop.f32.mrf.mxu1 }
 0x5e3   : > { %v2874_v33 = vpack.c.bf16 %v2853_v11, %v2853_v11  ;;  %v2972_v11 = vpop.permute.xlu1 %2971 }
 0x5e5   : > { %v3058_v44 = vunpack.c.l.b16 %v2874_v33  ;;  %v2916_v33 = vpack.c.b16 %v2908_v18, %v2907_v36 }
 0x5e7   : > { %v3067_v42 = vpack.c.b16 %v3058_v44, %v3057_v7  ;;  %v3028_v7 = vpop.permute.xlu2 %3027  ;;  %v3108_v44 = vsel %vm723_vm0, %v2916_v33, %v2972_v11 }
 0x5e9   : > { %3081 = vrot.lane.b32.xlu0 %v3067_v42, %s4206_s29  ;;  %v3124_v42 = vsel %vm854_vm1, %v3108_v44, %v3028_v7 }
 0x5ea   : > { %v2856_v13 = vpop.f32.mrf.mxu1 }
 0x5eb   : > { %v2875_v3 = vpack.c.bf16 %v2856_v13, %v2856_v13 }
 0x5ed   : > { %v3059_v52 = vunpack.c.l.b16 %v2875_v3 }
 0x5f2   : > { %v2858_v5 = vpop.f32.mrf.mxu1 }
 0x5f3   : > { %v2876_v8 = vpack.c.bf16 %v2858_v5, %v2858_v5 }
 0x5f5   : > { %v3060_v28 = vunpack.c.l.b16 %v2876_v8 }
 0x5f7   : > { %v3068_v39 = vpack.c.b16 %v3060_v28, %v3059_v52 }
 0x5f9   : > { %3083 = vrot.lane.b32.xlu0 %v3068_v39, %s4206_s29  ;;  %s4140_s29 = scalar_lea.hbm %s6005_s5, 256 }
 0x5fa   : > { %p4142_p9 = scmp.lt.s32.totalorder %s4140_s29, %s4136_s22 }
 0x5fc   : > { %p4143_p2 = por %p4142_p9, %p4141_p11 }
 0x5fe   : > { %p4144_p10 = pnand %p4143_p2, %p4139_p8 }
 0x60e   : > { %v3078_v43 = vpop.permute.xlu0 %3077 }
 0x60f   : > { %v3139_v24 = vsel %vm3125_vm2, %v3118_v27, %v3078_v43 }
 0x610   : > { %3246 = vmatmul.bf16.gmra.mxu2 %v3139_v24 }
 0x61f   : > { %v3232_v10 = vpop.f32.mrf.mxu2 }
 0x620   : > { %v3233_v55 = vadd.f32 %v5897_v31, %v3232_v10 }
 0x622   : > { %3269 = vst [vmem:[%s5902_s27 + $0x10] sm:$0xff] %v3233_v55 }
 0x627   : > { %v3234_v19 = vpop.f32.mrf.mxu2 }
 0x628   : > { %v3235_v41 = vadd.f32 %v5897_v31, %v3234_v19 }
 0x62a   : > { %3270 = vst [vmem:[%s5902_s27 + $0x18] sm:$0xff] %v3235_v41 }
 0x62f   : > { %v3237_v2 = vpop.f32.mrf.mxu2 }
 0x630   : > { %v3238_v25 = vadd.f32 %v5897_v31, %v3237_v2 }
 0x632   : > { %3271 = vst [vmem:[%s5902_s27 + $0x20] sm:$0xff] %v3238_v25 }
 0x637   : > { %v3239_v4 = vpop.f32.mrf.mxu2 }
 0x638   : > { %v3240_v22 = vadd.f32 %v5897_v31, %v3239_v4 }
 0x63a   : > { %3272 = vst [vmem:[%s5902_s27 + $0x28] sm:$0xff] %v3240_v22 }
 0x63f   : > { %v3242_v60 = vpop.f32.mrf.mxu2 }
 0x640   : > { %v3243_v58 = vadd.f32 %v5897_v31, %v3242_v60 }
 0x642   : > { %3273 = vst [vmem:[%s5902_s27 + $0x30] sm:$0xff] %v3243_v58 }
 0x647   : > { %v3244_v9 = vpop.f32.mrf.mxu2 }
 0x648   : > { %v3245_v0 = vadd.f32 %v5897_v31, %v3244_v9 }
 0x64a   : > { %3274 = vst [vmem:[%s5902_s27 + $0x38] sm:$0xff] %v3245_v0 }
 0x64b   : > { %v3080_v6 = vpop.permute.xlu0 %3079 }
 0x64c   : > { %v3142_v46 = vsel %vm3125_vm2, %v3120_v1, %v3080_v6 }
 0x64d   : > { %3251 = vmatmul.bf16.gmra.mxu2 %v3142_v46 }
 0x65b   : > { %v3082_v14 = vpop.permute.xlu0 %3081 }
 0x65c   : > { %v3145_v62 = vsel %vm3125_vm2, %v3122_v54, %v3082_v14 }
 0x65d   : > { %3256 = vmatmul.bf16.gmra.mxu2 %v3145_v62 }
 0x66b   : > { %v3084_v13 = vpop.permute.xlu0 %3083 }
 0x66c   : > { %v3148_v3 = vsel %vm3125_vm2, %v3124_v42, %v3084_v13 }
 0x66d   : > { %3261 = vmatmul.bf16.gmra.mxu2 %v3148_v3 }
 0x693   : > { %v3247_v40 = vpop.f32.mrf.mxu2 }
 0x694   : > { %v3248_v5 = vadd.f32 %v5897_v31, %v3247_v40 }
 0x696   : > { %3275 = vst [vmem:[%s5902_s27 + $0x40] sm:$0xff] %v3248_v5 }
 0x69b   : > { %v3249_v8 = vpop.f32.mrf.mxu2 }
 0x69c   : > { %v3250_v52 = vadd.f32 %v5897_v31, %v3249_v8 }
 0x69e   : > { %3276 = vst [vmem:[%s5902_s27 + $0x48] sm:$0xff] %v3250_v52 }
 0x6d0   : > { %v3252_v28 = vpop.f32.mrf.mxu2 }
 0x6d1   : > { %v3253_v39 = vadd.f32 %v5897_v31, %v3252_v28 }
 0x6d3   : > { %3277 = vst [vmem:[%s5902_s27 + $0x50] sm:$0xff] %v3253_v39 }
 0x6d8   : > { %v3254_v21 = vpop.f32.mrf.mxu2 }
 0x6d9   : > { %v3255_v50 = vadd.f32 %v5897_v31, %v3254_v21 }
 0x6db   : > { %3278 = vst [vmem:[%s5902_s27 + $0x58] sm:$0xff] %v3255_v50 }
 0x6e0   : > { %v3257_v51 = vpop.f32.mrf.mxu2 }
 0x6e1   : > { %v3258_v59 = vadd.f32 %v5897_v31, %v3257_v51 }
 0x6e3   : > { %3279 = vst [vmem:[%s5902_s27 + $0x60] sm:$0xff] %v3258_v59 }
 0x6e8   : > { %v3259_v63 = vpop.f32.mrf.mxu2 }
 0x6e9   : > { %v3260_v23 = vadd.f32 %v5897_v31, %v3259_v63 }
 0x6eb   : > { %3280 = vst [vmem:[%s5902_s27 + $0x68] sm:$0xff] %v3260_v23 }
 0x6f0   : > { %v3262_v29 = vpop.f32.mrf.mxu2 }
 0x6f1   : > { %v3263_v35 = vadd.f32 %v5897_v31, %v3262_v29 }
 0x6f3   : > { %3281 = vst [vmem:[%s5902_s27 + $0x70] sm:$0xff] %v3263_v35 }
 0x6f8   : > { %v3264_v27 = vpop.f32.mrf.mxu2 }
 0x6f9   : > { %v3265_v43 = vadd.f32 %v5897_v31, %v3264_v27 }
 0x6fb   : > { %3282 = vst [vmem:[%s5902_s27 + $0x78] sm:$0xff] %v3265_v43 }
 0x6fc   : > { %4147 = shalt.err (!%p4144_p10)
}
 0x6fd   : > { %s4208_s17 = smov 128   ;;  %s4209_s26 = smov 8  }
 0x6fe   : > { %3669 = dma.vmem_to_hbm [thread:$0]  (%p4323_p7), %s3297_s7, 2048, %s3299_s15, %s3284_s28, %s4208_s17, %s4208_s17, %s4209_s26  }
 0x6ff PF: > { %s3313_s27 = sand.u32 1, %s4182_s18   ;;  %p6048_p12 = scmp.ge.s32.totalorder %s4194_s21, 2 }
 0x700   : > { %s3314_s11 = scalar_lea.sflag [#allocation4], %s3313_s27 }
 0x701   : > { %p3686_p13 = pnand %p6048_p12, %p4275_p6 }
 0x703   : > { %p3687_p0 = pneg %p3686_p13 }
 0x705   : > { %4177 = dma.done.wait (%p3687_p0), %s3314_s11, 2048  }
 0x706   : > { %4179 = vsyncadd (%p3687_p0), %s3314_s11, 4294965248  ;;  %p20_p3 = scmp.ge.s32.totalorder %s4309_s30, 4   ;;  %s6049_s18 = smov %s4186_s19 }
 0x707   : > { %s6050_s19 = smov %s4190_s20  ;;  %s6051_s20 = smov %s4319_s9 }
 0x708   : > { %s6052_s21 = smov %s4309_s30  ;;  %22 = sbr.rel (!%p20_p3) target bundleno = 7 (0x7), region = 97 }
 0x70d   :  { %3320 = vsyncpa [#allocation3], 1 }
 0x70e   :  { %3322 = vsyncpa [#allocation3 + $0x1], 1 }
 0x70f   :  { %3323 = vsyncpa [#allocation6], 1 }
 0x710   :  { %3324 = vsyncpa [#allocation9], 1 }
 0x711   :  { %3325 = vsyncpa [#allocation4], 1 }
 0x712   :  { %3327 = vsyncpa [#allocation4 + $0x1], 1 }

</bundles_post_ra>
